<compile_context>
chip_gen: v7x
topology: tpu7x:2x2x1
jax: 0.10.0
libtpu: 0.0.40
codegen_flags: <defaults>
</compile_context>

<pallas_src>
import jax
import jax.numpy as jnp
from jax.experimental import pallas as pl
from jax.experimental.pallas import tpu as pltpu

HIDDEN = 128
INPUT_SIZE = 3
NUM_CLASSES = 10
OUT_PAD = 128  # lane-dense padded output width


def lstm_net_kernel(xg_ref,                     # (T, B, 4H) precomputed x@wih0 + b0
                    whh0_ref,                   # (H, 4H)
                    w1_ref,                     # (2H, 4H) stacked [wih1; whh1]
                    b1_ref,                     # (1, 4H)
                    fc1w_ref, fc1b_ref,         # (H, H), (1, H)
                    fc2w_ref, fc2b_ref,         # (H, OUT_PAD), (1, OUT_PAD)
                    out_ref):                   # (B, OUT_PAD)
    T, B, _ = xg_ref.shape
    H = HIDDEN

    # Hoist all loop-invariant loads / broadcasts out of the recurrence.
    whh0 = whh0_ref[...]                               # (H, 4H)
    w1 = w1_ref[...]                                   # (2H, 4H)
    b1 = jnp.broadcast_to(b1_ref[...], (B, 4 * H))     # (B, 4H)

    def gates_to_hc(gates, c):
        # PyTorch LSTM gate order: i, f, g, o
        i = jax.nn.sigmoid(gates[:, 0 * H:1 * H])
        f = jax.nn.sigmoid(gates[:, 1 * H:2 * H])
        g = jnp.tanh(gates[:, 2 * H:3 * H])
        o = jax.nn.sigmoid(gates[:, 3 * H:4 * H])
        c_new = f * c + i * g
        h_new = o * jnp.tanh(c_new)
        return h_new, c_new

    z = jnp.zeros((B, H), jnp.float32)
    h0, c0, h1, c1 = z, z, z, z

    # Static full unroll: T is small & static; every xg_ref[t] is a static view,
    # and the scheduler gets cross-step visibility (EUP of step t under MXU of t+1).
    for t in range(T):
        # Layer 0: input projection (incl. biases) precomputed; only the recurrent
        # K=128 matmul is on the critical path.
        g0 = xg_ref[t] + jnp.dot(h0, whh0, preferred_element_type=jnp.float32)
        h0, c0 = gates_to_hc(g0, c0)
        # Layer 1: fused gate matmul -> single K=256 pass ([h0 | h1] @ [wih1; whh1]).
        g1 = jnp.dot(jnp.concatenate([h0, h1], axis=1), w1,
                     preferred_element_type=jnp.float32) + b1
        h1, c1 = gates_to_hc(g1, c1)

    hid = jnp.maximum(
        jnp.dot(h1, fc1w_ref[...], preferred_element_type=jnp.float32)
        + fc1b_ref[...], 0.0)
    # Lane-dense (B, 128) store; wrapper slices the first NUM_CLASSES columns.
    out_ref[...] = (jnp.dot(hid, fc2w_ref[...],
                            preferred_element_type=jnp.float32)
                    + fc2b_ref[...])


@jax.jit
def lstm_net_forward(x, params):
    """x: (B, T, 3) float32 -> (B, NUM_CLASSES) float32."""
    B, T, _ = x.shape

    # Hoisted input projection: one MXU-efficient matmul over all timesteps,
    # producing the time-major lane-dense tensor directly (no separate transpose).
    xg = jnp.einsum('btk,kg->tbg', x, params["wih0"]) + params["b0"]   # (T, B, 4H)

    # Fuse layer-1 gate weights into a single (2H, 4H) operand.
    w1 = jnp.concatenate([params["wih1"], params["whh1"]], axis=0)     # (2H, 4H)

    # Lane-dense fc2: pad output features 10 -> 128 with zeros.
    fc2w_pad = jnp.pad(params["fc2w"], ((0, 0), (0, OUT_PAD - NUM_CLASSES)))
    fc2b_pad = jnp.pad(params["fc2b"], ((0, 0), (0, OUT_PAD - NUM_CLASSES)))

    out_pad = pl.pallas_call(
        lstm_net_kernel,
        out_shape=jax.ShapeDtypeStruct((B, OUT_PAD), jnp.float32),
        # Everything (~1 MB of operands) fits in VMEM -> gridless, full-array blocks.
        compiler_params=pltpu.CompilerParams(vmem_limit_bytes=32 * 1024 * 1024),
    )(xg, params["whh0"], w1, params["b1"],
      params["fc1w"], params["fc1b"],
      fc2w_pad, fc2b_pad)

    return out_pad[:, :NUM_CLASSES]


def init_params(key):
    """Deterministic PyTorch-style uniform(-1/sqrt(H), 1/sqrt(H)) init."""
    keys = jax.random.split(key, 16)
    k = 1.0 / jnp.sqrt(jnp.float32(HIDDEN))

    def u(kk, shape):
        return jax.random.uniform(kk, shape, jnp.float32, -k, k)

    params = {
        # layer 0 (input 3 -> hidden 128), weights stored (in, 4H)
        "wih0": u(keys[0], (INPUT_SIZE, 4 * HIDDEN)),
        "whh0": u(keys[1], (HIDDEN, 4 * HIDDEN)),
        "b0":   u(keys[2], (1, 4 * HIDDEN)) + u(keys[3], (1, 4 * HIDDEN)),
        # layer 1 (hidden 128 -> hidden 128)
        "wih1": u(keys[4], (HIDDEN, 4 * HIDDEN)),
        "whh1": u(keys[5], (HIDDEN, 4 * HIDDEN)),
        "b1":   u(keys[6], (1, 4 * HIDDEN)) + u(keys[7], (1, 4 * HIDDEN)),
        # fc1: Linear(128, 128)
        "fc1w": u(keys[8], (HIDDEN, HIDDEN)),
        "fc1b": u(keys[9], (1, HIDDEN)),
        # fc2: Linear(128, num_classes)
        "fc2w": u(keys[10], (HIDDEN, NUM_CLASSES)),
        "fc2b": u(keys[11], (1, NUM_CLASSES)),
    }
    return params


def reference_forward(x, params):
    """Pure-JAX reference of the PyTorch forward, for verification."""
    B, T, _ = x.shape
    H = HIDDEN

    def cell(xt, h, c, wih, whh, b):
        gates = xt @ wih + h @ whh + b
        i = jax.nn.sigmoid(gates[:, 0 * H:1 * H])
        f = jax.nn.sigmoid(gates[:, 1 * H:2 * H])
        g = jnp.tanh(gates[:, 2 * H:3 * H])
        o = jax.nn.sigmoid(gates[:, 3 * H:4 * H])
        c_new = f * c + i * g
        return o * jnp.tanh(c_new), c_new

    h0 = c0 = h1 = c1 = jnp.zeros((B, H), jnp.float32)
    for t in range(T):
        xt = x[:, t, :]
        h0, c0 = cell(xt, h0, c0, params["wih0"], params["whh0"], params["b0"])
        h1, c1 = cell(h0, h1, c1, params["wih1"], params["whh1"], params["b1"])
    hid = jnp.maximum(h1 @ params["fc1w"] + params["fc1b"], 0.0)
    return hid @ params["fc2w"] + params["fc2b"]


if __name__ == "__main__":
    key = jax.random.PRNGKey(0)
    kx, kp = jax.random.split(key)

    B, T = 2, 8
    x = jax.random.normal(kx, (B, T, INPUT_SIZE), jnp.float32)
    params = init_params(kp)

    out = lstm_net_forward(x, params)
    out = jax.block_until_ready(out)

    ref = reference_forward(x, params)
    assert out.shape == (B, NUM_CLASSES)
    assert jnp.allclose(out, ref, atol=1e-4, rtol=1e-4), "mismatch vs reference"

    print("KERNEL_OK")
</pallas_src>

<mosaic_0001>
module attributes {stable_mosaic.version = 11 : i64} {
  func.func @lstm_net_kernel(%arg0: memref<8x2x512xf32, #tpu.memory_space<vmem>>, %arg1: memref<128x512xf32, #tpu.memory_space<vmem>>, %arg2: memref<256x512xf32, #tpu.memory_space<vmem>>, %arg3: memref<1x512xf32, #tpu.memory_space<vmem>>, %arg4: memref<128x128xf32, #tpu.memory_space<vmem>>, %arg5: memref<1x128xf32, #tpu.memory_space<vmem>>, %arg6: memref<128x128xf32, #tpu.memory_space<vmem>>, %arg7: memref<1x128xf32, #tpu.memory_space<vmem>>, %arg8: memref<2x128xf32, #tpu.memory_space<vmem>>) attributes {dimension_semantics = [], scalar_prefetch = 0 : i64, scratch_operands = 0 : i64, tpu.core_type = #tpu.core_type<tc>} {
    %c0 = arith.constant 0 : index
    %c0_0 = arith.constant 0 : index
    %0 = vector.load %arg1[%c0, %c0_0] : memref<128x512xf32, #tpu.memory_space<vmem>>, vector<128x512xf32>
    %c0_1 = arith.constant 0 : index
    %c0_2 = arith.constant 0 : index
    %1 = vector.load %arg2[%c0_1, %c0_2] : memref<256x512xf32, #tpu.memory_space<vmem>>, vector<256x512xf32>
    %c0_3 = arith.constant 0 : index
    %c0_4 = arith.constant 0 : index
    %2 = vector.load %arg3[%c0_3, %c0_4] : memref<1x512xf32, #tpu.memory_space<vmem>>, vector<1x512xf32>
    %3 = vector.shape_cast %2 : vector<1x512xf32> to vector<1x512xf32>
    %4 = vector.broadcast %3 : vector<1x512xf32> to vector<2x512xf32>
    %cst = arith.constant 0.000000e+00 : f32
    %5 = vector.broadcast %cst : f32 to vector<2x128xf32>
    %c0_5 = arith.constant 0 : index
    %c0_6 = arith.constant 0 : index
    %c0_7 = arith.constant 0 : index
    %6 = vector.load %arg0[%c0_5, %c0_6, %c0_7] : memref<8x2x512xf32, #tpu.memory_space<vmem>>, vector<1x2x512xf32>
    %7 = vector.shape_cast %6 : vector<1x2x512xf32> to vector<2x512xf32>
    %cst_8 = arith.constant dense<0.000000e+00> : vector<2x512xf32>
    %8 = tpu.matmul %5, %0, %cst_8 {dimension_numbers = #tpu.dot_dimension_numbers<[1], [0], [0], [1], [0, 0, 1, 1], [], []>} : vector<2x128xf32>, vector<128x512xf32>, vector<2x512xf32> -> vector<2x512xf32>
    %9 = arith.addf %7, %8 : vector<2x512xf32>
    %10 = vector.extract_strided_slice %9 {offsets = [0, 0], sizes = [2, 128], strides = [1, 1]} : vector<2x512xf32> to vector<2x128xf32>
    %11 = arith.negf %10 : vector<2x128xf32>
    %12 = math.exp %11 : vector<2x128xf32>
    %cst_9 = arith.constant 1.000000e+00 : f32
    %13 = vector.broadcast %cst_9 : f32 to vector<2x128xf32>
    %14 = arith.addf %13, %12 : vector<2x128xf32>
    %15 = arith.divf %13, %14 : vector<2x128xf32>
    %16 = vector.extract_strided_slice %9 {offsets = [0, 128], sizes = [2, 128], strides = [1, 1]} : vector<2x512xf32> to vector<2x128xf32>
    %17 = arith.negf %16 : vector<2x128xf32>
    %18 = math.exp %17 : vector<2x128xf32>
    %cst_10 = arith.constant 1.000000e+00 : f32
    %19 = vector.broadcast %cst_10 : f32 to vector<2x128xf32>
    %20 = arith.addf %19, %18 : vector<2x128xf32>
    %21 = arith.divf %19, %20 : vector<2x128xf32>
    %22 = vector.extract_strided_slice %9 {offsets = [0, 256], sizes = [2, 128], strides = [1, 1]} : vector<2x512xf32> to vector<2x128xf32>
    %23 = math.tanh %22 : vector<2x128xf32>
    %24 = vector.extract_strided_slice %9 {offsets = [0, 384], sizes = [2, 128], strides = [1, 1]} : vector<2x512xf32> to vector<2x128xf32>
    %25 = arith.negf %24 : vector<2x128xf32>
    %26 = math.exp %25 : vector<2x128xf32>
    %cst_11 = arith.constant 1.000000e+00 : f32
    %27 = vector.broadcast %cst_11 : f32 to vector<2x128xf32>
    %28 = arith.addf %27, %26 : vector<2x128xf32>
    %29 = arith.divf %27, %28 : vector<2x128xf32>
    %30 = arith.mulf %21, %5 : vector<2x128xf32>
    %31 = arith.mulf %15, %23 : vector<2x128xf32>
    %32 = arith.addf %30, %31 : vector<2x128xf32>
    %33 = math.tanh %32 : vector<2x128xf32>
    %34 = arith.mulf %29, %33 : vector<2x128xf32>
    %35 = tpu.concatenate %34, %5 in 1 : vector<2x128xf32>, vector<2x128xf32> -> vector<2x256xf32>
    %cst_12 = arith.constant dense<0.000000e+00> : vector<2x512xf32>
    %36 = tpu.matmul %35, %1, %cst_12 {dimension_numbers = #tpu.dot_dimension_numbers<[1], [0], [0], [1], [0, 0, 1, 1], [], []>} : vector<2x256xf32>, vector<256x512xf32>, vector<2x512xf32> -> vector<2x512xf32>
    %37 = arith.addf %36, %4 : vector<2x512xf32>
    %38 = vector.extract_strided_slice %37 {offsets = [0, 0], sizes = [2, 128], strides = [1, 1]} : vector<2x512xf32> to vector<2x128xf32>
    %39 = arith.negf %38 : vector<2x128xf32>
    %40 = math.exp %39 : vector<2x128xf32>
    %cst_13 = arith.constant 1.000000e+00 : f32
    %41 = vector.broadcast %cst_13 : f32 to vector<2x128xf32>
    %42 = arith.addf %41, %40 : vector<2x128xf32>
    %43 = arith.divf %41, %42 : vector<2x128xf32>
    %44 = vector.extract_strided_slice %37 {offsets = [0, 128], sizes = [2, 128], strides = [1, 1]} : vector<2x512xf32> to vector<2x128xf32>
    %45 = arith.negf %44 : vector<2x128xf32>
    %46 = math.exp %45 : vector<2x128xf32>
    %cst_14 = arith.constant 1.000000e+00 : f32
    %47 = vector.broadcast %cst_14 : f32 to vector<2x128xf32>
    %48 = arith.addf %47, %46 : vector<2x128xf32>
    %49 = arith.divf %47, %48 : vector<2x128xf32>
    %50 = vector.extract_strided_slice %37 {offsets = [0, 256], sizes = [2, 128], strides = [1, 1]} : vector<2x512xf32> to vector<2x128xf32>
    %51 = math.tanh %50 : vector<2x128xf32>
    %52 = vector.extract_strided_slice %37 {offsets = [0, 384], sizes = [2, 128], strides = [1, 1]} : vector<2x512xf32> to vector<2x128xf32>
    %53 = arith.negf %52 : vector<2x128xf32>
    %54 = math.exp %53 : vector<2x128xf32>
    %cst_15 = arith.constant 1.000000e+00 : f32
    %55 = vector.broadcast %cst_15 : f32 to vector<2x128xf32>
    %56 = arith.addf %55, %54 : vector<2x128xf32>
    %57 = arith.divf %55, %56 : vector<2x128xf32>
    %58 = arith.mulf %49, %5 : vector<2x128xf32>
    %59 = arith.mulf %43, %51 : vector<2x128xf32>
    %60 = arith.addf %58, %59 : vector<2x128xf32>
    %61 = math.tanh %60 : vector<2x128xf32>
    %62 = arith.mulf %57, %61 : vector<2x128xf32>
    %c1 = arith.constant 1 : index
    %c0_16 = arith.constant 0 : index
    %c0_17 = arith.constant 0 : index
    %63 = vector.load %arg0[%c1, %c0_16, %c0_17] : memref<8x2x512xf32, #tpu.memory_space<vmem>>, vector<1x2x512xf32>
    %64 = vector.shape_cast %63 : vector<1x2x512xf32> to vector<2x512xf32>
    %cst_18 = arith.constant dense<0.000000e+00> : vector<2x512xf32>
    %65 = tpu.matmul %34, %0, %cst_18 {dimension_numbers = #tpu.dot_dimension_numbers<[1], [0], [0], [1], [0, 0, 1, 1], [], []>} : vector<2x128xf32>, vector<128x512xf32>, vector<2x512xf32> -> vector<2x512xf32>
    %66 = arith.addf %64, %65 : vector<2x512xf32>
    %67 = vector.extract_strided_slice %66 {offsets = [0, 0], sizes = [2, 128], strides = [1, 1]} : vector<2x512xf32> to vector<2x128xf32>
    %68 = arith.negf %67 : vector<2x128xf32>
    %69 = math.exp %68 : vector<2x128xf32>
    %cst_19 = arith.constant 1.000000e+00 : f32
    %70 = vector.broadcast %cst_19 : f32 to vector<2x128xf32>
    %71 = arith.addf %70, %69 : vector<2x128xf32>
    %72 = arith.divf %70, %71 : vector<2x128xf32>
    %73 = vector.extract_strided_slice %66 {offsets = [0, 128], sizes = [2, 128], strides = [1, 1]} : vector<2x512xf32> to vector<2x128xf32>
    %74 = arith.negf %73 : vector<2x128xf32>
    %75 = math.exp %74 : vector<2x128xf32>
    %cst_20 = arith.constant 1.000000e+00 : f32
    %76 = vector.broadcast %cst_20 : f32 to vector<2x128xf32>
    %77 = arith.addf %76, %75 : vector<2x128xf32>
    %78 = arith.divf %76, %77 : vector<2x128xf32>
    %79 = vector.extract_strided_slice %66 {offsets = [0, 256], sizes = [2, 128], strides = [1, 1]} : vector<2x512xf32> to vector<2x128xf32>
    %80 = math.tanh %79 : vector<2x128xf32>
    %81 = vector.extract_strided_slice %66 {offsets = [0, 384], sizes = [2, 128], strides = [1, 1]} : vector<2x512xf32> to vector<2x128xf32>
    %82 = arith.negf %81 : vector<2x128xf32>
    %83 = math.exp %82 : vector<2x128xf32>
    %cst_21 = arith.constant 1.000000e+00 : f32
    %84 = vector.broadcast %cst_21 : f32 to vector<2x128xf32>
    %85 = arith.addf %84, %83 : vector<2x128xf32>
    %86 = arith.divf %84, %85 : vector<2x128xf32>
    %87 = arith.mulf %78, %32 : vector<2x128xf32>
    %88 = arith.mulf %72, %80 : vector<2x128xf32>
    %89 = arith.addf %87, %88 : vector<2x128xf32>
    %90 = math.tanh %89 : vector<2x128xf32>
    %91 = arith.mulf %86, %90 : vector<2x128xf32>
    %92 = tpu.concatenate %91, %62 in 1 : vector<2x128xf32>, vector<2x128xf32> -> vector<2x256xf32>
    %cst_22 = arith.constant dense<0.000000e+00> : vector<2x512xf32>
    %93 = tpu.matmul %92, %1, %cst_22 {dimension_numbers = #tpu.dot_dimension_numbers<[1], [0], [0], [1], [0, 0, 1, 1], [], []>} : vector<2x256xf32>, vector<256x512xf32>, vector<2x512xf32> -> vector<2x512xf32>
    %94 = arith.addf %93, %4 : vector<2x512xf32>
    %95 = vector.extract_strided_slice %94 {offsets = [0, 0], sizes = [2, 128], strides = [1, 1]} : vector<2x512xf32> to vector<2x128xf32>
    %96 = arith.negf %95 : vector<2x128xf32>
    %97 = math.exp %96 : vector<2x128xf32>
    %cst_23 = arith.constant 1.000000e+00 : f32
    %98 = vector.broadcast %cst_23 : f32 to vector<2x128xf32>
    %99 = arith.addf %98, %97 : vector<2x128xf32>
    %100 = arith.divf %98, %99 : vector<2x128xf32>
    %101 = vector.extract_strided_slice %94 {offsets = [0, 128], sizes = [2, 128], strides = [1, 1]} : vector<2x512xf32> to vector<2x128xf32>
    %102 = arith.negf %101 : vector<2x128xf32>
    %103 = math.exp %102 : vector<2x128xf32>
    %cst_24 = arith.constant 1.000000e+00 : f32
    %104 = vector.broadcast %cst_24 : f32 to vector<2x128xf32>
    %105 = arith.addf %104, %103 : vector<2x128xf32>
    %106 = arith.divf %104, %105 : vector<2x128xf32>
    %107 = vector.extract_strided_slice %94 {offsets = [0, 256], sizes = [2, 128], strides = [1, 1]} : vector<2x512xf32> to vector<2x128xf32>
    %108 = math.tanh %107 : vector<2x128xf32>
    %109 = vector.extract_strided_slice %94 {offsets = [0, 384], sizes = [2, 128], strides = [1, 1]} : vector<2x512xf32> to vector<2x128xf32>
    %110 = arith.negf %109 : vector<2x128xf32>
    %111 = math.exp %110 : vector<2x128xf32>
    %cst_25 = arith.constant 1.000000e+00 : f32
    %112 = vector.broadcast %cst_25 : f32 to vector<2x128xf32>
    %113 = arith.addf %112, %111 : vector<2x128xf32>
    %114 = arith.divf %112, %113 : vector<2x128xf32>
    %115 = arith.mulf %106, %60 : vector<2x128xf32>
    %116 = arith.mulf %100, %108 : vector<2x128xf32>
    %117 = arith.addf %115, %116 : vector<2x128xf32>
    %118 = math.tanh %117 : vector<2x128xf32>
    %119 = arith.mulf %114, %118 : vector<2x128xf32>
    %c2 = arith.constant 2 : index
    %c0_26 = arith.constant 0 : index
    %c0_27 = arith.constant 0 : index
    %120 = vector.load %arg0[%c2, %c0_26, %c0_27] : memref<8x2x512xf32, #tpu.memory_space<vmem>>, vector<1x2x512xf32>
    %121 = vector.shape_cast %120 : vector<1x2x512xf32> to vector<2x512xf32>
    %cst_28 = arith.constant dense<0.000000e+00> : vector<2x512xf32>
    %122 = tpu.matmul %91, %0, %cst_28 {dimension_numbers = #tpu.dot_dimension_numbers<[1], [0], [0], [1], [0, 0, 1, 1], [], []>} : vector<2x128xf32>, vector<128x512xf32>, vector<2x512xf32> -> vector<2x512xf32>
    %123 = arith.addf %121, %122 : vector<2x512xf32>
    %124 = vector.extract_strided_slice %123 {offsets = [0, 0], sizes = [2, 128], strides = [1, 1]} : vector<2x512xf32> to vector<2x128xf32>
    %125 = arith.negf %124 : vector<2x128xf32>
    %126 = math.exp %125 : vector<2x128xf32>
    %cst_29 = arith.constant 1.000000e+00 : f32
    %127 = vector.broadcast %cst_29 : f32 to vector<2x128xf32>
    %128 = arith.addf %127, %126 : vector<2x128xf32>
    %129 = arith.divf %127, %128 : vector<2x128xf32>
    %130 = vector.extract_strided_slice %123 {offsets = [0, 128], sizes = [2, 128], strides = [1, 1]} : vector<2x512xf32> to vector<2x128xf32>
    %131 = arith.negf %130 : vector<2x128xf32>
    %132 = math.exp %131 : vector<2x128xf32>
    %cst_30 = arith.constant 1.000000e+00 : f32
    %133 = vector.broadcast %cst_30 : f32 to vector<2x128xf32>
    %134 = arith.addf %133, %132 : vector<2x128xf32>
    %135 = arith.divf %133, %134 : vector<2x128xf32>
    %136 = vector.extract_strided_slice %123 {offsets = [0, 256], sizes = [2, 128], strides = [1, 1]} : vector<2x512xf32> to vector<2x128xf32>
    %137 = math.tanh %136 : vector<2x128xf32>
    %138 = vector.extract_strided_slice %123 {offsets = [0, 384], sizes = [2, 128], strides = [1, 1]} : vector<2x512xf32> to vector<2x128xf32>
    %139 = arith.negf %138 : vector<2x128xf32>
    %140 = math.exp %139 : vector<2x128xf32>
    %cst_31 = arith.constant 1.000000e+00 : f32
    %141 = vector.broadcast %cst_31 : f32 to vector<2x128xf32>
    %142 = arith.addf %141, %140 : vector<2x128xf32>
    %143 = arith.divf %141, %142 : vector<2x128xf32>
    %144 = arith.mulf %135, %89 : vector<2x128xf32>
    %145 = arith.mulf %129, %137 : vector<2x128xf32>
    %146 = arith.addf %144, %145 : vector<2x128xf32>
    %147 = math.tanh %146 : vector<2x128xf32>
    %148 = arith.mulf %143, %147 : vector<2x128xf32>
    %149 = tpu.concatenate %148, %119 in 1 : vector<2x128xf32>, vector<2x128xf32> -> vector<2x256xf32>
    %cst_32 = arith.constant dense<0.000000e+00> : vector<2x512xf32>
    %150 = tpu.matmul %149, %1, %cst_32 {dimension_numbers = #tpu.dot_dimension_numbers<[1], [0], [0], [1], [0, 0, 1, 1], [], []>} : vector<2x256xf32>, vector<256x512xf32>, vector<2x512xf32> -> vector<2x512xf32>
    %151 = arith.addf %150, %4 : vector<2x512xf32>
    %152 = vector.extract_strided_slice %151 {offsets = [0, 0], sizes = [2, 128], strides = [1, 1]} : vector<2x512xf32> to vector<2x128xf32>
    %153 = arith.negf %152 : vector<2x128xf32>
    %154 = math.exp %153 : vector<2x128xf32>
    %cst_33 = arith.constant 1.000000e+00 : f32
    %155 = vector.broadcast %cst_33 : f32 to vector<2x128xf32>
    %156 = arith.addf %155, %154 : vector<2x128xf32>
    %157 = arith.divf %155, %156 : vector<2x128xf32>
    %158 = vector.extract_strided_slice %151 {offsets = [0, 128], sizes = [2, 128], strides = [1, 1]} : vector<2x512xf32> to vector<2x128xf32>
    %159 = arith.negf %158 : vector<2x128xf32>
    %160 = math.exp %159 : vector<2x128xf32>
    %cst_34 = arith.constant 1.000000e+00 : f32
    %161 = vector.broadcast %cst_34 : f32 to vector<2x128xf32>
    %162 = arith.addf %161, %160 : vector<2x128xf32>
    %163 = arith.divf %161, %162 : vector<2x128xf32>
    %164 = vector.extract_strided_slice %151 {offsets = [0, 256], sizes = [2, 128], strides = [1, 1]} : vector<2x512xf32> to vector<2x128xf32>
    %165 = math.tanh %164 : vector<2x128xf32>
    %166 = vector.extract_strided_slice %151 {offsets = [0, 384], sizes = [2, 128], strides = [1, 1]} : vector<2x512xf32> to vector<2x128xf32>
    %167 = arith.negf %166 : vector<2x128xf32>
    %168 = math.exp %167 : vector<2x128xf32>
    %cst_35 = arith.constant 1.000000e+00 : f32
    %169 = vector.broadcast %cst_35 : f32 to vector<2x128xf32>
    %170 = arith.addf %169, %168 : vector<2x128xf32>
    %171 = arith.divf %169, %170 : vector<2x128xf32>
    %172 = arith.mulf %163, %117 : vector<2x128xf32>
    %173 = arith.mulf %157, %165 : vector<2x128xf32>
    %174 = arith.addf %172, %173 : vector<2x128xf32>
    %175 = math.tanh %174 : vector<2x128xf32>
    %176 = arith.mulf %171, %175 : vector<2x128xf32>
    %c3 = arith.constant 3 : index
    %c0_36 = arith.constant 0 : index
    %c0_37 = arith.constant 0 : index
    %177 = vector.load %arg0[%c3, %c0_36, %c0_37] : memref<8x2x512xf32, #tpu.memory_space<vmem>>, vector<1x2x512xf32>
    %178 = vector.shape_cast %177 : vector<1x2x512xf32> to vector<2x512xf32>
    %cst_38 = arith.constant dense<0.000000e+00> : vector<2x512xf32>
    %179 = tpu.matmul %148, %0, %cst_38 {dimension_numbers = #tpu.dot_dimension_numbers<[1], [0], [0], [1], [0, 0, 1, 1], [], []>} : vector<2x128xf32>, vector<128x512xf32>, vector<2x512xf32> -> vector<2x512xf32>
    %180 = arith.addf %178, %179 : vector<2x512xf32>
    %181 = vector.extract_strided_slice %180 {offsets = [0, 0], sizes = [2, 128], strides = [1, 1]} : vector<2x512xf32> to vector<2x128xf32>
    %182 = arith.negf %181 : vector<2x128xf32>
    %183 = math.exp %182 : vector<2x128xf32>
    %cst_39 = arith.constant 1.000000e+00 : f32
    %184 = vector.broadcast %cst_39 : f32 to vector<2x128xf32>
    %185 = arith.addf %184, %183 : vector<2x128xf32>
    %186 = arith.divf %184, %185 : vector<2x128xf32>
    %187 = vector.extract_strided_slice %180 {offsets = [0, 128], sizes = [2, 128], strides = [1, 1]} : vector<2x512xf32> to vector<2x128xf32>
    %188 = arith.negf %187 : vector<2x128xf32>
    %189 = math.exp %188 : vector<2x128xf32>
    %cst_40 = arith.constant 1.000000e+00 : f32
    %190 = vector.broadcast %cst_40 : f32 to vector<2x128xf32>
    %191 = arith.addf %190, %189 : vector<2x128xf32>
    %192 = arith.divf %190, %191 : vector<2x128xf32>
    %193 = vector.extract_strided_slice %180 {offsets = [0, 256], sizes = [2, 128], strides = [1, 1]} : vector<2x512xf32> to vector<2x128xf32>
    %194 = math.tanh %193 : vector<2x128xf32>
    %195 = vector.extract_strided_slice %180 {offsets = [0, 384], sizes = [2, 128], strides = [1, 1]} : vector<2x512xf32> to vector<2x128xf32>
    %196 = arith.negf %195 : vector<2x128xf32>
    %197 = math.exp %196 : vector<2x128xf32>
    %cst_41 = arith.constant 1.000000e+00 : f32
    %198 = vector.broadcast %cst_41 : f32 to vector<2x128xf32>
    %199 = arith.addf %198, %197 : vector<2x128xf32>
    %200 = arith.divf %198, %199 : vector<2x128xf32>
    %201 = arith.mulf %192, %146 : vector<2x128xf32>
    %202 = arith.mulf %186, %194 : vector<2x128xf32>
    %203 = arith.addf %201, %202 : vector<2x128xf32>
    %204 = math.tanh %203 : vector<2x128xf32>
    %205 = arith.mulf %200, %204 : vector<2x128xf32>
    %206 = tpu.concatenate %205, %176 in 1 : vector<2x128xf32>, vector<2x128xf32> -> vector<2x256xf32>
    %cst_42 = arith.constant dense<0.000000e+00> : vector<2x512xf32>
    %207 = tpu.matmul %206, %1, %cst_42 {dimension_numbers = #tpu.dot_dimension_numbers<[1], [0], [0], [1], [0, 0, 1, 1], [], []>} : vector<2x256xf32>, vector<256x512xf32>, vector<2x512xf32> -> vector<2x512xf32>
    %208 = arith.addf %207, %4 : vector<2x512xf32>
    %209 = vector.extract_strided_slice %208 {offsets = [0, 0], sizes = [2, 128], strides = [1, 1]} : vector<2x512xf32> to vector<2x128xf32>
    %210 = arith.negf %209 : vector<2x128xf32>
    %211 = math.exp %210 : vector<2x128xf32>
    %cst_43 = arith.constant 1.000000e+00 : f32
    %212 = vector.broadcast %cst_43 : f32 to vector<2x128xf32>
    %213 = arith.addf %212, %211 : vector<2x128xf32>
    %214 = arith.divf %212, %213 : vector<2x128xf32>
    %215 = vector.extract_strided_slice %208 {offsets = [0, 128], sizes = [2, 128], strides = [1, 1]} : vector<2x512xf32> to vector<2x128xf32>
    %216 = arith.negf %215 : vector<2x128xf32>
    %217 = math.exp %216 : vector<2x128xf32>
    %cst_44 = arith.constant 1.000000e+00 : f32
    %218 = vector.broadcast %cst_44 : f32 to vector<2x128xf32>
    %219 = arith.addf %218, %217 : vector<2x128xf32>
    %220 = arith.divf %218, %219 : vector<2x128xf32>
    %221 = vector.extract_strided_slice %208 {offsets = [0, 256], sizes = [2, 128], strides = [1, 1]} : vector<2x512xf32> to vector<2x128xf32>
    %222 = math.tanh %221 : vector<2x128xf32>
    %223 = vector.extract_strided_slice %208 {offsets = [0, 384], sizes = [2, 128], strides = [1, 1]} : vector<2x512xf32> to vector<2x128xf32>
    %224 = arith.negf %223 : vector<2x128xf32>
    %225 = math.exp %224 : vector<2x128xf32>
    %cst_45 = arith.constant 1.000000e+00 : f32
    %226 = vector.broadcast %cst_45 : f32 to vector<2x128xf32>
    %227 = arith.addf %226, %225 : vector<2x128xf32>
    %228 = arith.divf %226, %227 : vector<2x128xf32>
    %229 = arith.mulf %220, %174 : vector<2x128xf32>
    %230 = arith.mulf %214, %222 : vector<2x128xf32>
    %231 = arith.addf %229, %230 : vector<2x128xf32>
    %232 = math.tanh %231 : vector<2x128xf32>
    %233 = arith.mulf %228, %232 : vector<2x128xf32>
    %c4 = arith.constant 4 : index
    %c0_46 = arith.constant 0 : index
    %c0_47 = arith.constant 0 : index
    %234 = vector.load %arg0[%c4, %c0_46, %c0_47] : memref<8x2x512xf32, #tpu.memory_space<vmem>>, vector<1x2x512xf32>
    %235 = vector.shape_cast %234 : vector<1x2x512xf32> to vector<2x512xf32>
    %cst_48 = arith.constant dense<0.000000e+00> : vector<2x512xf32>
    %236 = tpu.matmul %205, %0, %cst_48 {dimension_numbers = #tpu.dot_dimension_numbers<[1], [0], [0], [1], [0, 0, 1, 1], [], []>} : vector<2x128xf32>, vector<128x512xf32>, vector<2x512xf32> -> vector<2x512xf32>
    %237 = arith.addf %235, %236 : vector<2x512xf32>
    %238 = vector.extract_strided_slice %237 {offsets = [0, 0], sizes = [2, 128], strides = [1, 1]} : vector<2x512xf32> to vector<2x128xf32>
    %239 = arith.negf %238 : vector<2x128xf32>
    %240 = math.exp %239 : vector<2x128xf32>
    %cst_49 = arith.constant 1.000000e+00 : f32
    %241 = vector.broadcast %cst_49 : f32 to vector<2x128xf32>
    %242 = arith.addf %241, %240 : vector<2x128xf32>
    %243 = arith.divf %241, %242 : vector<2x128xf32>
    %244 = vector.extract_strided_slice %237 {offsets = [0, 128], sizes = [2, 128], strides = [1, 1]} : vector<2x512xf32> to vector<2x128xf32>
    %245 = arith.negf %244 : vector<2x128xf32>
    %246 = math.exp %245 : vector<2x128xf32>
    %cst_50 = arith.constant 1.000000e+00 : f32
    %247 = vector.broadcast %cst_50 : f32 to vector<2x128xf32>
    %248 = arith.addf %247, %246 : vector<2x128xf32>
    %249 = arith.divf %247, %248 : vector<2x128xf32>
    %250 = vector.extract_strided_slice %237 {offsets = [0, 256], sizes = [2, 128], strides = [1, 1]} : vector<2x512xf32> to vector<2x128xf32>
    %251 = math.tanh %250 : vector<2x128xf32>
    %252 = vector.extract_strided_slice %237 {offsets = [0, 384], sizes = [2, 128], strides = [1, 1]} : vector<2x512xf32> to vector<2x128xf32>
    %253 = arith.negf %252 : vector<2x128xf32>
    %254 = math.exp %253 : vector<2x128xf32>
    %cst_51 = arith.constant 1.000000e+00 : f32
    %255 = vector.broadcast %cst_51 : f32 to vector<2x128xf32>
    %256 = arith.addf %255, %254 : vector<2x128xf32>
    %257 = arith.divf %255, %256 : vector<2x128xf32>
    %258 = arith.mulf %249, %203 : vector<2x128xf32>
    %259 = arith.mulf %243, %251 : vector<2x128xf32>
    %260 = arith.addf %258, %259 : vector<2x128xf32>
    %261 = math.tanh %260 : vector<2x128xf32>
    %262 = arith.mulf %257, %261 : vector<2x128xf32>
    %263 = tpu.concatenate %262, %233 in 1 : vector<2x128xf32>, vector<2x128xf32> -> vector<2x256xf32>
    %cst_52 = arith.constant dense<0.000000e+00> : vector<2x512xf32>
    %264 = tpu.matmul %263, %1, %cst_52 {dimension_numbers = #tpu.dot_dimension_numbers<[1], [0], [0], [1], [0, 0, 1, 1], [], []>} : vector<2x256xf32>, vector<256x512xf32>, vector<2x512xf32> -> vector<2x512xf32>
    %265 = arith.addf %264, %4 : vector<2x512xf32>
    %266 = vector.extract_strided_slice %265 {offsets = [0, 0], sizes = [2, 128], strides = [1, 1]} : vector<2x512xf32> to vector<2x128xf32>
    %267 = arith.negf %266 : vector<2x128xf32>
    %268 = math.exp %267 : vector<2x128xf32>
    %cst_53 = arith.constant 1.000000e+00 : f32
    %269 = vector.broadcast %cst_53 : f32 to vector<2x128xf32>
    %270 = arith.addf %269, %268 : vector<2x128xf32>
    %271 = arith.divf %269, %270 : vector<2x128xf32>
    %272 = vector.extract_strided_slice %265 {offsets = [0, 128], sizes = [2, 128], strides = [1, 1]} : vector<2x512xf32> to vector<2x128xf32>
    %273 = arith.negf %272 : vector<2x128xf32>
    %274 = math.exp %273 : vector<2x128xf32>
    %cst_54 = arith.constant 1.000000e+00 : f32
    %275 = vector.broadcast %cst_54 : f32 to vector<2x128xf32>
    %276 = arith.addf %275, %274 : vector<2x128xf32>
    %277 = arith.divf %275, %276 : vector<2x128xf32>
    %278 = vector.extract_strided_slice %265 {offsets = [0, 256], sizes = [2, 128], strides = [1, 1]} : vector<2x512xf32> to vector<2x128xf32>
    %279 = math.tanh %278 : vector<2x128xf32>
    %280 = vector.extract_strided_slice %265 {offsets = [0, 384], sizes = [2, 128], strides = [1, 1]} : vector<2x512xf32> to vector<2x128xf32>
    %281 = arith.negf %280 : vector<2x128xf32>
    %282 = math.exp %281 : vector<2x128xf32>
    %cst_55 = arith.constant 1.000000e+00 : f32
    %283 = vector.broadcast %cst_55 : f32 to vector<2x128xf32>
    %284 = arith.addf %283, %282 : vector<2x128xf32>
    %285 = arith.divf %283, %284 : vector<2x128xf32>
    %286 = arith.mulf %277, %231 : vector<2x128xf32>
    %287 = arith.mulf %271, %279 : vector<2x128xf32>
    %288 = arith.addf %286, %287 : vector<2x128xf32>
    %289 = math.tanh %288 : vector<2x128xf32>
    %290 = arith.mulf %285, %289 : vector<2x128xf32>
    %c5 = arith.constant 5 : index
    %c0_56 = arith.constant 0 : index
    %c0_57 = arith.constant 0 : index
    %291 = vector.load %arg0[%c5, %c0_56, %c0_57] : memref<8x2x512xf32, #tpu.memory_space<vmem>>, vector<1x2x512xf32>
    %292 = vector.shape_cast %291 : vector<1x2x512xf32> to vector<2x512xf32>
    %cst_58 = arith.constant dense<0.000000e+00> : vector<2x512xf32>
    %293 = tpu.matmul %262, %0, %cst_58 {dimension_numbers = #tpu.dot_dimension_numbers<[1], [0], [0], [1], [0, 0, 1, 1], [], []>} : vector<2x128xf32>, vector<128x512xf32>, vector<2x512xf32> -> vector<2x512xf32>
    %294 = arith.addf %292, %293 : vector<2x512xf32>
    %295 = vector.extract_strided_slice %294 {offsets = [0, 0], sizes = [2, 128], strides = [1, 1]} : vector<2x512xf32> to vector<2x128xf32>
    %296 = arith.negf %295 : vector<2x128xf32>
    %297 = math.exp %296 : vector<2x128xf32>
    %cst_59 = arith.constant 1.000000e+00 : f32
    %298 = vector.broadcast %cst_59 : f32 to vector<2x128xf32>
    %299 = arith.addf %298, %297 : vector<2x128xf32>
    %300 = arith.divf %298, %299 : vector<2x128xf32>
    %301 = vector.extract_strided_slice %294 {offsets = [0, 128], sizes = [2, 128], strides = [1, 1]} : vector<2x512xf32> to vector<2x128xf32>
    %302 = arith.negf %301 : vector<2x128xf32>
    %303 = math.exp %302 : vector<2x128xf32>
    %cst_60 = arith.constant 1.000000e+00 : f32
    %304 = vector.broadcast %cst_60 : f32 to vector<2x128xf32>
    %305 = arith.addf %304, %303 : vector<2x128xf32>
    %306 = arith.divf %304, %305 : vector<2x128xf32>
    %307 = vector.extract_strided_slice %294 {offsets = [0, 256], sizes = [2, 128], strides = [1, 1]} : vector<2x512xf32> to vector<2x128xf32>
    %308 = math.tanh %307 : vector<2x128xf32>
    %309 = vector.extract_strided_slice %294 {offsets = [0, 384], sizes = [2, 128], strides = [1, 1]} : vector<2x512xf32> to vector<2x128xf32>
    %310 = arith.negf %309 : vector<2x128xf32>
    %311 = math.exp %310 : vector<2x128xf32>
    %cst_61 = arith.constant 1.000000e+00 : f32
    %312 = vector.broadcast %cst_61 : f32 to vector<2x128xf32>
    %313 = arith.addf %312, %311 : vector<2x128xf32>
    %314 = arith.divf %312, %313 : vector<2x128xf32>
    %315 = arith.mulf %306, %260 : vector<2x128xf32>
    %316 = arith.mulf %300, %308 : vector<2x128xf32>
    %317 = arith.addf %315, %316 : vector<2x128xf32>
    %318 = math.tanh %317 : vector<2x128xf32>
    %319 = arith.mulf %314, %318 : vector<2x128xf32>
    %320 = tpu.concatenate %319, %290 in 1 : vector<2x128xf32>, vector<2x128xf32> -> vector<2x256xf32>
    %cst_62 = arith.constant dense<0.000000e+00> : vector<2x512xf32>
    %321 = tpu.matmul %320, %1, %cst_62 {dimension_numbers = #tpu.dot_dimension_numbers<[1], [0], [0], [1], [0, 0, 1, 1], [], []>} : vector<2x256xf32>, vector<256x512xf32>, vector<2x512xf32> -> vector<2x512xf32>
    %322 = arith.addf %321, %4 : vector<2x512xf32>
    %323 = vector.extract_strided_slice %322 {offsets = [0, 0], sizes = [2, 128], strides = [1, 1]} : vector<2x512xf32> to vector<2x128xf32>
    %324 = arith.negf %323 : vector<2x128xf32>
    %325 = math.exp %324 : vector<2x128xf32>
    %cst_63 = arith.constant 1.000000e+00 : f32
    %326 = vector.broadcast %cst_63 : f32 to vector<2x128xf32>
    %327 = arith.addf %326, %325 : vector<2x128xf32>
    %328 = arith.divf %326, %327 : vector<2x128xf32>
    %329 = vector.extract_strided_slice %322 {offsets = [0, 128], sizes = [2, 128], strides = [1, 1]} : vector<2x512xf32> to vector<2x128xf32>
    %330 = arith.negf %329 : vector<2x128xf32>
    %331 = math.exp %330 : vector<2x128xf32>
    %cst_64 = arith.constant 1.000000e+00 : f32
    %332 = vector.broadcast %cst_64 : f32 to vector<2x128xf32>
    %333 = arith.addf %332, %331 : vector<2x128xf32>
    %334 = arith.divf %332, %333 : vector<2x128xf32>
    %335 = vector.extract_strided_slice %322 {offsets = [0, 256], sizes = [2, 128], strides = [1, 1]} : vector<2x512xf32> to vector<2x128xf32>
    %336 = math.tanh %335 : vector<2x128xf32>
    %337 = vector.extract_strided_slice %322 {offsets = [0, 384], sizes = [2, 128], strides = [1, 1]} : vector<2x512xf32> to vector<2x128xf32>
    %338 = arith.negf %337 : vector<2x128xf32>
    %339 = math.exp %338 : vector<2x128xf32>
    %cst_65 = arith.constant 1.000000e+00 : f32
    %340 = vector.broadcast %cst_65 : f32 to vector<2x128xf32>
    %341 = arith.addf %340, %339 : vector<2x128xf32>
    %342 = arith.divf %340, %341 : vector<2x128xf32>
    %343 = arith.mulf %334, %288 : vector<2x128xf32>
    %344 = arith.mulf %328, %336 : vector<2x128xf32>
    %345 = arith.addf %343, %344 : vector<2x128xf32>
    %346 = math.tanh %345 : vector<2x128xf32>
    %347 = arith.mulf %342, %346 : vector<2x128xf32>
    %c6 = arith.constant 6 : index
    %c0_66 = arith.constant 0 : index
    %c0_67 = arith.constant 0 : index
    %348 = vector.load %arg0[%c6, %c0_66, %c0_67] : memref<8x2x512xf32, #tpu.memory_space<vmem>>, vector<1x2x512xf32>
    %349 = vector.shape_cast %348 : vector<1x2x512xf32> to vector<2x512xf32>
    %cst_68 = arith.constant dense<0.000000e+00> : vector<2x512xf32>
    %350 = tpu.matmul %319, %0, %cst_68 {dimension_numbers = #tpu.dot_dimension_numbers<[1], [0], [0], [1], [0, 0, 1, 1], [], []>} : vector<2x128xf32>, vector<128x512xf32>, vector<2x512xf32> -> vector<2x512xf32>
    %351 = arith.addf %349, %350 : vector<2x512xf32>
    %352 = vector.extract_strided_slice %351 {offsets = [0, 0], sizes = [2, 128], strides = [1, 1]} : vector<2x512xf32> to vector<2x128xf32>
    %353 = arith.negf %352 : vector<2x128xf32>
    %354 = math.exp %353 : vector<2x128xf32>
    %cst_69 = arith.constant 1.000000e+00 : f32
    %355 = vector.broadcast %cst_69 : f32 to vector<2x128xf32>
    %356 = arith.addf %355, %354 : vector<2x128xf32>
    %357 = arith.divf %355, %356 : vector<2x128xf32>
    %358 = vector.extract_strided_slice %351 {offsets = [0, 128], sizes = [2, 128], strides = [1, 1]} : vector<2x512xf32> to vector<2x128xf32>
    %359 = arith.negf %358 : vector<2x128xf32>
    %360 = math.exp %359 : vector<2x128xf32>
    %cst_70 = arith.constant 1.000000e+00 : f32
    %361 = vector.broadcast %cst_70 : f32 to vector<2x128xf32>
    %362 = arith.addf %361, %360 : vector<2x128xf32>
    %363 = arith.divf %361, %362 : vector<2x128xf32>
    %364 = vector.extract_strided_slice %351 {offsets = [0, 256], sizes = [2, 128], strides = [1, 1]} : vector<2x512xf32> to vector<2x128xf32>
    %365 = math.tanh %364 : vector<2x128xf32>
    %366 = vector.extract_strided_slice %351 {offsets = [0, 384], sizes = [2, 128], strides = [1, 1]} : vector<2x512xf32> to vector<2x128xf32>
    %367 = arith.negf %366 : vector<2x128xf32>
    %368 = math.exp %367 : vector<2x128xf32>
    %cst_71 = arith.constant 1.000000e+00 : f32
    %369 = vector.broadcast %cst_71 : f32 to vector<2x128xf32>
    %370 = arith.addf %369, %368 : vector<2x128xf32>
    %371 = arith.divf %369, %370 : vector<2x128xf32>
    %372 = arith.mulf %363, %317 : vector<2x128xf32>
    %373 = arith.mulf %357, %365 : vector<2x128xf32>
    %374 = arith.addf %372, %373 : vector<2x128xf32>
    %375 = math.tanh %374 : vector<2x128xf32>
    %376 = arith.mulf %371, %375 : vector<2x128xf32>
    %377 = tpu.concatenate %376, %347 in 1 : vector<2x128xf32>, vector<2x128xf32> -> vector<2x256xf32>
    %cst_72 = arith.constant dense<0.000000e+00> : vector<2x512xf32>
    %378 = tpu.matmul %377, %1, %cst_72 {dimension_numbers = #tpu.dot_dimension_numbers<[1], [0], [0], [1], [0, 0, 1, 1], [], []>} : vector<2x256xf32>, vector<256x512xf32>, vector<2x512xf32> -> vector<2x512xf32>
    %379 = arith.addf %378, %4 : vector<2x512xf32>
    %380 = vector.extract_strided_slice %379 {offsets = [0, 0], sizes = [2, 128], strides = [1, 1]} : vector<2x512xf32> to vector<2x128xf32>
    %381 = arith.negf %380 : vector<2x128xf32>
    %382 = math.exp %381 : vector<2x128xf32>
    %cst_73 = arith.constant 1.000000e+00 : f32
    %383 = vector.broadcast %cst_73 : f32 to vector<2x128xf32>
    %384 = arith.addf %383, %382 : vector<2x128xf32>
    %385 = arith.divf %383, %384 : vector<2x128xf32>
    %386 = vector.extract_strided_slice %379 {offsets = [0, 128], sizes = [2, 128], strides = [1, 1]} : vector<2x512xf32> to vector<2x128xf32>
    %387 = arith.negf %386 : vector<2x128xf32>
    %388 = math.exp %387 : vector<2x128xf32>
    %cst_74 = arith.constant 1.000000e+00 : f32
    %389 = vector.broadcast %cst_74 : f32 to vector<2x128xf32>
    %390 = arith.addf %389, %388 : vector<2x128xf32>
    %391 = arith.divf %389, %390 : vector<2x128xf32>
    %392 = vector.extract_strided_slice %379 {offsets = [0, 256], sizes = [2, 128], strides = [1, 1]} : vector<2x512xf32> to vector<2x128xf32>
    %393 = math.tanh %392 : vector<2x128xf32>
    %394 = vector.extract_strided_slice %379 {offsets = [0, 384], sizes = [2, 128], strides = [1, 1]} : vector<2x512xf32> to vector<2x128xf32>
    %395 = arith.negf %394 : vector<2x128xf32>
    %396 = math.exp %395 : vector<2x128xf32>
    %cst_75 = arith.constant 1.000000e+00 : f32
    %397 = vector.broadcast %cst_75 : f32 to vector<2x128xf32>
    %398 = arith.addf %397, %396 : vector<2x128xf32>
    %399 = arith.divf %397, %398 : vector<2x128xf32>
    %400 = arith.mulf %391, %345 : vector<2x128xf32>
    %401 = arith.mulf %385, %393 : vector<2x128xf32>
    %402 = arith.addf %400, %401 : vector<2x128xf32>
    %403 = math.tanh %402 : vector<2x128xf32>
    %404 = arith.mulf %399, %403 : vector<2x128xf32>
    %c7 = arith.constant 7 : index
    %c0_76 = arith.constant 0 : index
    %c0_77 = arith.constant 0 : index
    %405 = vector.load %arg0[%c7, %c0_76, %c0_77] : memref<8x2x512xf32, #tpu.memory_space<vmem>>, vector<1x2x512xf32>
    %406 = vector.shape_cast %405 : vector<1x2x512xf32> to vector<2x512xf32>
    %cst_78 = arith.constant dense<0.000000e+00> : vector<2x512xf32>
    %407 = tpu.matmul %376, %0, %cst_78 {dimension_numbers = #tpu.dot_dimension_numbers<[1], [0], [0], [1], [0, 0, 1, 1], [], []>} : vector<2x128xf32>, vector<128x512xf32>, vector<2x512xf32> -> vector<2x512xf32>
    %408 = arith.addf %406, %407 : vector<2x512xf32>
    %409 = vector.extract_strided_slice %408 {offsets = [0, 0], sizes = [2, 128], strides = [1, 1]} : vector<2x512xf32> to vector<2x128xf32>
    %410 = arith.negf %409 : vector<2x128xf32>
    %411 = math.exp %410 : vector<2x128xf32>
    %cst_79 = arith.constant 1.000000e+00 : f32
    %412 = vector.broadcast %cst_79 : f32 to vector<2x128xf32>
    %413 = arith.addf %412, %411 : vector<2x128xf32>
    %414 = arith.divf %412, %413 : vector<2x128xf32>
    %415 = vector.extract_strided_slice %408 {offsets = [0, 128], sizes = [2, 128], strides = [1, 1]} : vector<2x512xf32> to vector<2x128xf32>
    %416 = arith.negf %415 : vector<2x128xf32>
    %417 = math.exp %416 : vector<2x128xf32>
    %cst_80 = arith.constant 1.000000e+00 : f32
    %418 = vector.broadcast %cst_80 : f32 to vector<2x128xf32>
    %419 = arith.addf %418, %417 : vector<2x128xf32>
    %420 = arith.divf %418, %419 : vector<2x128xf32>
    %421 = vector.extract_strided_slice %408 {offsets = [0, 256], sizes = [2, 128], strides = [1, 1]} : vector<2x512xf32> to vector<2x128xf32>
    %422 = math.tanh %421 : vector<2x128xf32>
    %423 = vector.extract_strided_slice %408 {offsets = [0, 384], sizes = [2, 128], strides = [1, 1]} : vector<2x512xf32> to vector<2x128xf32>
    %424 = arith.negf %423 : vector<2x128xf32>
    %425 = math.exp %424 : vector<2x128xf32>
    %cst_81 = arith.constant 1.000000e+00 : f32
    %426 = vector.broadcast %cst_81 : f32 to vector<2x128xf32>
    %427 = arith.addf %426, %425 : vector<2x128xf32>
    %428 = arith.divf %426, %427 : vector<2x128xf32>
    %429 = arith.mulf %420, %374 : vector<2x128xf32>
    %430 = arith.mulf %414, %422 : vector<2x128xf32>
    %431 = arith.addf %429, %430 : vector<2x128xf32>
    %432 = math.tanh %431 : vector<2x128xf32>
    %433 = arith.mulf %428, %432 : vector<2x128xf32>
    %434 = tpu.concatenate %433, %404 in 1 : vector<2x128xf32>, vector<2x128xf32> -> vector<2x256xf32>
    %cst_82 = arith.constant dense<0.000000e+00> : vector<2x512xf32>
    %435 = tpu.matmul %434, %1, %cst_82 {dimension_numbers = #tpu.dot_dimension_numbers<[1], [0], [0], [1], [0, 0, 1, 1], [], []>} : vector<2x256xf32>, vector<256x512xf32>, vector<2x512xf32> -> vector<2x512xf32>
    %436 = arith.addf %435, %4 : vector<2x512xf32>
    %437 = vector.extract_strided_slice %436 {offsets = [0, 0], sizes = [2, 128], strides = [1, 1]} : vector<2x512xf32> to vector<2x128xf32>
    %438 = arith.negf %437 : vector<2x128xf32>
    %439 = math.exp %438 : vector<2x128xf32>
    %cst_83 = arith.constant 1.000000e+00 : f32
    %440 = vector.broadcast %cst_83 : f32 to vector<2x128xf32>
    %441 = arith.addf %440, %439 : vector<2x128xf32>
    %442 = arith.divf %440, %441 : vector<2x128xf32>
    %443 = vector.extract_strided_slice %436 {offsets = [0, 128], sizes = [2, 128], strides = [1, 1]} : vector<2x512xf32> to vector<2x128xf32>
    %444 = arith.negf %443 : vector<2x128xf32>
    %445 = math.exp %444 : vector<2x128xf32>
    %cst_84 = arith.constant 1.000000e+00 : f32
    %446 = vector.broadcast %cst_84 : f32 to vector<2x128xf32>
    %447 = arith.addf %446, %445 : vector<2x128xf32>
    %448 = arith.divf %446, %447 : vector<2x128xf32>
    %449 = vector.extract_strided_slice %436 {offsets = [0, 256], sizes = [2, 128], strides = [1, 1]} : vector<2x512xf32> to vector<2x128xf32>
    %450 = math.tanh %449 : vector<2x128xf32>
    %451 = vector.extract_strided_slice %436 {offsets = [0, 384], sizes = [2, 128], strides = [1, 1]} : vector<2x512xf32> to vector<2x128xf32>
    %452 = arith.negf %451 : vector<2x128xf32>
    %453 = math.exp %452 : vector<2x128xf32>
    %cst_85 = arith.constant 1.000000e+00 : f32
    %454 = vector.broadcast %cst_85 : f32 to vector<2x128xf32>
    %455 = arith.addf %454, %453 : vector<2x128xf32>
    %456 = arith.divf %454, %455 : vector<2x128xf32>
    %457 = arith.mulf %448, %402 : vector<2x128xf32>
    %458 = arith.mulf %442, %450 : vector<2x128xf32>
    %459 = arith.addf %457, %458 : vector<2x128xf32>
    %460 = math.tanh %459 : vector<2x128xf32>
    %461 = arith.mulf %456, %460 : vector<2x128xf32>
    %c0_86 = arith.constant 0 : index
    %c0_87 = arith.constant 0 : index
    %462 = vector.load %arg4[%c0_86, %c0_87] : memref<128x128xf32, #tpu.memory_space<vmem>>, vector<128x128xf32>
    %cst_88 = arith.constant dense<0.000000e+00> : vector<2x128xf32>
    %463 = tpu.matmul %461, %462, %cst_88 {dimension_numbers = #tpu.dot_dimension_numbers<[1], [0], [0], [1], [0, 0, 1, 1], [], []>} : vector<2x128xf32>, vector<128x128xf32>, vector<2x128xf32> -> vector<2x128xf32>
    %c0_89 = arith.constant 0 : index
    %c0_90 = arith.constant 0 : index
    %464 = vector.load %arg5[%c0_89, %c0_90] : memref<1x128xf32, #tpu.memory_space<vmem>>, vector<1x128xf32>
    %465 = vector.broadcast %464 : vector<1x128xf32> to vector<2x128xf32>
    %466 = arith.addf %463, %465 : vector<2x128xf32>
    %cst_91 = arith.constant 0.000000e+00 : f32
    %467 = vector.broadcast %cst_91 : f32 to vector<2x128xf32>
    %468 = arith.maximumf %466, %467 : vector<2x128xf32>
    %c0_92 = arith.constant 0 : index
    %c0_93 = arith.constant 0 : index
    %469 = vector.load %arg6[%c0_92, %c0_93] : memref<128x128xf32, #tpu.memory_space<vmem>>, vector<128x128xf32>
    %cst_94 = arith.constant dense<0.000000e+00> : vector<2x128xf32>
    %470 = tpu.matmul %468, %469, %cst_94 {dimension_numbers = #tpu.dot_dimension_numbers<[1], [0], [0], [1], [0, 0, 1, 1], [], []>} : vector<2x128xf32>, vector<128x128xf32>, vector<2x128xf32> -> vector<2x128xf32>
    %c0_95 = arith.constant 0 : index
    %c0_96 = arith.constant 0 : index
    %471 = vector.load %arg7[%c0_95, %c0_96] : memref<1x128xf32, #tpu.memory_space<vmem>>, vector<1x128xf32>
    %472 = vector.broadcast %471 : vector<1x128xf32> to vector<2x128xf32>
    %473 = arith.addf %470, %472 : vector<2x128xf32>
    %c0_97 = arith.constant 0 : index
    %c0_98 = arith.constant 0 : index
    %474 = vector.load %arg8[%c0_97, %c0_98] : memref<2x128xf32, #tpu.memory_space<vmem>>, vector<2x128xf32>
    tpu.vector_store %arg8[%c0_97, %c0_98], %473 {strides = array<i32>} : memref<2x128xf32, #tpu.memory_space<vmem>>, vector<2x128xf32>,
    return
  }
}

</mosaic_0001>

<bundles_post_ra>
// kernel: lstm_net_forward.1
= control target key start
LH: loop header
LB: loop body
LE: loop exit
PB: predicated region body
PF: predicated region fallthrough
CT: control target
= control target key end

     0   :  { %v7282_v7 = vmov 0.0   ;;  %s7273_s0 = inlined_call_operand.vmem [shape: f32[8,2,512], index: 0, kind: input, shape index: {}]   ;;  %s7274_s1 = inlined_call_operand.vmem [shape: f32[128,512], index: 1, kind: input, shape index: {}]   ;;  %s7275_s2 = inlined_call_operand.vmem [shape: f32[256,512], index: 2, kind: input, shape index: {}]   ;;  %s7276_s3 = inlined_call_operand.vmem [shape: f32[1,512], index: 3, kind: input, shape index: {}]   ;;  %s7277_s4 = inlined_call_operand.vmem [shape: f32[128,128], index: 4, kind: input, shape index: {}]   ;;  %s7278_s5 = inlined_call_operand.vmem [shape: f32[1,128], index: 5, kind: input, shape index: {}]   ;;  %s7279_s6 = inlined_call_operand.vmem [shape: f32[128,128], index: 6, kind: input, shape index: {}]   ;;  %s7280_s7 = inlined_call_operand.vmem [shape: f32[1,128], index: 7, kind: input, shape index: {}]   ;;  %s7281_s8 = inlined_call_operand.hbm [shape: f32[2,128], index: 8, kind: output, shape index: {}]  }
   0x1   :  { %v31_v0 = vld [vmem:[%s7274_s1 + $0x8] sm:$0xff]  ;;  %v33_v2 = vld [vmem:[%s7274_s1 + $0x18] sm:$0xff]  ;;  %v30_v5 = vld [vmem:[%s7274_s1] sm:$0xff]  ;;  %309 = vmatprep.mubr.f32.mxu0 %v7282_v7  ;;  %380 = vmatprep.mubr.f32.mxu1 %v7282_v7 }
   0x2   :  { %v35_v1 = vld [vmem:[%s7274_s1 + $0x28] sm:$0xff]  ;;  %v37_v4 = vld [vmem:[%s7274_s1 + $0x38] sm:$0xff]  ;;  %v34_v6 = vld [vmem:[%s7274_s1 + $0x20] sm:$0xff] }
   0x3   :  { %v5446_v3 = vpack.c.bf16 %v35_v1, %v31_v0  ;;  %v5459_v8 = vpack.c.bf16 %v37_v4, %v33_v2  ;;  %v5461_v9 = vpack.c.bf16 %v34_v6, %v30_v5  ;;  %v32_v10 = vld [vmem:[%s7274_s1 + $0x10] sm:$0xff]  ;;  %v39_v12 = vld [vmem:[%s7274_s1 + $0x48] sm:$0xff]  ;;  %v41_v15 = vld [vmem:[%s7274_s1 + $0x58] sm:$0xff] }
   0x4   :  { %v36_v11 = vld [vmem:[%s7274_s1 + $0x30] sm:$0xff]  ;;  %v43_v14 = vld [vmem:[%s7274_s1 + $0x68] sm:$0xff]  ;;  %v45_v16 = vld [vmem:[%s7274_s1 + $0x78] sm:$0xff] }
   0x5   :  { %7404 = vst [vmem:[#allocation5_spill] sm:$0xff] %v5446_v3  ;;  %7405 = vst [vmem:[#allocation6_spill] sm:$0xff] %v5459_v8  ;;  %3519 = vmatprep.subr.bf16.mxu0 %v5446_v3  ;;  %v5473_v13 = vpack.c.bf16 %v36_v11, %v32_v10  ;;  %3551 = vmatprep.subr.bf16.mxu1 %v5459_v8  ;;  %v5486_v17 = vpack.c.bf16 %v43_v14, %v39_v12  ;;  %v38_v19 = vld [vmem:[%s7274_s1 + $0x40] sm:$0xff]  ;;  %v40_v21 = vld [vmem:[%s7274_s1 + $0x50] sm:$0xff] }
   0x6   :  { %3521 = vmatpush1.bf16.msra.mxu0 %v5461_v9  ;;  %v5488_v18 = vpack.c.bf16 %v45_v16, %v41_v15  ;;  %v42_v20 = vld [vmem:[%s7274_s1 + $0x60] sm:$0xff]  ;;  %v44_v23 = vld [vmem:[%s7274_s1 + $0x70] sm:$0xff]  ;;  %v47_v24 = vld [vmem:[%s7274_s1 + $0x88] sm:$0xff] }
   0x7   :  { %3553 = vmatpush1.bf16.msra.mxu1 %v5473_v13  ;;  %v5500_v22 = vpack.c.bf16 %v42_v20, %v38_v19  ;;  %v51_v25 = vld [vmem:[%s7274_s1 + $0xa8] sm:$0xff]  ;;  %3523 = vmatprep.subr.bf16.mxu0 %v5486_v17  ;;  %v5513_v26 = vpack.c.bf16 %v44_v23, %v40_v21  ;;  %v49_v28 = vld [vmem:[%s7274_s1 + $0x98] sm:$0xff]  ;;  %v46_v30 = vld [vmem:[%s7274_s1 + $0x80] sm:$0xff] }
   0x8   :  { %3555 = vmatprep.subr.bf16.mxu1 %v5488_v18  ;;  %v5515_v27 = vpack.c.bf16 %v51_v25, %v47_v24  ;;  %v53_v29 = vld [vmem:[%s7274_s1 + $0xb8] sm:$0xff]  ;;  %v50_v32 = vld [vmem:[%s7274_s1 + $0xa0] sm:$0xff]  ;;  %v48_v33 = vld [vmem:[%s7274_s1 + $0x90] sm:$0xff] }
   0x9   :  { %v5526_v31 = vpack.c.bf16 %v53_v29, %v49_v28  ;;  %v52_v34 = vld [vmem:[%s7274_s1 + $0xb0] sm:$0xff]  ;;  %v5538_v35 = vpack.c.bf16 %v50_v32, %v46_v30  ;;  %v55_v36 = vld [vmem:[%s7274_s1 + $0xc8] sm:$0xff]  ;;  %v57_v38 = vld [vmem:[%s7274_s1 + $0xd8] sm:$0xff] }
   0xa   :  { %3525 = vmatpush1.bf16.msra.mxu0 %v5500_v22  ;;  %v59_v37 = vld [vmem:[%s7274_s1 + $0xe8] sm:$0xff]  ;;  %v5551_v39 = vpack.c.bf16 %v52_v34, %v48_v33  ;;  %v61_v41 = vld [vmem:[%s7274_s1 + $0xf8] sm:$0xff]  ;;  %v54_v42 = vld [vmem:[%s7274_s1 + $0xc0] sm:$0xff] }
   0xb   :  { %3557 = vmatpush1.bf16.msra.mxu1 %v5513_v26  ;;  %3527 = vmatprep.subr.bf16.mxu0 %v5515_v27  ;;  %v5553_v40 = vpack.c.bf16 %v59_v37, %v55_v36  ;;  %v58_v43 = vld [vmem:[%s7274_s1 + $0xe0] sm:$0xff]  ;;  %v5565_v44 = vpack.c.bf16 %v61_v41, %v57_v38  ;;  %v56_v45 = vld [vmem:[%s7274_s1 + $0xd0] sm:$0xff]  ;;  %v63_v47 = vld [vmem:[%s7274_s1 + $0x108] sm:$0xff] }
   0xc   :  { %3559 = vmatprep.subr.bf16.mxu1 %v5526_v31  ;;  %v60_v46 = vld [vmem:[%s7274_s1 + $0xf0] sm:$0xff]  ;;  %v67_v48 = vld [vmem:[%s7274_s1 + $0x128] sm:$0xff]  ;;  %v65_v49 = vld [vmem:[%s7274_s1 + $0x118] sm:$0xff]  ;;  %v5586_v51 = vpack.c.bf16 %v58_v43, %v54_v42 }
   0xd   :  { %v69_v50 = vld [vmem:[%s7274_s1 + $0x138] sm:$0xff]  ;;  %v5590_v52 = vpack.c.bf16 %v60_v46, %v56_v45  ;;  %v5592_v53 = vpack.c.bf16 %v67_v48, %v63_v47  ;;  %v62_v54 = vld [vmem:[%s7274_s1 + $0x100] sm:$0xff]  ;;  %v64_v56 = vld [vmem:[%s7274_s1 + $0x110] sm:$0xff] }
   0xe   :  { %3529 = vmatpush1.bf16.msra.mxu0 %v5538_v35  ;;  %v66_v55 = vld [vmem:[%s7274_s1 + $0x120] sm:$0xff]  ;;  %v5604_v57 = vpack.c.bf16 %v69_v50, %v65_v49  ;;  %v68_v58 = vld [vmem:[%s7274_s1 + $0x130] sm:$0xff]  ;;  %v71_v59 = vld [vmem:[%s7274_s1 + $0x148] sm:$0xff] }
   0xf   :  { %3561 = vmatpush1.bf16.msra.mxu1 %v5551_v39  ;;  %3531 = vmatprep.subr.bf16.mxu0 %v5553_v40  ;;  %v75_v60 = vld [vmem:[%s7274_s1 + $0x168] sm:$0xff]  ;;  %v73_v61 = vld [vmem:[%s7274_s1 + $0x158] sm:$0xff]  ;;  %v5622_v63 = vpack.c.bf16 %v66_v55, %v62_v54  ;;  %v5626_v0 = vpack.c.bf16 %v68_v58, %v64_v56  ;;  %v70_v2 = vld [vmem:[%s7274_s1 + $0x140] sm:$0xff] }
  0x10   :  { %3563 = vmatprep.subr.bf16.mxu1 %v5565_v44  ;;  %v77_v62 = vld [vmem:[%s7274_s1 + $0x178] sm:$0xff]  ;;  %v5628_v1 = vpack.c.bf16 %v75_v60, %v71_v59  ;;  %v74_v4 = vld [vmem:[%s7274_s1 + $0x160] sm:$0xff]  ;;  %v72_v5 = vld [vmem:[%s7274_s1 + $0x150] sm:$0xff] }
  0x11   :  { %v5640_v6 = vpack.c.bf16 %v77_v62, %v73_v61  ;;  %v76_v10 = vld [vmem:[%s7274_s1 + $0x170] sm:$0xff]  ;;  %v79_v11 = vld [vmem:[%s7274_s1 + $0x188] sm:$0xff]  ;;  %v81_v14 = vld [vmem:[%s7274_s1 + $0x198] sm:$0xff]  ;;  %v5658_v16 = vpack.c.bf16 %v74_v4, %v70_v2 }
  0x12   :  { %3533 = vmatpush1.bf16.msra.mxu0 %v5586_v51  ;;  %v83_v12 = vld [vmem:[%s7274_s1 + $0x1a8] sm:$0xff]  ;;  %v85_v15 = vld [vmem:[%s7274_s1 + $0x1b8] sm:$0xff]  ;;  %v5662_v19 = vpack.c.bf16 %v76_v10, %v72_v5  ;;  %v78_v21 = vld [vmem:[%s7274_s1 + $0x180] sm:$0xff] }
  0x13   :  { %3565 = vmatpush1.bf16.msra.mxu1 %v5590_v52  ;;  %3535 = vmatprep.subr.bf16.mxu0 %v5592_v53  ;;  %v5664_v20 = vpack.c.bf16 %v83_v12, %v79_v11  ;;  %v82_v23 = vld [vmem:[%s7274_s1 + $0x1a0] sm:$0xff]  ;;  %v80_v24 = vld [vmem:[%s7274_s1 + $0x190] sm:$0xff]  ;;  %v5676_v25 = vpack.c.bf16 %v85_v15, %v81_v14  ;;  %v87_v29 = vld [vmem:[%s7274_s1 + $0x1c8] sm:$0xff] }
  0x14   :  { %3567 = vmatprep.subr.bf16.mxu1 %v5604_v57  ;;  %v84_v28 = vld [vmem:[%s7274_s1 + $0x1b0] sm:$0xff]  ;;  %v91_v30 = vld [vmem:[%s7274_s1 + $0x1e8] sm:$0xff]  ;;  %v89_v32 = vld [vmem:[%s7274_s1 + $0x1d8] sm:$0xff]  ;;  %v5694_v34 = vpack.c.bf16 %v82_v23, %v78_v21 }
  0x15   :  { %v93_v33 = vld [vmem:[%s7274_s1 + $0x1f8] sm:$0xff]  ;;  %v5698_v36 = vpack.c.bf16 %v84_v28, %v80_v24  ;;  %v5700_v37 = vpack.c.bf16 %v91_v30, %v87_v29  ;;  %v86_v38 = vld [vmem:[%s7274_s1 + $0x1c0] sm:$0xff]  ;;  %v88_v42 = vld [vmem:[%s7274_s1 + $0x1d0] sm:$0xff] }
  0x16   :  { %3537 = vmatpush1.bf16.msra.mxu0 %v5622_v63  ;;  %v90_v41 = vld [vmem:[%s7274_s1 + $0x1e0] sm:$0xff]  ;;  %v5712_v43 = vpack.c.bf16 %v93_v33, %v89_v32  ;;  %v92_v45 = vld [vmem:[%s7274_s1 + $0x1f0] sm:$0xff]  ;;  %v95_v46 = vld [vmem:[%s7275_s2 + $0x8] sm:$0xff] }
  0x17   :  { %3569 = vmatpush1.bf16.msra.mxu1 %v5626_v0  ;;  %3539 = vmatprep.subr.bf16.mxu0 %v5628_v1  ;;  %v99_v47 = vld [vmem:[%s7275_s2 + $0x28] sm:$0xff]  ;;  %v97_v48 = vld [vmem:[%s7275_s2 + $0x18] sm:$0xff]  ;;  %v5730_v50 = vpack.c.bf16 %v90_v41, %v86_v38  ;;  %v94_v54 = vld [vmem:[%s7275_s2] sm:$0xff]  ;;  %v5737_v55 = vpack.c.bf16 %v92_v45, %v88_v42 }
  0x18   :  { %3571 = vmatprep.subr.bf16.mxu1 %v5640_v6  ;;  %v101_v49 = vld [vmem:[%s7275_s2 + $0x38] sm:$0xff]  ;;  %v5739_v56 = vpack.c.bf16 %v99_v47, %v95_v46  ;;  %v98_v58 = vld [vmem:[%s7275_s2 + $0x20] sm:$0xff]  ;;  %v96_v59 = vld [vmem:[%s7275_s2 + $0x10] sm:$0xff] }
  0x1a   :  { %3541 = vmatpush1.bf16.msra.mxu0 %v5658_v16 }
  0x1b   :  { %3573 = vmatpush1.bf16.msra.mxu1 %v5662_v19  ;;  %3543 = vmatprep.subr.bf16.mxu0 %v5664_v20 }
  0x1c   :  { %3575 = vmatprep.subr.bf16.mxu1 %v5676_v25 }
  0x1e   :  { %3545 = vmatpush1.bf16.msra.mxu0 %v5694_v34 }
  0x1f   :  { %3577 = vmatpush1.bf16.msra.mxu1 %v5698_v36  ;;  %3547 = vmatprep.subr.bf16.mxu0 %v5700_v37 }
  0x20   :  { %13 = vsyncpa [#allocation3], 0  ;;  %3579 = vmatprep.subr.bf16.mxu1 %v5712_v43  ;;  %v5748_v60 = vpack.c.bf16 %v101_v49, %v97_v48  ;;  %v100_v61 = vld [vmem:[%s7275_s2 + $0x30] sm:$0xff]  ;;  %v103_v62 = vld [vmem:[%s7275_s2 + $0x48] sm:$0xff]  ;;  %v5766_v10 = vpack.c.bf16 %v98_v58, %v94_v54  ;;  %vm5390_vm0 = vmmov 0   ;;  %s5391_s30 = smov [#allocation2]  }
  0x21   :  { %v107_v2 = vld [vmem:[%s7275_s2 + $0x68] sm:$0xff]  ;;  %v105_v4 = vld [vmem:[%s7275_s2 + $0x58] sm:$0xff]  ;;  %v5770_v11 = vpack.c.bf16 %v100_v61, %v96_v59  ;;  %v102_v14 = vld [vmem:[%s7275_s2 + $0x40] sm:$0xff]  ;;  %s3349_s1 = sshll.u32 %s5391_s30, 4  ;;  %s3350_s1 = int_to_ptr.vmem [resolvable:$true] %s3349_s1 }
  0x22   :  { %v109_v5 = vld [vmem:[%s7275_s2 + $0x78] sm:$0xff]  ;;  %3549 = vmatpush1.bf16.msra.mxu0 %v5730_v50  ;;  %v5772_v12 = vpack.c.bf16 %v107_v2, %v103_v62  ;;  %v106_v15 = vld [vmem:[%s7275_s2 + $0x60] sm:$0xff]  ;;  %v104_v21 = vld [vmem:[%s7275_s2 + $0x50] sm:$0xff]  ;;  %p5368_p1 = scmp.lt.s32.totalorder %s3350_s1, %s3350_s1 }
  0x23   :  { %3581 = vmatpush1.bf16.msra.mxu1 %v5737_v55  ;;  %3583 = vmatprep.subr.bf16.mxu0 %v5739_v56  ;;  %v5784_v23 = vpack.c.bf16 %v109_v5, %v105_v4  ;;  %v108_v24 = vld [vmem:[%s7275_s2 + $0x70] sm:$0xff]  ;;  %v111_v28 = vld [vmem:[%s7275_s2 + $0x88] sm:$0xff]  ;;  %v113_v30 = vld [vmem:[%s7275_s2 + $0x98] sm:$0xff]  ;;  %v5804_v33 = vpack.c.bf16 %v106_v15, %v102_v14 }
  0x24   :  { %3647 = vmatprep.subr.bf16.mxu1 %v5748_v60  ;;  %v115_v29 = vld [vmem:[%s7275_s2 + $0xa8] sm:$0xff]  ;;  %v117_v32 = vld [vmem:[%s7275_s2 + $0xb8] sm:$0xff]  ;;  %v5808_v38 = vpack.c.bf16 %v108_v24, %v104_v21  ;;  %v110_v42 = vld [vmem:[%s7275_s2 + $0x80] sm:$0xff] }
  0x25   :  { %310 = vmatmul.mubr.f32.vlgmr.msra.gmra.mrb[0].mxu0 %v7282_v7  ;;  %v5810_v41 = vpack.c.bf16 %v115_v29, %v111_v28  ;;  %v114_v45 = vld [vmem:[%s7275_s2 + $0xa0] sm:$0xff]  ;;  %v5819_v46 = vpack.c.bf16 %v117_v32, %v113_v30  ;;  %v112_v47 = vld [vmem:[%s7275_s2 + $0x90] sm:$0xff]  ;;  %v119_v58 = vld [vmem:[%s7275_s2 + $0xc8] sm:$0xff] }
  0x26   :  { %381 = vmatmul.mubr.f32.vlgmr.msra.gmra.mrb[0].mxu1 %v7282_v7  ;;  %3585 = vmatpush1.bf16.msra.mxu0 %v5766_v10  ;;  %v116_v48 = vld [vmem:[%s7275_s2 + $0xb0] sm:$0xff]  ;;  %v5830_v49 = vpack.c.bf16 %v114_v45, %v110_v42  ;;  %v123_v59 = vld [vmem:[%s7275_s2 + $0xe8] sm:$0xff]  ;;  %v121_v61 = vld [vmem:[%s7275_s2 + $0xd8] sm:$0xff] }
  0x27   :  { %3649 = vmatpush1.bf16.msra.mxu1 %v5770_v11  ;;  %3587 = vmatprep.subr.bf16.mxu0 %v5772_v12  ;;  %v5834_v54 = vpack.c.bf16 %v116_v48, %v112_v47  ;;  %v5848_v62 = vpack.c.bf16 %v123_v59, %v119_v58  ;;  %v125_v2 = vld [vmem:[%s7275_s2 + $0xf8] sm:$0xff]  ;;  %v118_v4 = vld [vmem:[%s7275_s2 + $0xc0] sm:$0xff]  ;;  %v120_v21 = vld [vmem:[%s7275_s2 + $0xd0] sm:$0xff] }
  0x28   :  { %3651 = vmatprep.subr.bf16.mxu1 %v5784_v23  ;;  %505 = vmatprep.mubr.f32.mxu0 %v7282_v7  ;;  %v122_v5 = vld [vmem:[%s7275_s2 + $0xe0] sm:$0xff]  ;;  %v5859_v14 = vpack.c.bf16 %v125_v2, %v121_v61  ;;  %v124_v24 = vld [vmem:[%s7275_s2 + $0xf0] sm:$0xff]  ;;  %v127_v29 = vld [vmem:[%s7275_s2 + $0x108] sm:$0xff] }
  0x29   :  { %576 = vmatprep.mubr.f32.mxu1 %v7282_v7  ;;  %7406 = vst [vmem:[#allocation7_spill] sm:$0xff] %v5834_v54  ;;  %7407 = vst [vmem:[#allocation8_spill] sm:$0xff] %v5848_v62  ;;  %v5861_v15 = vpack.c.bf16 %v122_v5, %v118_v4  ;;  %v5870_v28 = vpack.c.bf16 %v124_v24, %v120_v21  ;;  %v131_v30 = vld [vmem:[%s7275_s2 + $0x128] sm:$0xff]  ;;  %v129_v32 = vld [vmem:[%s7275_s2 + $0x118] sm:$0xff] }
  0x2a   :  { %3589 = vmatpush1.bf16.msra.mxu0 %v5804_v33  ;;  %7408 = vst [vmem:[#allocation9_spill] sm:$0xff] %v5859_v14  ;;  %v5884_v42 = vpack.c.bf16 %v131_v30, %v127_v29  ;;  %v133_v45 = vld [vmem:[%s7275_s2 + $0x138] sm:$0xff]  ;;  %v126_v47 = vld [vmem:[%s7275_s2 + $0x100] sm:$0xff]  ;;  %v128_v61 = vld [vmem:[%s7275_s2 + $0x110] sm:$0xff] }
  0x2b   :  { %3653 = vmatpush1.bf16.msra.mxu1 %v5808_v38  ;;  %3591 = vmatprep.subr.bf16.mxu0 %v5810_v41  ;;  %7409 = vst [vmem:[#allocation10_spill] sm:$0xff] %v5861_v15  ;;  %7410 = vst [vmem:[#allocation11_spill] sm:$0xff] %v5870_v28  ;;  %v130_v48 = vld [vmem:[%s7275_s2 + $0x120] sm:$0xff]  ;;  %v5895_v58 = vpack.c.bf16 %v133_v45, %v129_v32  ;;  %v132_v2 = vld [vmem:[%s7275_s2 + $0x130] sm:$0xff] }
  0x2c   :  { %3655 = vmatprep.subr.bf16.mxu1 %v5819_v46  ;;  %7411 = vst [vmem:[#allocation12_spill] sm:$0xff] %v5884_v42  ;;  %v5897_v59 = vpack.c.bf16 %v130_v48, %v126_v47  ;;  %v5906_v4 = vpack.c.bf16 %v132_v2, %v128_v61  ;;  %v135_v5 = vld [vmem:[%s7275_s2 + $0x148] sm:$0xff]  ;;  %v137_v24 = vld [vmem:[%s7275_s2 + $0x158] sm:$0xff]  ;;  %v134_v32 = vld [vmem:[%s7275_s2 + $0x140] sm:$0xff] }
  0x2d   :  { %7412 = vst [vmem:[#allocation13_spill] sm:$0xff] %v5895_v58  ;;  %v139_v21 = vld [vmem:[%s7275_s2 + $0x168] sm:$0xff]  ;;  %v141_v30 = vld [vmem:[%s7275_s2 + $0x178] sm:$0xff]  ;;  %v138_v45 = vld [vmem:[%s7275_s2 + $0x160] sm:$0xff] }
  0x2e   :  { %3593 = vmatpush1.bf16.msra.mxu0 %v5830_v49  ;;  %7413 = vst [vmem:[#allocation14_spill] sm:$0xff] %v5897_v59  ;;  %7414 = vst [vmem:[#allocation15_spill] sm:$0xff] %v5906_v4  ;;  %v5920_v29 = vpack.c.bf16 %v139_v21, %v135_v5  ;;  %v5931_v47 = vpack.c.bf16 %v141_v30, %v137_v24  ;;  %v5933_v48 = vpack.c.bf16 %v138_v45, %v134_v32  ;;  %v136_v61 = vld [vmem:[%s7275_s2 + $0x150] sm:$0xff]  ;;  %v143_v21 = vld [vmem:[%s7275_s2 + $0x188] sm:$0xff] }
  0x2f   :  { %3657 = vmatpush1.bf16.msra.mxu1 %v5834_v54  ;;  %3595 = vmatprep.subr.bf16.mxu0 %v5848_v62  ;;  %v140_v2 = vld [vmem:[%s7275_s2 + $0x170] sm:$0xff]  ;;  %v147_v24 = vld [vmem:[%s7275_s2 + $0x1a8] sm:$0xff]  ;;  %v145_v30 = vld [vmem:[%s7275_s2 + $0x198] sm:$0xff] }
  0x30   :  { %3659 = vmatprep.subr.bf16.mxu1 %v5859_v14  ;;  %7415 = vst [vmem:[#allocation16_spill] sm:$0xff] %v5920_v29  ;;  %7416 = vst [vmem:[#allocation17_spill] sm:$0xff] %v5931_v47  ;;  %v5942_v5 = vpack.c.bf16 %v140_v2, %v136_v61  ;;  %v5956_v32 = vpack.c.bf16 %v147_v24, %v143_v21  ;;  %v149_v45 = vld [vmem:[%s7275_s2 + $0x1b8] sm:$0xff]  ;;  %v142_v61 = vld [vmem:[%s7275_s2 + $0x180] sm:$0xff] }
  0x31   :  { %7417 = vst [vmem:[#allocation18_spill] sm:$0xff] %v5933_v48  ;;  %v146_v2 = vld [vmem:[%s7275_s2 + $0x1a0] sm:$0xff]  ;;  %v5967_v7 = vpack.c.bf16 %v149_v45, %v145_v30  ;;  %v144_v21 = vld [vmem:[%s7275_s2 + $0x190] sm:$0xff]  ;;  %v151_v30 = vld [vmem:[%s7275_s2 + $0x1c8] sm:$0xff] }
  0x32   :  { %3597 = vmatpush1.bf16.msra.mxu0 %v5861_v15  ;;  %7418 = vst [vmem:[#allocation19_spill] sm:$0xff] %v5942_v5  ;;  %7419 = vst [vmem:[#allocation20_spill] sm:$0xff] %v5956_v32  ;;  %v148_v24 = vld [vmem:[%s7275_s2 + $0x1b0] sm:$0xff]  ;;  %v155_v45 = vld [vmem:[%s7275_s2 + $0x1e8] sm:$0xff] }
  0x33   :  { %3661 = vmatpush1.bf16.msra.mxu1 %v5870_v28  ;;  %3599 = vmatprep.subr.bf16.mxu0 %v5884_v42  ;;  %7420 = vst [vmem:[#allocation21_spill] sm:$0xff] %v5967_v7 }
  0x34   :  { %3663 = vmatprep.subr.bf16.mxu1 %v5895_v58 }
  0x36   :  { %3601 = vmatpush1.bf16.msra.mxu0 %v5897_v59  ;;  %v218_v59 = vld [vmem:[%s7275_s2 + $0x3e0] sm:$0xff] }
  0x37   :  { %3665 = vmatpush1.bf16.msra.mxu1 %v5906_v4  ;;  %3603 = vmatprep.subr.bf16.mxu0 %v5920_v29  ;;  %v200_v29 = vld [vmem:[%s7275_s2 + $0x350] sm:$0xff] }
  0x38   :  { %3667 = vmatprep.subr.bf16.mxu1 %v5931_v47 }
  0x3a   :  { %3605 = vmatpush1.bf16.msra.mxu0 %v5933_v48  ;;  %v5969_v48 = vpack.c.bf16 %v146_v2, %v142_v61  ;;  %v153_v61 = vld [vmem:[%s7275_s2 + $0x1d8] sm:$0xff]  ;;  %v5992_v2 = vpack.c.bf16 %v155_v45, %v151_v30  ;;  %v152_v30 = vld [vmem:[%s7275_s2 + $0x1d0] sm:$0xff] }
  0x3b   :  { %3669 = vmatpush1.bf16.msra.mxu1 %v5942_v5  ;;  %3607 = vmatprep.subr.bf16.mxu0 %v5956_v32  ;;  %v5978_v5 = vpack.c.bf16 %v148_v24, %v144_v21  ;;  %v157_v21 = vld [vmem:[%s7275_s2 + $0x1f8] sm:$0xff]  ;;  %v150_v24 = vld [vmem:[%s7275_s2 + $0x1c0] sm:$0xff]  ;;  %v156_v45 = vld [vmem:[%s7275_s2 + $0x1f0] sm:$0xff] }
  0x3c   :  { %7421 = vst [vmem:[#allocation22_spill] sm:$0xff] %v5969_v48  ;;  %3671 = vmatprep.subr.bf16.mxu1 %v5967_v7  ;;  %7423 = vst [vmem:[#allocation24_spill] sm:$0xff] %v5992_v2  ;;  %v6003_v7 = vpack.c.bf16 %v157_v21, %v153_v61  ;;  %v163_v61 = vld [vmem:[%s7275_s2 + $0x228] sm:$0xff]  ;;  %v161_v21 = vld [vmem:[%s7275_s2 + $0x218] sm:$0xff] }
  0x3d   :  { %7422 = vst [vmem:[#allocation23_spill] sm:$0xff] %v5978_v5 }
  0x3e   :  { %3609 = vmatpush1.bf16.msra.mxu0 %v5969_v48  ;;  %v154_v48 = vld [vmem:[%s7275_s2 + $0x1e0] sm:$0xff]  ;;  %7424 = vst [vmem:[#allocation25_spill] sm:$0xff] %v6003_v7 }
  0x3f   :  { %3673 = vmatpush1.bf16.msra.mxu1 %v5978_v5  ;;  %v6005_v32 = vpack.c.bf16 %v154_v48, %v150_v24  ;;  %3611 = vmatprep.subr.bf16.mxu0 %v5992_v2  ;;  %v6014_v5 = vpack.c.bf16 %v156_v45, %v152_v30  ;;  %v159_v48 = vld [vmem:[%s7275_s2 + $0x208] sm:$0xff]  ;;  %v165_v30 = vld [vmem:[%s7275_s2 + $0x238] sm:$0xff]  ;;  %v158_v45 = vld [vmem:[%s7275_s2 + $0x200] sm:$0xff] }
  0x40   :  { %3675 = vmatprep.subr.bf16.mxu1 %v6003_v7  ;;  %v6028_v24 = vpack.c.bf16 %v163_v61, %v159_v48  ;;  %v6039_v7 = vpack.c.bf16 %v165_v30, %v161_v21  ;;  %v160_v48 = vld [vmem:[%s7275_s2 + $0x210] sm:$0xff]  ;;  %v171_v21 = vld [vmem:[%s7275_s2 + $0x268] sm:$0xff]  ;;  %v169_v30 = vld [vmem:[%s7275_s2 + $0x258] sm:$0xff] }
  0x41   :  { %7425 = vst [vmem:[#allocation26_spill] sm:$0xff] %v6005_v32  ;;  %7426 = vst [vmem:[#allocation27_spill] sm:$0xff] %v6014_v5  ;;  %v164_v61 = vld [vmem:[%s7275_s2 + $0x230] sm:$0xff] }
  0x42   :  { %3613 = vmatpush1.bf16.msra.mxu0 %v6005_v32  ;;  %7427 = vst [vmem:[#allocation28_spill] sm:$0xff] %v6028_v24  ;;  %v162_v32 = vld [vmem:[%s7275_s2 + $0x220] sm:$0xff]  ;;  %7428 = vst [vmem:[#allocation29_spill] sm:$0xff] %v6039_v7 }
  0x43   :  { %3677 = vmatpush1.bf16.msra.mxu1 %v6014_v5  ;;  %v6041_v2 = vpack.c.bf16 %v162_v32, %v158_v45  ;;  %3615 = vmatprep.subr.bf16.mxu0 %v6028_v24  ;;  %v6050_v5 = vpack.c.bf16 %v164_v61, %v160_v48  ;;  %v167_v32 = vld [vmem:[%s7275_s2 + $0x248] sm:$0xff]  ;;  %v173_v48 = vld [vmem:[%s7275_s2 + $0x278] sm:$0xff]  ;;  %v166_v61 = vld [vmem:[%s7275_s2 + $0x240] sm:$0xff] }
  0x44   :  { %3679 = vmatprep.subr.bf16.mxu1 %v6039_v7  ;;  %v6064_v45 = vpack.c.bf16 %v171_v21, %v167_v32  ;;  %v6075_v7 = vpack.c.bf16 %v173_v48, %v169_v30  ;;  %v168_v32 = vld [vmem:[%s7275_s2 + $0x250] sm:$0xff]  ;;  %v179_v30 = vld [vmem:[%s7275_s2 + $0x2a8] sm:$0xff]  ;;  %v177_v48 = vld [vmem:[%s7275_s2 + $0x298] sm:$0xff] }
  0x45   :  { %7429 = vst [vmem:[#allocation30_spill] sm:$0xff] %v6041_v2  ;;  %7430 = vst [vmem:[#allocation31_spill] sm:$0xff] %v6050_v5  ;;  %v172_v21 = vld [vmem:[%s7275_s2 + $0x270] sm:$0xff] }
  0x46   :  { %3617 = vmatpush1.bf16.msra.mxu0 %v6041_v2  ;;  %7431 = vst [vmem:[#allocation32_spill] sm:$0xff] %v6064_v45  ;;  %v170_v2 = vld [vmem:[%s7275_s2 + $0x260] sm:$0xff]  ;;  %7432 = vst [vmem:[#allocation33_spill] sm:$0xff] %v6075_v7 }
  0x47   :  { %3681 = vmatpush1.bf16.msra.mxu1 %v6050_v5  ;;  %v6077_v24 = vpack.c.bf16 %v170_v2, %v166_v61  ;;  %3619 = vmatprep.subr.bf16.mxu0 %v6064_v45  ;;  %v6086_v5 = vpack.c.bf16 %v172_v21, %v168_v32  ;;  %v175_v2 = vld [vmem:[%s7275_s2 + $0x288] sm:$0xff]  ;;  %v181_v32 = vld [vmem:[%s7275_s2 + $0x2b8] sm:$0xff]  ;;  %v174_v21 = vld [vmem:[%s7275_s2 + $0x280] sm:$0xff] }
  0x48   :  { %3683 = vmatprep.subr.bf16.mxu1 %v6075_v7  ;;  %v6100_v61 = vpack.c.bf16 %v179_v30, %v175_v2  ;;  %v6111_v7 = vpack.c.bf16 %v181_v32, %v177_v48  ;;  %v176_v2 = vld [vmem:[%s7275_s2 + $0x290] sm:$0xff]  ;;  %v187_v48 = vld [vmem:[%s7275_s2 + $0x2e8] sm:$0xff]  ;;  %v185_v32 = vld [vmem:[%s7275_s2 + $0x2d8] sm:$0xff] }
  0x49   :  { %7433 = vst [vmem:[#allocation34_spill] sm:$0xff] %v6077_v24  ;;  %7434 = vst [vmem:[#allocation35_spill] sm:$0xff] %v6086_v5  ;;  %v180_v30 = vld [vmem:[%s7275_s2 + $0x2b0] sm:$0xff] }
  0x4a   :  { %3621 = vmatpush1.bf16.msra.mxu0 %v6077_v24  ;;  %7435 = vst [vmem:[#allocation36_spill] sm:$0xff] %v6100_v61  ;;  %v178_v24 = vld [vmem:[%s7275_s2 + $0x2a0] sm:$0xff]  ;;  %7436 = vst [vmem:[#allocation37_spill] sm:$0xff] %v6111_v7 }
  0x4b   :  { %3685 = vmatpush1.bf16.msra.mxu1 %v6086_v5  ;;  %v6113_v45 = vpack.c.bf16 %v178_v24, %v174_v21  ;;  %3623 = vmatprep.subr.bf16.mxu0 %v6100_v61  ;;  %v6122_v5 = vpack.c.bf16 %v180_v30, %v176_v2  ;;  %v183_v24 = vld [vmem:[%s7275_s2 + $0x2c8] sm:$0xff]  ;;  %v189_v2 = vld [vmem:[%s7275_s2 + $0x2f8] sm:$0xff]  ;;  %v182_v30 = vld [vmem:[%s7275_s2 + $0x2c0] sm:$0xff] }
  0x4c   :  { %3687 = vmatprep.subr.bf16.mxu1 %v6111_v7  ;;  %v6136_v21 = vpack.c.bf16 %v187_v48, %v183_v24  ;;  %v6147_v7 = vpack.c.bf16 %v189_v2, %v185_v32  ;;  %v184_v24 = vld [vmem:[%s7275_s2 + $0x2d0] sm:$0xff]  ;;  %v195_v32 = vld [vmem:[%s7275_s2 + $0x328] sm:$0xff]  ;;  %v193_v2 = vld [vmem:[%s7275_s2 + $0x318] sm:$0xff] }
  0x4d   :  { %7437 = vst [vmem:[#allocation38_spill] sm:$0xff] %v6113_v45  ;;  %7438 = vst [vmem:[#allocation39_spill] sm:$0xff] %v6122_v5  ;;  %v188_v48 = vld [vmem:[%s7275_s2 + $0x2f0] sm:$0xff] }
  0x4e   :  { %3625 = vmatpush1.bf16.msra.mxu0 %v6113_v45  ;;  %7439 = vst [vmem:[#allocation40_spill] sm:$0xff] %v6136_v21  ;;  %v186_v45 = vld [vmem:[%s7275_s2 + $0x2e0] sm:$0xff]  ;;  %7440 = vst [vmem:[#allocation41_spill] sm:$0xff] %v6147_v7 }
  0x4f   :  { %3689 = vmatpush1.bf16.msra.mxu1 %v6122_v5  ;;  %v6149_v61 = vpack.c.bf16 %v186_v45, %v182_v30  ;;  %3627 = vmatprep.subr.bf16.mxu0 %v6136_v21  ;;  %v6158_v5 = vpack.c.bf16 %v188_v48, %v184_v24  ;;  %v191_v45 = vld [vmem:[%s7275_s2 + $0x308] sm:$0xff]  ;;  %v197_v24 = vld [vmem:[%s7275_s2 + $0x338] sm:$0xff]  ;;  %v190_v48 = vld [vmem:[%s7275_s2 + $0x300] sm:$0xff] }
  0x50   :  { %3691 = vmatprep.subr.bf16.mxu1 %v6147_v7  ;;  %v6172_v30 = vpack.c.bf16 %v195_v32, %v191_v45  ;;  %v6183_v7 = vpack.c.bf16 %v197_v24, %v193_v2  ;;  %v192_v45 = vld [vmem:[%s7275_s2 + $0x310] sm:$0xff]  ;;  %v201_v2 = vld [vmem:[%s7275_s2 + $0x358] sm:$0xff] }
  0x51   :  { %7441 = vst [vmem:[#allocation42_spill] sm:$0xff] %v6149_v61  ;;  %7442 = vst [vmem:[#allocation43_spill] sm:$0xff] %v6158_v5  ;;  %v196_v32 = vld [vmem:[%s7275_s2 + $0x330] sm:$0xff]  ;;  %v205_v24 = vld [vmem:[%s7275_s2 + $0x378] sm:$0xff] }
  0x52   :  { %3629 = vmatpush1.bf16.msra.mxu0 %v6149_v61  ;;  %7443 = vst [vmem:[#allocation44_spill] sm:$0xff] %v6172_v30  ;;  %v194_v61 = vld [vmem:[%s7275_s2 + $0x320] sm:$0xff]  ;;  %7444 = vst [vmem:[#allocation45_spill] sm:$0xff] %v6183_v7  ;;  %v6197_v47 = vpack.c.bf16 %v196_v32, %v192_v45  ;;  %v6212_v45 = vpack.c.bf16 %v205_v24, %v201_v2  ;;  %v211_v2 = vld [vmem:[%s7275_s2 + $0x3a8] sm:$0xff] }
  0x53   :  { %3693 = vmatpush1.bf16.msra.mxu1 %v6158_v5  ;;  %v6185_v21 = vpack.c.bf16 %v194_v61, %v190_v48  ;;  %v199_v5 = vld [vmem:[%s7275_s2 + $0x348] sm:$0xff]  ;;  %3631 = vmatprep.subr.bf16.mxu0 %v6172_v30  ;;  %v198_v32 = vld [vmem:[%s7275_s2 + $0x340] sm:$0xff] }
  0x54   :  { %7446 = vst [vmem:[#allocation47_spill] sm:$0xff] %v6197_v47  ;;  %v203_v61 = vld [vmem:[%s7275_s2 + $0x368] sm:$0xff]  ;;  %3695 = vmatprep.subr.bf16.mxu1 %v6183_v7  ;;  %7448 = vst [vmem:[#allocation49_spill] sm:$0xff] %v6212_v45  ;;  %v202_v30 = vld [vmem:[%s7275_s2 + $0x360] sm:$0xff] }
  0x55   :  { %7445 = vst [vmem:[#allocation46_spill] sm:$0xff] %v6185_v21  ;;  %v6210_v48 = vpack.c.bf16 %v203_v61, %v199_v5  ;;  %v6224_v7 = vpack.c.bf16 %v202_v30, %v198_v32  ;;  %v204_v5 = vld [vmem:[%s7275_s2 + $0x370] sm:$0xff]  ;;  %v207_v61 = vld [vmem:[%s7275_s2 + $0x388] sm:$0xff]  ;;  %v209_v32 = vld [vmem:[%s7275_s2 + $0x398] sm:$0xff] }
  0x56   :  { %3633 = vmatpush1.bf16.msra.mxu0 %v6185_v21  ;;  %v6237_v24 = vpack.c.bf16 %v204_v5, %v200_v29  ;;  %v6239_v30 = vpack.c.bf16 %v211_v2, %v207_v61  ;;  %v206_v21 = vld [vmem:[%s7275_s2 + $0x380] sm:$0xff]  ;;  %v208_v5 = vld [vmem:[%s7275_s2 + $0x390] sm:$0xff] }
  0x57   :  { %7447 = vst [vmem:[#allocation48_spill] sm:$0xff] %v6210_v48  ;;  %3697 = vmatpush1.bf16.msra.mxu1 %v6197_v47  ;;  %7449 = vst [vmem:[#allocation50_spill] sm:$0xff] %v6224_v7  ;;  %3635 = vmatprep.subr.bf16.mxu0 %v6210_v48  ;;  %v213_v47 = vld [vmem:[%s7275_s2 + $0x3b8] sm:$0xff]  ;;  %v210_v29 = vld [vmem:[%s7275_s2 + $0x3a0] sm:$0xff] }
  0x58   :  { %3699 = vmatprep.subr.bf16.mxu1 %v6212_v45  ;;  %7450 = vst [vmem:[#allocation51_spill] sm:$0xff] %v6237_v24  ;;  %7451 = vst [vmem:[#allocation52_spill] sm:$0xff] %v6239_v30  ;;  %v6250_v4 = vpack.c.bf16 %v213_v47, %v209_v32  ;;  %v212_v61 = vld [vmem:[%s7275_s2 + $0x3b0] sm:$0xff]  ;;  %v6262_v2 = vpack.c.bf16 %v210_v29, %v206_v21  ;;  %v215_v47 = vld [vmem:[%s7275_s2 + $0x3c8] sm:$0xff] }
  0x59   :  { %v219_v32 = vld [vmem:[%s7275_s2 + $0x3e8] sm:$0xff]  ;;  %v217_v45 = vld [vmem:[%s7275_s2 + $0x3d8] sm:$0xff]  ;;  %v6275_v48 = vpack.c.bf16 %v212_v61, %v208_v5  ;;  %v216_v5 = vld [vmem:[%s7275_s2 + $0x3d0] sm:$0xff] }
  0x5a   :  { %7452 = vst [vmem:[#allocation53_spill] sm:$0xff] %v6250_v4  ;;  %3637 = vmatpush1.bf16.msra.mxu0 %v6224_v7  ;;  %7453 = vst [vmem:[#allocation54_spill] sm:$0xff] %v6262_v2  ;;  %v6277_v21 = vpack.c.bf16 %v219_v32, %v215_v47  ;;  %v221_v29 = vld [vmem:[%s7275_s2 + $0x3f8] sm:$0xff]  ;;  %v214_v7 = vld [vmem:[%s7275_s2 + $0x3c0] sm:$0xff] }
  0x5b   :  { %3701 = vmatpush1.bf16.msra.mxu1 %v6237_v24  ;;  %3639 = vmatprep.subr.bf16.mxu0 %v6239_v30  ;;  %7454 = vst [vmem:[#allocation55_spill] sm:$0xff] %v6275_v48  ;;  %v6289_v24 = vpack.c.bf16 %v221_v29, %v217_v45  ;;  %v220_v61 = vld [vmem:[%s7275_s2 + $0x3f0] sm:$0xff]  ;;  %v6298_v47 = vpack.c.bf16 %v218_v59, %v214_v7  ;;  %v224_v45 = vlaneseq  ;;  %v5388_v29 = vmov 1983009808  }
  0x5c   :  { %7455 = vst [vmem:[#allocation56_spill] sm:$0xff] %v6277_v21  ;;  %3703 = vmatprep.subr.bf16.mxu1 %v6250_v4  ;;  %v6302_v32 = vpack.c.bf16 %v220_v61, %v216_v5  ;;  %v394_v7 = vunpack.c.l.s4 %v5388_v29  ;;  %v244_v29 = vld [vmem:[%s7273_s0] sm:$0xff] }
  0x5d   :  { %7456 = vst [vmem:[#allocation57_spill] sm:$0xff] %v6289_v24  ;;  %7457 = vst [vmem:[#allocation58_spill] sm:$0xff] %v6298_v47  ;;  %v6309_v59 = vshrl.u32 %v224_v45, 7 }
  0x5e   :  { %3641 = vmatpush1.bf16.msra.mxu0 %v6262_v2  ;;  %7458 = vst [vmem:[#allocation59_spill] sm:$0xff] %v6302_v32 }
  0x5f   :  { %3705 = vmatpush1.bf16.msra.mxu1 %v6275_v48  ;;  %3643 = vmatprep.subr.bf16.mxu0 %v6277_v21  ;;  %7459 = vst [vmem:[#allocation60_spill] sm:$0xff] %v6309_v59  ;;  %v395_v48 = vunpack.c.0.s8 %v394_v7 }
  0x60   :  { %3707 = vmatprep.subr.bf16.mxu1 %v6289_v24 }
  0x61   :  { %v6312_v5 = vsub.s32 %v395_v48, %v6309_v59 }
  0x62   :  { %3645 = vmatpush1.bf16.msra.mxu0 %v6298_v47 }
  0x63   :  { %3709 = vmatpush1.bf16.msra.mxu1 %v6302_v32  ;;  %3711 = vmatprep.subr.bf16.mxu0 %v5446_v3  ;;  %7460 = vst [vmem:[#allocation61_spill] sm:$0xff] %v6312_v5 }
  0x64   :  { %3743 = vmatprep.subr.bf16.mxu1 %v5459_v8 }
  0xf8   :  { %v311_v2 = vpop.f32.mrb[0].mxu0 }
  0xf9   :  { %v382_v61 = vpop.f32.mrb[0].mxu1  ;;  %v313_v24 = vpop.f32.mrb[1].mxu0 }
  0xfa   :  { %v391_v21 = vcombine.low %v311_v2, %v313_v24  ;;  %v384_v47 = vpop.f32.mrb[1].mxu1 }
  0xfb   :  { %v392_v4 = vcombine.low %v382_v61, %v384_v47 }
  0xfc   :  { %v399_v32 = vrot.slane %v391_v21, %v6312_v5 }
  0xfd   :  { %v406_v3 = vrot.slane %v392_v4, %v6312_v5 }
  0xff   :  { %v407_v45 = vcombine.low %v399_v32, %v406_v3 }
 0x101   :  { %v409_v8 = vadd.f32 %v407_v45, %v244_v29 }
 0x103   :  { %v3357_v7 = vmul.f32 -1.442695, %v409_v8  ;;  %v417_v30 = vrot.slane %v409_v8, 2  ;;  %v428_v59 = vrot.slane %v409_v8, 6  ;;  %v425_v2 = vrot.slane %v409_v8, 4 }
 0x105   :  { %5107 = vpow2.f32 %v3357_v7  ;;  %v3358_v48 = vmul.f32 -1.442695, %v417_v30  ;;  %v3359_v58 = vmul.f32 -1.442695, %v428_v59 }
 0x107   :  { %5109 = vpow2.f32 %v3358_v48 }
 0x108   :  { %5111 = vpow2.f32 %v3359_v58  ;;  %v7461_v58 = vmov 0.0  }
 0x10f   :  { %v5108_v24 = vpop.eup %5107 }
 0x110   :  { %v413_v47 = vadd.f32 1.0, %v5108_v24  ;;  %v7463_v24 = vld [vmem:[#allocation14_spill] sm:$0xff] }
 0x111   :  { %v5110_v61 = vpop.eup %5109 }
 0x112   :  { %5113 = vrcp.f32 %v413_v47  ;;  %v422_v4 = vadd.f32 1.0, %v5110_v61  ;;  %v5112_v21 = vpop.eup %5111  ;;  %v7465_v47 = vld [vmem:[#allocation16_spill] sm:$0xff]  ;;  %v7466_v61 = vld [vmem:[#allocation17_spill] sm:$0xff] }
 0x113   :  { %5115 = vtanh.f32 %v425_v2  ;;  %v433_v29 = vadd.f32 1.0, %v5112_v21  ;;  %v7464_v2 = vld [vmem:[#allocation15_spill] sm:$0xff] }
 0x114   :  { %5117 = vrcp.f32 %v422_v4  ;;  %v7467_v4 = vld [vmem:[#allocation18_spill] sm:$0xff]  ;;  %v7468_v21 = vld [vmem:[#allocation19_spill] sm:$0xff] }
 0x115   :  { %5119 = vrcp.f32 %v433_v29  ;;  %v7471_v29 = vld [vmem:[#allocation22_spill] sm:$0xff] }
 0x11c   :  { %v5114_v5 = vpop.eup %5113 }
 0x11d   :  { %v5116_v3 = vpop.eup %5115 }
 0x11e   :  { %v5118_v32 = vpop.eup %5117  ;;  %v437_v7 = vmul.f32 %v5116_v3, %v5114_v5  ;;  %v7462_v5 = vld [vmem:[#allocation13_spill] sm:$0xff]  ;;  %v7469_v3 = vld [vmem:[#allocation20_spill] sm:$0xff] }
 0x11f   :  { %v436_v45 = vmul.f32 0.0, %v5118_v32  ;;  %v5120_v8 = vpop.eup %5119  ;;  %v7470_v32 = vld [vmem:[#allocation21_spill] sm:$0xff] }
 0x121   :  { %v6319_v30 = vadd.f32 %v437_v7, %v436_v45  ;;  %v7472_v45 = vld [vmem:[#allocation23_spill] sm:$0xff]  ;;  %v7473_v7 = vld [vmem:[#allocation24_spill] sm:$0xff] }
 0x123   :  { %5121 = vtanh.f32 %v6319_v30 }
 0x12d   :  { %v5122_v59 = vpop.eup %5121 }
 0x12e   :  { %v440_v48 = vmul.f32 %v5122_v59, %v5120_v8  ;;  %v7474_v8 = vld [vmem:[#allocation25_spill] sm:$0xff]  ;;  %v7475_v59 = vld [vmem:[#allocation26_spill] sm:$0xff] }
 0x130   :  { %506 = vmatmul.mubr.f32.vlgmr.msra.gmra.mrb[2].mxu0 %v440_v48  ;;  %577 = vmatmul.mubr.f32.vlgmr.msra.gmra.mrb[2].mxu1 %v440_v48 }
 0x131   :  { %3713 = vmatpush1.bf16.msra.mxu0 %v5461_v9  ;;  %3745 = vmatpush1.bf16.msra.mxu1 %v5473_v13 }
 0x132   :  { %3715 = vmatprep.subr.bf16.mxu0 %v5486_v17  ;;  %3747 = vmatprep.subr.bf16.mxu1 %v5488_v18 }
 0x133   :  { %673 = vmatprep.mubr.f32.mxu0 %v7461_v58  ;;  %744 = vmatprep.mubr.f32.mxu1 %v7461_v58 }
 0x135   :  { %3717 = vmatpush1.bf16.msra.mxu0 %v5500_v22  ;;  %3749 = vmatpush1.bf16.msra.mxu1 %v5513_v26 }
 0x136   :  { %3719 = vmatprep.subr.bf16.mxu0 %v5515_v27  ;;  %3751 = vmatprep.subr.bf16.mxu1 %v5526_v31 }
 0x139   :  { %3721 = vmatpush1.bf16.msra.mxu0 %v5538_v35  ;;  %3753 = vmatpush1.bf16.msra.mxu1 %v5551_v39 }
 0x13a   :  { %3723 = vmatprep.subr.bf16.mxu0 %v5553_v40  ;;  %3755 = vmatprep.subr.bf16.mxu1 %v5565_v44 }
 0x13d   :  { %3725 = vmatpush1.bf16.msra.mxu0 %v5586_v51  ;;  %3757 = vmatpush1.bf16.msra.mxu1 %v5590_v52 }
 0x13e   :  { %3727 = vmatprep.subr.bf16.mxu0 %v5592_v53  ;;  %3759 = vmatprep.subr.bf16.mxu1 %v5604_v57 }
 0x141   :  { %3729 = vmatpush1.bf16.msra.mxu0 %v5622_v63  ;;  %3761 = vmatpush1.bf16.msra.mxu1 %v5626_v0 }
 0x142   :  { %3731 = vmatprep.subr.bf16.mxu0 %v5628_v1  ;;  %3763 = vmatprep.subr.bf16.mxu1 %v5640_v6 }
 0x145   :  { %3733 = vmatpush1.bf16.msra.mxu0 %v5658_v16  ;;  %3765 = vmatpush1.bf16.msra.mxu1 %v5662_v19 }
 0x146   :  { %3735 = vmatprep.subr.bf16.mxu0 %v5664_v20  ;;  %3767 = vmatprep.subr.bf16.mxu1 %v5676_v25 }
 0x149   :  { %3737 = vmatpush1.bf16.msra.mxu0 %v5694_v34  ;;  %3769 = vmatpush1.bf16.msra.mxu1 %v5698_v36 }
 0x14a   :  { %3739 = vmatprep.subr.bf16.mxu0 %v5700_v37  ;;  %3771 = vmatprep.subr.bf16.mxu1 %v5712_v43 }
 0x14d   :  { %3741 = vmatpush1.bf16.msra.mxu0 %v5730_v50  ;;  %3773 = vmatpush1.bf16.msra.mxu1 %v5737_v55 }
 0x14e   :  { %3775 = vmatprep.subr.bf16.mxu0 %v5739_v56  ;;  %3839 = vmatprep.subr.bf16.mxu1 %v5748_v60 }
 0x150   :  { %674 = vmatmul.mubr.f32.vlgmr.msra.gmra.mrb[4].mxu0 %v440_v48  ;;  %745 = vmatmul.mubr.f32.vlgmr.msra.gmra.mrb[4].mxu1 %v440_v48  ;;  %v7476_v48 = vld [vmem:[#allocation27_spill] sm:$0xff] }
 0x151   :  { %3777 = vmatpush1.bf16.msra.mxu0 %v5766_v10  ;;  %3841 = vmatpush1.bf16.msra.mxu1 %v5770_v11 }
 0x152   :  { %3779 = vmatprep.subr.bf16.mxu0 %v5772_v12  ;;  %3843 = vmatprep.subr.bf16.mxu1 %v5784_v23 }
 0x155   :  { %3781 = vmatpush1.bf16.msra.mxu0 %v5804_v33  ;;  %3845 = vmatpush1.bf16.msra.mxu1 %v5808_v38 }
 0x156   :  { %3783 = vmatprep.subr.bf16.mxu0 %v5810_v41  ;;  %3847 = vmatprep.subr.bf16.mxu1 %v5819_v46 }
 0x159   :  { %3785 = vmatpush1.bf16.msra.mxu0 %v5830_v49  ;;  %3849 = vmatpush1.bf16.msra.mxu1 %v5834_v54 }
 0x15a   :  { %3787 = vmatprep.subr.bf16.mxu0 %v5848_v62  ;;  %3851 = vmatprep.subr.bf16.mxu1 %v5859_v14 }
 0x15d   :  { %3789 = vmatpush1.bf16.msra.mxu0 %v5861_v15  ;;  %3853 = vmatpush1.bf16.msra.mxu1 %v5870_v28 }
 0x15e   :  { %3791 = vmatprep.subr.bf16.mxu0 %v5884_v42  ;;  %3855 = vmatprep.subr.bf16.mxu1 %v7462_v5 }
 0x161   :  { %3793 = vmatpush1.bf16.msra.mxu0 %v7463_v24  ;;  %3857 = vmatpush1.bf16.msra.mxu1 %v7464_v2 }
 0x162   :  { %3795 = vmatprep.subr.bf16.mxu0 %v7465_v47  ;;  %3859 = vmatprep.subr.bf16.mxu1 %v7466_v61  ;;  %v7477_v61 = vld [vmem:[#allocation28_spill] sm:$0xff] }
 0x165   :  { %3797 = vmatpush1.bf16.msra.mxu0 %v7467_v4  ;;  %3861 = vmatpush1.bf16.msra.mxu1 %v7468_v21  ;;  %v7478_v4 = vld [vmem:[#allocation29_spill] sm:$0xff]  ;;  %v7479_v21 = vld [vmem:[#allocation30_spill] sm:$0xff] }
 0x166   :  { %3799 = vmatprep.subr.bf16.mxu0 %v7469_v3  ;;  %3863 = vmatprep.subr.bf16.mxu1 %v7470_v32  ;;  %v7480_v3 = vld [vmem:[#allocation31_spill] sm:$0xff]  ;;  %v7481_v32 = vld [vmem:[#allocation32_spill] sm:$0xff] }
 0x169   :  { %3801 = vmatpush1.bf16.msra.mxu0 %v7471_v29  ;;  %3865 = vmatpush1.bf16.msra.mxu1 %v7472_v45  ;;  %v7482_v29 = vld [vmem:[#allocation33_spill] sm:$0xff]  ;;  %v7483_v45 = vld [vmem:[#allocation34_spill] sm:$0xff] }
 0x16a   :  { %3803 = vmatprep.subr.bf16.mxu0 %v7473_v7  ;;  %3867 = vmatprep.subr.bf16.mxu1 %v7474_v8  ;;  %v7484_v7 = vld [vmem:[#allocation35_spill] sm:$0xff]  ;;  %v7485_v8 = vld [vmem:[#allocation36_spill] sm:$0xff] }
 0x16d   :  { %3805 = vmatpush1.bf16.msra.mxu0 %v7475_v59  ;;  %3869 = vmatpush1.bf16.msra.mxu1 %v7476_v48  ;;  %v7486_v59 = vld [vmem:[#allocation37_spill] sm:$0xff]  ;;  %v7487_v48 = vld [vmem:[#allocation38_spill] sm:$0xff] }
 0x16e   :  { %3807 = vmatprep.subr.bf16.mxu0 %v7477_v61  ;;  %3871 = vmatprep.subr.bf16.mxu1 %v7478_v4  ;;  %v7488_v61 = vld [vmem:[#allocation39_spill] sm:$0xff]  ;;  %v7489_v4 = vld [vmem:[#allocation40_spill] sm:$0xff] }
 0x171   :  { %3809 = vmatpush1.bf16.msra.mxu0 %v7479_v21  ;;  %3873 = vmatpush1.bf16.msra.mxu1 %v7480_v3  ;;  %v7490_v21 = vld [vmem:[#allocation41_spill] sm:$0xff]  ;;  %v7491_v3 = vld [vmem:[#allocation42_spill] sm:$0xff] }
 0x172   :  { %3811 = vmatprep.subr.bf16.mxu0 %v7481_v32  ;;  %3875 = vmatprep.subr.bf16.mxu1 %v7482_v29  ;;  %v7492_v32 = vld [vmem:[#allocation43_spill] sm:$0xff]  ;;  %v7493_v29 = vld [vmem:[#allocation44_spill] sm:$0xff] }
 0x175   :  { %3813 = vmatpush1.bf16.msra.mxu0 %v7483_v45  ;;  %3877 = vmatpush1.bf16.msra.mxu1 %v7484_v7  ;;  %v7494_v45 = vld [vmem:[#allocation45_spill] sm:$0xff]  ;;  %v7495_v7 = vld [vmem:[#allocation46_spill] sm:$0xff] }
 0x176   :  { %3815 = vmatprep.subr.bf16.mxu0 %v7485_v8  ;;  %3879 = vmatprep.subr.bf16.mxu1 %v7486_v59  ;;  %v7496_v8 = vld [vmem:[#allocation47_spill] sm:$0xff]  ;;  %v7497_v59 = vld [vmem:[#allocation48_spill] sm:$0xff] }
 0x179   :  { %3817 = vmatpush1.bf16.msra.mxu0 %v7487_v48  ;;  %3881 = vmatpush1.bf16.msra.mxu1 %v7488_v61  ;;  %v7498_v48 = vld [vmem:[#allocation49_spill] sm:$0xff]  ;;  %v7499_v61 = vld [vmem:[#allocation50_spill] sm:$0xff] }
 0x17a   :  { %3819 = vmatprep.subr.bf16.mxu0 %v7489_v4  ;;  %3883 = vmatprep.subr.bf16.mxu1 %v7490_v21  ;;  %v7500_v4 = vld [vmem:[#allocation51_spill] sm:$0xff]  ;;  %v7501_v21 = vld [vmem:[#allocation52_spill] sm:$0xff] }
 0x17d   :  { %3821 = vmatpush1.bf16.msra.mxu0 %v7491_v3  ;;  %3885 = vmatpush1.bf16.msra.mxu1 %v7492_v32  ;;  %v7502_v3 = vld [vmem:[#allocation53_spill] sm:$0xff]  ;;  %v7503_v32 = vld [vmem:[#allocation54_spill] sm:$0xff] }
 0x17e   :  { %3823 = vmatprep.subr.bf16.mxu0 %v7493_v29  ;;  %3887 = vmatprep.subr.bf16.mxu1 %v7494_v45  ;;  %v7504_v29 = vld [vmem:[#allocation55_spill] sm:$0xff]  ;;  %v7505_v45 = vld [vmem:[#allocation56_spill] sm:$0xff] }
 0x181   :  { %3825 = vmatpush1.bf16.msra.mxu0 %v7495_v7  ;;  %3889 = vmatpush1.bf16.msra.mxu1 %v7496_v8  ;;  %v7506_v7 = vld [vmem:[#allocation57_spill] sm:$0xff]  ;;  %v7507_v8 = vld [vmem:[#allocation58_spill] sm:$0xff] }
 0x182   :  { %3827 = vmatprep.subr.bf16.mxu0 %v7497_v59  ;;  %3891 = vmatprep.subr.bf16.mxu1 %v7498_v48  ;;  %v7508_v59 = vld [vmem:[#allocation59_spill] sm:$0xff]  ;;  %v7509_v48 = vld [vmem:[#allocation5_spill] sm:$0xff] }
 0x185   :  { %3829 = vmatpush1.bf16.msra.mxu0 %v7499_v61  ;;  %3893 = vmatpush1.bf16.msra.mxu1 %v7500_v4  ;;  %v7510_v61 = vld [vmem:[#allocation6_spill] sm:$0xff]  ;;  %v7511_v4 = vld [vmem:[#allocation60_spill] sm:$0xff] }
 0x186   :  { %3831 = vmatprep.subr.bf16.mxu0 %v7501_v21  ;;  %3895 = vmatprep.subr.bf16.mxu1 %v7502_v3  ;;  %v226_v21 = vsub.s32 0, %v7511_v4 }
 0x189   :  { %3833 = vmatpush1.bf16.msra.mxu0 %v7503_v32  ;;  %3897 = vmatpush1.bf16.msra.mxu1 %v7504_v29  ;;  %v222_v32 = vld [vmem:[%s7276_s3] sm:$0xf]  ;;  %v230_v29 = vsub.s32 1, %v7511_v4 }
 0x18a   :  { %3835 = vmatprep.subr.bf16.mxu0 %v7505_v45  ;;  %3899 = vmatprep.subr.bf16.mxu1 %v7506_v7  ;;  %v6425_v3 = vrot.slane %v222_v32, %v226_v21  ;;  %v234_v21 = vsub.s32 2, %v7511_v4 }
 0x18b   :  { %v6427_v45 = vrot.slane %v222_v32, %v230_v29 }
 0x18c   :  { %7512 = vst [vmem:[#allocation60_spill] sm:$0xff] %v6425_v3  ;;  %v6436_v28 = vrot.slane %v222_v32, %v234_v21 }
 0x18d   :  { %3837 = vmatpush1.bf16.msra.mxu0 %v7507_v8  ;;  %3901 = vmatpush1.bf16.msra.mxu1 %v7508_v59  ;;  %v238_v59 = vsub.s32 3, %v7511_v4 }
 0x18e   :  { %3903 = vmatprep.subr.bf16.mxu0 %v7509_v48  ;;  %3935 = vmatprep.subr.bf16.mxu1 %v7510_v61  ;;  %7514 = vst [vmem:[#allocation63_spill] sm:$0xff] %v6436_v28 }
 0x18f   :  { %v6432_v42 = vrot.slane %v222_v32, %v238_v59 }
 0x191   :  { %7513 = vst [vmem:[#allocation62_spill] sm:$0xff] %v6432_v42 }
 0x203   :  { %v507_v7 = vpop.f32.mrb[2].mxu0  ;;  %v578_v8 = vpop.f32.mrb[2].mxu1 }
 0x204   :  { %v508_v48 = vadd.f32 %v507_v7, %v6425_v3  ;;  %v509_v47 = vpop.f32.mrb[3].mxu0  ;;  %v580_v61 = vpop.f32.mrb[3].mxu1  ;;  %v579_v14 = vadd.f32 %v578_v8, %v6436_v28 }
 0x205   :  { %v510_v2 = vadd.f32 %v509_v47, %v6427_v45  ;;  %v581_v29 = vadd.f32 %v580_v61, %v6432_v42 }
 0x206   :  { %v3360_v24 = vmul.f32 -1.442695, %v508_v48 }
 0x207   :  { %v3361_v5 = vmul.f32 -1.442695, %v510_v2  ;;  %v3362_v15 = vmul.f32 -1.442695, %v581_v29 }
 0x208   :  { %5123 = vpow2.f32 %v3360_v24 }
 0x209   :  { %5125 = vpow2.f32 %v3361_v5 }
 0x20a   :  { %5127 = vpow2.f32 %v3362_v15 }
 0x20b   :  { %5129 = vtanh.f32 %v579_v14 }
 0x212   :  { %v5124_v7 = vpop.eup %5123 }
 0x213   :  { %v5126_v3 = vpop.eup %5125  ;;  %v586_v62 = vadd.f32 1.0, %v5124_v7 }
 0x214   :  { %v592_v47 = vadd.f32 1.0, %v5126_v3  ;;  %v5128_v2 = vpop.eup %5127 }
 0x215   :  { %5131 = vrcp.f32 %v586_v62  ;;  %v5130_v24 = vpop.eup %5129  ;;  %v599_v48 = vadd.f32 1.0, %v5128_v2  ;;  %v7515_v62 = vld [vmem:[#allocation61_spill] sm:$0xff] }
 0x216   :  { %5133 = vrcp.f32 %v592_v47  ;;  %v3363_v47 = vld [vmem:[%s7273_s0 + $0x8] sm:$0xff] }
 0x217   :  { %5135 = vrcp.f32 %v599_v48 }
 0x21f   :  { %v5132_v59 = vpop.eup %5131 }
 0x220   :  { %v5134_v4 = vpop.eup %5133  ;;  %v603_v5 = vmul.f32 %v5132_v59, %v5130_v24 }
 0x221   :  { %v602_v61 = vmul.f32 0.0, %v5134_v4 }
 0x223   :  { %v6439_v32 = vadd.f32 %v603_v5, %v602_v61  ;;  %v675_v21 = vpop.f32.mrb[4].mxu0  ;;  %v746_v29 = vpop.f32.mrb[4].mxu1 }
 0x224   :  { %v677_v8 = vpop.f32.mrb[5].mxu0  ;;  %v748_v28 = vpop.f32.mrb[5].mxu1 }
 0x225   :  { %5137 = vtanh.f32 %v6439_v32  ;;  %v755_v14 = vcombine.low %v675_v21, %v677_v8  ;;  %v756_v15 = vcombine.low %v746_v29, %v748_v28  ;;  %v5136_v5 = vpop.eup %5135 }
 0x227   :  { %v763_v3 = vrot.slane %v755_v14, %v7515_v62  ;;  %v770_v7 = vrot.slane %v756_v15, %v7515_v62 }
 0x229   :  { %v771_v2 = vcombine.low %v763_v3, %v770_v7 }
 0x22b   :  { %v773_v24 = vadd.f32 %v3363_v47, %v771_v2 }
 0x22d   :  { %v3364_v59 = vmul.f32 -1.442695, %v773_v24  ;;  %v781_v4 = vrot.slane %v773_v24, 2  ;;  %v792_v28 = vrot.slane %v773_v24, 6  ;;  %v789_v8 = vrot.slane %v773_v24, 4 }
 0x22f   :  { %v5138_v48 = vpop.eup %5137  ;;  %5139 = vpow2.f32 %v3364_v59  ;;  %v3365_v61 = vmul.f32 -1.442695, %v781_v4  ;;  %v3366_v21 = vmul.f32 -1.442695, %v792_v28 }
 0x230   :  { %v606_v42 = vmul.f32 %v5138_v48, %v5136_v5 }
 0x231   :  { %5141 = vpow2.f32 %v3365_v61 }
 0x232   :  { %869 = vmatprep.mubr.f32.mxu0 %v606_v42  ;;  %940 = vmatprep.mubr.f32.mxu1 %v606_v42  ;;  %5143 = vpow2.f32 %v3366_v21  ;;  %v7517_v21 = vld [vmem:[#allocation9_spill] sm:$0xff] }
 0x239   :  { %v5140_v29 = vpop.eup %5139 }
 0x23a   :  { %v777_v14 = vadd.f32 1.0, %v5140_v29  ;;  %v7518_v29 = vld [vmem:[#allocation10_spill] sm:$0xff] }
 0x23b   :  { %v5142_v15 = vpop.eup %5141 }
 0x23c   :  { %5145 = vrcp.f32 %v777_v14  ;;  %v786_v3 = vadd.f32 1.0, %v5142_v15  ;;  %v5144_v7 = vpop.eup %5143  ;;  %v7520_v14 = vld [vmem:[#allocation12_spill] sm:$0xff]  ;;  %v7521_v15 = vld [vmem:[#allocation13_spill] sm:$0xff] }
 0x23d   :  { %5147 = vtanh.f32 %v789_v8  ;;  %v797_v4 = vadd.f32 1.0, %v5144_v7  ;;  %v7519_v8 = vld [vmem:[#allocation11_spill] sm:$0xff] }
 0x23e   :  { %5149 = vrcp.f32 %v786_v3  ;;  %v7522_v3 = vld [vmem:[#allocation14_spill] sm:$0xff]  ;;  %v7523_v7 = vld [vmem:[#allocation15_spill] sm:$0xff] }
 0x23f   :  { %5151 = vrcp.f32 %v797_v4  ;;  %v7527_v4 = vld [vmem:[#allocation19_spill] sm:$0xff] }
 0x246   :  { %v5146_v47 = vpop.eup %5145 }
 0x247   :  { %v5148_v2 = vpop.eup %5147 }
 0x248   :  { %v5150_v59 = vpop.eup %5149  ;;  %v801_v48 = vmul.f32 %v5148_v2, %v5146_v47  ;;  %v7524_v47 = vld [vmem:[#allocation16_spill] sm:$0xff]  ;;  %v7525_v2 = vld [vmem:[#allocation17_spill] sm:$0xff] }
 0x249   :  { %v800_v5 = vmul.f32 %v5150_v59, %v6319_v30  ;;  %v5152_v24 = vpop.eup %5151  ;;  %v7516_v30 = vld [vmem:[#allocation8_spill] sm:$0xff]  ;;  %v7526_v59 = vld [vmem:[#allocation18_spill] sm:$0xff] }
 0x24b   :  { %v6448_v42 = vadd.f32 %v801_v48, %v800_v5  ;;  %v7528_v5 = vld [vmem:[#allocation20_spill] sm:$0xff]  ;;  %v7529_v48 = vld [vmem:[#allocation21_spill] sm:$0xff] }
 0x24d   :  { %5153 = vtanh.f32 %v6448_v42 }
 0x257   :  { %v5154_v61 = vpop.eup %5153 }
 0x258   :  { %v804_v28 = vmul.f32 %v5154_v61, %v5152_v24  ;;  %v7530_v24 = vld [vmem:[#allocation22_spill] sm:$0xff]  ;;  %v7531_v61 = vld [vmem:[#allocation23_spill] sm:$0xff] }
 0x25a   :  { %870 = vmatmul.mubr.f32.vlgmr.msra.gmra.mrb[6].mxu0 %v804_v28  ;;  %941 = vmatmul.mubr.f32.vlgmr.msra.gmra.mrb[6].mxu1 %v804_v28 }
 0x25b   :  { %3905 = vmatpush1.bf16.msra.mxu0 %v5461_v9  ;;  %3937 = vmatpush1.bf16.msra.mxu1 %v5473_v13 }
 0x25c   :  { %3907 = vmatprep.subr.bf16.mxu0 %v5486_v17  ;;  %3939 = vmatprep.subr.bf16.mxu1 %v5488_v18 }
 0x25d   :  { %1037 = vmatprep.mubr.f32.mxu0 %v7461_v58  ;;  %1108 = vmatprep.mubr.f32.mxu1 %v7461_v58 }
 0x25f   :  { %3909 = vmatpush1.bf16.msra.mxu0 %v5500_v22  ;;  %3941 = vmatpush1.bf16.msra.mxu1 %v5513_v26 }
 0x260   :  { %3911 = vmatprep.subr.bf16.mxu0 %v5515_v27  ;;  %3943 = vmatprep.subr.bf16.mxu1 %v5526_v31 }
 0x263   :  { %3913 = vmatpush1.bf16.msra.mxu0 %v5538_v35  ;;  %3945 = vmatpush1.bf16.msra.mxu1 %v5551_v39 }
 0x264   :  { %3915 = vmatprep.subr.bf16.mxu0 %v5553_v40  ;;  %3947 = vmatprep.subr.bf16.mxu1 %v5565_v44 }
 0x267   :  { %3917 = vmatpush1.bf16.msra.mxu0 %v5586_v51  ;;  %3949 = vmatpush1.bf16.msra.mxu1 %v5590_v52 }
 0x268   :  { %3919 = vmatprep.subr.bf16.mxu0 %v5592_v53  ;;  %3951 = vmatprep.subr.bf16.mxu1 %v5604_v57 }
 0x26b   :  { %3921 = vmatpush1.bf16.msra.mxu0 %v5622_v63  ;;  %3953 = vmatpush1.bf16.msra.mxu1 %v5626_v0 }
 0x26c   :  { %3923 = vmatprep.subr.bf16.mxu0 %v5628_v1  ;;  %3955 = vmatprep.subr.bf16.mxu1 %v5640_v6 }
 0x26f   :  { %3925 = vmatpush1.bf16.msra.mxu0 %v5658_v16  ;;  %3957 = vmatpush1.bf16.msra.mxu1 %v5662_v19 }
 0x270   :  { %3927 = vmatprep.subr.bf16.mxu0 %v5664_v20  ;;  %3959 = vmatprep.subr.bf16.mxu1 %v5676_v25 }
 0x273   :  { %3929 = vmatpush1.bf16.msra.mxu0 %v5694_v34  ;;  %3961 = vmatpush1.bf16.msra.mxu1 %v5698_v36 }
 0x274   :  { %3931 = vmatprep.subr.bf16.mxu0 %v5700_v37  ;;  %3963 = vmatprep.subr.bf16.mxu1 %v5712_v43 }
 0x277   :  { %3933 = vmatpush1.bf16.msra.mxu0 %v5730_v50  ;;  %3965 = vmatpush1.bf16.msra.mxu1 %v5737_v55 }
 0x278   :  { %3967 = vmatprep.subr.bf16.mxu0 %v5739_v56  ;;  %4031 = vmatprep.subr.bf16.mxu1 %v5748_v60 }
 0x27a   :  { %1038 = vmatmul.mubr.f32.vlgmr.msra.gmra.mrb[8].mxu0 %v804_v28  ;;  %1109 = vmatmul.mubr.f32.vlgmr.msra.gmra.mrb[8].mxu1 %v804_v28  ;;  %v7532_v28 = vld [vmem:[#allocation24_spill] sm:$0xff] }
 0x27b   :  { %3969 = vmatpush1.bf16.msra.mxu0 %v5766_v10  ;;  %4033 = vmatpush1.bf16.msra.mxu1 %v5770_v11 }
 0x27c   :  { %3971 = vmatprep.subr.bf16.mxu0 %v5772_v12  ;;  %4035 = vmatprep.subr.bf16.mxu1 %v5784_v23 }
 0x27f   :  { %3973 = vmatpush1.bf16.msra.mxu0 %v5804_v33  ;;  %4037 = vmatpush1.bf16.msra.mxu1 %v5808_v38 }
 0x280   :  { %3975 = vmatprep.subr.bf16.mxu0 %v5810_v41  ;;  %4039 = vmatprep.subr.bf16.mxu1 %v5819_v46 }
 0x283   :  { %3977 = vmatpush1.bf16.msra.mxu0 %v5830_v49  ;;  %4041 = vmatpush1.bf16.msra.mxu1 %v5834_v54 }
 0x284   :  { %3979 = vmatprep.subr.bf16.mxu0 %v7516_v30  ;;  %4043 = vmatprep.subr.bf16.mxu1 %v7517_v21 }
 0x287   :  { %3981 = vmatpush1.bf16.msra.mxu0 %v7518_v29  ;;  %4045 = vmatpush1.bf16.msra.mxu1 %v7519_v8 }
 0x288   :  { %3983 = vmatprep.subr.bf16.mxu0 %v7520_v14  ;;  %4047 = vmatprep.subr.bf16.mxu1 %v7521_v15  ;;  %v7570_v15 = vld [vmem:[#allocation60_spill] sm:$0xff] }
 0x28b   :  { %3985 = vmatpush1.bf16.msra.mxu0 %v7522_v3  ;;  %4049 = vmatpush1.bf16.msra.mxu1 %v7523_v7  ;;  %v7533_v3 = vld [vmem:[#allocation25_spill] sm:$0xff]  ;;  %v7534_v7 = vld [vmem:[#allocation26_spill] sm:$0xff] }
 0x28c   :  { %3987 = vmatprep.subr.bf16.mxu0 %v7524_v47  ;;  %4051 = vmatprep.subr.bf16.mxu1 %v7525_v2  ;;  %v7535_v47 = vld [vmem:[#allocation27_spill] sm:$0xff]  ;;  %v7536_v2 = vld [vmem:[#allocation28_spill] sm:$0xff] }
 0x28f   :  { %3989 = vmatpush1.bf16.msra.mxu0 %v7526_v59  ;;  %4053 = vmatpush1.bf16.msra.mxu1 %v7527_v4  ;;  %v7537_v59 = vld [vmem:[#allocation29_spill] sm:$0xff]  ;;  %v7538_v4 = vld [vmem:[#allocation30_spill] sm:$0xff] }
 0x290   :  { %3991 = vmatprep.subr.bf16.mxu0 %v7528_v5  ;;  %4055 = vmatprep.subr.bf16.mxu1 %v7529_v48  ;;  %v7539_v5 = vld [vmem:[#allocation31_spill] sm:$0xff]  ;;  %v7540_v48 = vld [vmem:[#allocation32_spill] sm:$0xff] }
 0x293   :  { %3993 = vmatpush1.bf16.msra.mxu0 %v7530_v24  ;;  %4057 = vmatpush1.bf16.msra.mxu1 %v7531_v61  ;;  %v7541_v24 = vld [vmem:[#allocation33_spill] sm:$0xff]  ;;  %v7542_v61 = vld [vmem:[#allocation34_spill] sm:$0xff] }
 0x294   :  { %3995 = vmatprep.subr.bf16.mxu0 %v7532_v28  ;;  %4059 = vmatprep.subr.bf16.mxu1 %v7533_v3  ;;  %v7543_v28 = vld [vmem:[#allocation35_spill] sm:$0xff]  ;;  %v7544_v3 = vld [vmem:[#allocation36_spill] sm:$0xff] }
 0x297   :  { %3997 = vmatpush1.bf16.msra.mxu0 %v7534_v7  ;;  %4061 = vmatpush1.bf16.msra.mxu1 %v7535_v47  ;;  %v7545_v7 = vld [vmem:[#allocation37_spill] sm:$0xff]  ;;  %v7546_v47 = vld [vmem:[#allocation38_spill] sm:$0xff] }
 0x298   :  { %3999 = vmatprep.subr.bf16.mxu0 %v7536_v2  ;;  %4063 = vmatprep.subr.bf16.mxu1 %v7537_v59  ;;  %v7547_v2 = vld [vmem:[#allocation39_spill] sm:$0xff]  ;;  %v7548_v59 = vld [vmem:[#allocation40_spill] sm:$0xff] }
 0x29b   :  { %4001 = vmatpush1.bf16.msra.mxu0 %v7538_v4  ;;  %4065 = vmatpush1.bf16.msra.mxu1 %v7539_v5  ;;  %v7549_v4 = vld [vmem:[#allocation41_spill] sm:$0xff]  ;;  %v7550_v5 = vld [vmem:[#allocation42_spill] sm:$0xff] }
 0x29c   :  { %4003 = vmatprep.subr.bf16.mxu0 %v7540_v48  ;;  %4067 = vmatprep.subr.bf16.mxu1 %v7541_v24  ;;  %v7551_v48 = vld [vmem:[#allocation43_spill] sm:$0xff]  ;;  %v7552_v24 = vld [vmem:[#allocation44_spill] sm:$0xff] }
 0x29f   :  { %4005 = vmatpush1.bf16.msra.mxu0 %v7542_v61  ;;  %4069 = vmatpush1.bf16.msra.mxu1 %v7543_v28  ;;  %v7553_v61 = vld [vmem:[#allocation45_spill] sm:$0xff]  ;;  %v7554_v28 = vld [vmem:[#allocation46_spill] sm:$0xff] }
 0x2a0   :  { %4007 = vmatprep.subr.bf16.mxu0 %v7544_v3  ;;  %4071 = vmatprep.subr.bf16.mxu1 %v7545_v7  ;;  %v7555_v3 = vld [vmem:[#allocation47_spill] sm:$0xff]  ;;  %v7556_v7 = vld [vmem:[#allocation48_spill] sm:$0xff] }
 0x2a3   :  { %4009 = vmatpush1.bf16.msra.mxu0 %v7546_v47  ;;  %4073 = vmatpush1.bf16.msra.mxu1 %v7547_v2  ;;  %v7557_v47 = vld [vmem:[#allocation49_spill] sm:$0xff]  ;;  %v7558_v2 = vld [vmem:[#allocation50_spill] sm:$0xff] }
 0x2a4   :  { %4011 = vmatprep.subr.bf16.mxu0 %v7548_v59  ;;  %4075 = vmatprep.subr.bf16.mxu1 %v7549_v4  ;;  %v7559_v59 = vld [vmem:[#allocation51_spill] sm:$0xff]  ;;  %v7560_v4 = vld [vmem:[#allocation52_spill] sm:$0xff] }
 0x2a7   :  { %4013 = vmatpush1.bf16.msra.mxu0 %v7550_v5  ;;  %4077 = vmatpush1.bf16.msra.mxu1 %v7551_v48  ;;  %v7561_v5 = vld [vmem:[#allocation53_spill] sm:$0xff]  ;;  %v7562_v48 = vld [vmem:[#allocation54_spill] sm:$0xff] }
 0x2a8   :  { %4015 = vmatprep.subr.bf16.mxu0 %v7552_v24  ;;  %4079 = vmatprep.subr.bf16.mxu1 %v7553_v61  ;;  %v7563_v24 = vld [vmem:[#allocation55_spill] sm:$0xff]  ;;  %v7564_v61 = vld [vmem:[#allocation56_spill] sm:$0xff] }
 0x2ab   :  { %4017 = vmatpush1.bf16.msra.mxu0 %v7554_v28  ;;  %4081 = vmatpush1.bf16.msra.mxu1 %v7555_v3  ;;  %v7565_v28 = vld [vmem:[#allocation57_spill] sm:$0xff]  ;;  %v7566_v3 = vld [vmem:[#allocation58_spill] sm:$0xff] }
 0x2ac   :  { %4019 = vmatprep.subr.bf16.mxu0 %v7556_v7  ;;  %4083 = vmatprep.subr.bf16.mxu1 %v7557_v47  ;;  %v7567_v7 = vld [vmem:[#allocation59_spill] sm:$0xff]  ;;  %v7568_v47 = vld [vmem:[#allocation5_spill] sm:$0xff] }
 0x2af   :  { %4021 = vmatpush1.bf16.msra.mxu0 %v7558_v2  ;;  %4085 = vmatpush1.bf16.msra.mxu1 %v7559_v59  ;;  %v7569_v2 = vld [vmem:[#allocation6_spill] sm:$0xff] }
 0x2b0   :  { %4023 = vmatprep.subr.bf16.mxu0 %v7560_v4  ;;  %4087 = vmatprep.subr.bf16.mxu1 %v7561_v5 }
 0x2b3   :  { %4025 = vmatpush1.bf16.msra.mxu0 %v7562_v48  ;;  %4089 = vmatpush1.bf16.msra.mxu1 %v7563_v24 }
 0x2b4   :  { %4027 = vmatprep.subr.bf16.mxu0 %v7564_v61  ;;  %4091 = vmatprep.subr.bf16.mxu1 %v7565_v28  ;;  %v7571_v28 = vld [vmem:[#allocation62_spill] sm:$0xff] }
 0x2b7   :  { %4029 = vmatpush1.bf16.msra.mxu0 %v7566_v3  ;;  %4093 = vmatpush1.bf16.msra.mxu1 %v7567_v7  ;;  %v7572_v7 = vld [vmem:[#allocation63_spill] sm:$0xff] }
 0x2b8   :  { %4095 = vmatprep.subr.bf16.mxu0 %v7568_v47  ;;  %4127 = vmatprep.subr.bf16.mxu1 %v7569_v2 }
 0x32d   :  { %v871_v59 = vpop.f32.mrb[6].mxu0  ;;  %v942_v4 = vpop.f32.mrb[6].mxu1 }
 0x32e   :  { %v872_v5 = vadd.f32 %v871_v59, %v7570_v15  ;;  %v873_v14 = vpop.f32.mrb[7].mxu0  ;;  %v944_v48 = vpop.f32.mrb[7].mxu1  ;;  %v943_v21 = vadd.f32 %v942_v4, %v7572_v7 }
 0x32f   :  { %v874_v24 = vadd.f32 %v873_v14, %v6427_v45  ;;  %v945_v3 = vadd.f32 %v944_v48, %v7571_v28 }
 0x330   :  { %v3367_v8 = vmul.f32 -1.442695, %v872_v5 }
 0x331   :  { %v3368_v61 = vmul.f32 -1.442695, %v874_v24  ;;  %v3369_v29 = vmul.f32 -1.442695, %v945_v3 }
 0x332   :  { %5155 = vpow2.f32 %v3367_v8 }
 0x333   :  { %5157 = vpow2.f32 %v3368_v61 }
 0x334   :  { %5159 = vpow2.f32 %v3369_v29 }
 0x335   :  { %5161 = vtanh.f32 %v943_v21 }
 0x33c   :  { %v5156_v47 = vpop.eup %5155 }
 0x33d   :  { %v5158_v30 = vpop.eup %5157  ;;  %v950_v2 = vadd.f32 1.0, %v5156_v47 }
 0x33e   :  { %v956_v54 = vadd.f32 1.0, %v5158_v30  ;;  %v5160_v59 = vpop.eup %5159 }
 0x33f   :  { %5163 = vrcp.f32 %v950_v2  ;;  %v5162_v15 = vpop.eup %5161  ;;  %v963_v8 = vadd.f32 1.0, %v5160_v59 }
 0x340   :  { %5165 = vrcp.f32 %v956_v54 }
 0x341   :  { %5167 = vrcp.f32 %v963_v8 }
 0x349   :  { %v5164_v14 = vpop.eup %5163 }
 0x34a   :  { %v5166_v5 = vpop.eup %5165  ;;  %v967_v24 = vmul.f32 %v5164_v14, %v5162_v15  ;;  %v3370_v15 = vld [vmem:[%s7273_s0 + $0x10] sm:$0xff] }
 0x34b   :  { %v966_v61 = vmul.f32 %v5166_v5, %v6439_v32  ;;  %v5168_v5 = vpop.eup %5167 }
 0x34d   :  { %v1039_v48 = vpop.f32.mrb[8].mxu0  ;;  %v1110_v3 = vpop.f32.mrb[8].mxu1  ;;  %v6554_v28 = vadd.f32 %v967_v24, %v966_v61 }
 0x34e   :  { %v1041_v4 = vpop.f32.mrb[9].mxu0  ;;  %v1112_v47 = vpop.f32.mrb[9].mxu1 }
 0x34f   :  { %v1119_v29 = vcombine.low %v1039_v48, %v1041_v4  ;;  %v1120_v21 = vcombine.low %v1110_v3, %v1112_v47  ;;  %5169 = vtanh.f32 %v6554_v28 }
 0x351   :  { %v1127_v54 = vrot.slane %v1119_v29, %v7515_v62  ;;  %v1134_v30 = vrot.slane %v1120_v21, %v7515_v62 }
 0x353   :  { %v1135_v32 = vcombine.low %v1127_v54, %v1134_v30 }
 0x355   :  { %v1137_v2 = vadd.f32 %v3370_v15, %v1135_v32 }
 0x357   :  { %v3371_v59 = vmul.f32 -1.442695, %v1137_v2  ;;  %v1145_v14 = vrot.slane %v1137_v2, 2  ;;  %v1156_v48 = vrot.slane %v1137_v2, 6  ;;  %v1153_v47 = vrot.slane %v1137_v2, 4 }
 0x359   :  { %v5170_v24 = vpop.eup %5169  ;;  %5171 = vpow2.f32 %v3371_v59  ;;  %v3372_v8 = vmul.f32 -1.442695, %v1145_v14  ;;  %v3373_v3 = vmul.f32 -1.442695, %v1156_v48 }
 0x35a   :  { %v970_v61 = vmul.f32 %v5170_v24, %v5168_v5 }
 0x35b   :  { %5173 = vpow2.f32 %v3372_v8 }
 0x35c   :  { %1233 = vmatprep.mubr.f32.mxu0 %v970_v61  ;;  %1304 = vmatprep.mubr.f32.mxu1 %v970_v61  ;;  %5175 = vpow2.f32 %v3373_v3  ;;  %v7574_v3 = vld [vmem:[#allocation8_spill] sm:$0xff] }
 0x363   :  { %v5172_v4 = vpop.eup %5171 }
 0x364   :  { %v1141_v29 = vadd.f32 1.0, %v5172_v4  ;;  %v7575_v4 = vld [vmem:[#allocation9_spill] sm:$0xff] }
 0x365   :  { %v5174_v21 = vpop.eup %5173 }
 0x366   :  { %5177 = vrcp.f32 %v1141_v29  ;;  %v1150_v54 = vadd.f32 1.0, %v5174_v21  ;;  %v5176_v30 = vpop.eup %5175  ;;  %v7577_v29 = vld [vmem:[#allocation11_spill] sm:$0xff]  ;;  %v7578_v21 = vld [vmem:[#allocation12_spill] sm:$0xff] }
 0x367   :  { %5179 = vtanh.f32 %v1153_v47  ;;  %v1161_v14 = vadd.f32 1.0, %v5176_v30  ;;  %v7576_v47 = vld [vmem:[#allocation10_spill] sm:$0xff] }
 0x368   :  { %5181 = vrcp.f32 %v1150_v54  ;;  %v7579_v54 = vld [vmem:[#allocation13_spill] sm:$0xff]  ;;  %v7580_v30 = vld [vmem:[#allocation14_spill] sm:$0xff] }
 0x369   :  { %5183 = vrcp.f32 %v1161_v14  ;;  %v7584_v14 = vld [vmem:[#allocation18_spill] sm:$0xff] }
 0x370   :  { %v5178_v15 = vpop.eup %5177 }
 0x371   :  { %v5180_v32 = vpop.eup %5179 }
 0x372   :  { %v5182_v59 = vpop.eup %5181  ;;  %v1165_v24 = vmul.f32 %v5180_v32, %v5178_v15  ;;  %v7581_v15 = vld [vmem:[#allocation15_spill] sm:$0xff]  ;;  %v7582_v32 = vld [vmem:[#allocation16_spill] sm:$0xff] }
 0x373   :  { %v1164_v5 = vmul.f32 %v5182_v59, %v6448_v42  ;;  %v5184_v2 = vpop.eup %5183  ;;  %v7573_v42 = vld [vmem:[#allocation7_spill] sm:$0xff]  ;;  %v7583_v59 = vld [vmem:[#allocation17_spill] sm:$0xff] }
 0x375   :  { %v6563_v8 = vadd.f32 %v1165_v24, %v1164_v5  ;;  %v7585_v5 = vld [vmem:[#allocation19_spill] sm:$0xff]  ;;  %v7586_v24 = vld [vmem:[#allocation20_spill] sm:$0xff] }
 0x377   :  { %5185 = vtanh.f32 %v6563_v8 }
 0x381   :  { %v5186_v61 = vpop.eup %5185 }
 0x382   :  { %v1168_v48 = vmul.f32 %v5186_v61, %v5184_v2  ;;  %v7587_v2 = vld [vmem:[#allocation21_spill] sm:$0xff]  ;;  %v7588_v61 = vld [vmem:[#allocation22_spill] sm:$0xff] }
 0x384   :  { %1234 = vmatmul.mubr.f32.vlgmr.msra.gmra.mrb[10].mxu0 %v1168_v48  ;;  %1305 = vmatmul.mubr.f32.vlgmr.msra.gmra.mrb[10].mxu1 %v1168_v48 }
 0x385   :  { %4097 = vmatpush1.bf16.msra.mxu0 %v5461_v9  ;;  %4129 = vmatpush1.bf16.msra.mxu1 %v5473_v13 }
 0x386   :  { %4099 = vmatprep.subr.bf16.mxu0 %v5486_v17  ;;  %4131 = vmatprep.subr.bf16.mxu1 %v5488_v18 }
 0x387   :  { %1401 = vmatprep.mubr.f32.mxu0 %v7461_v58  ;;  %1472 = vmatprep.mubr.f32.mxu1 %v7461_v58 }
 0x389   :  { %4101 = vmatpush1.bf16.msra.mxu0 %v5500_v22  ;;  %4133 = vmatpush1.bf16.msra.mxu1 %v5513_v26 }
 0x38a   :  { %4103 = vmatprep.subr.bf16.mxu0 %v5515_v27  ;;  %4135 = vmatprep.subr.bf16.mxu1 %v5526_v31 }
 0x38d   :  { %4105 = vmatpush1.bf16.msra.mxu0 %v5538_v35  ;;  %4137 = vmatpush1.bf16.msra.mxu1 %v5551_v39 }
 0x38e   :  { %4107 = vmatprep.subr.bf16.mxu0 %v5553_v40  ;;  %4139 = vmatprep.subr.bf16.mxu1 %v5565_v44 }
 0x391   :  { %4109 = vmatpush1.bf16.msra.mxu0 %v5586_v51  ;;  %4141 = vmatpush1.bf16.msra.mxu1 %v5590_v52 }
 0x392   :  { %4111 = vmatprep.subr.bf16.mxu0 %v5592_v53  ;;  %4143 = vmatprep.subr.bf16.mxu1 %v5604_v57 }
 0x395   :  { %4113 = vmatpush1.bf16.msra.mxu0 %v5622_v63  ;;  %4145 = vmatpush1.bf16.msra.mxu1 %v5626_v0 }
 0x396   :  { %4115 = vmatprep.subr.bf16.mxu0 %v5628_v1  ;;  %4147 = vmatprep.subr.bf16.mxu1 %v5640_v6 }
 0x399   :  { %4117 = vmatpush1.bf16.msra.mxu0 %v5658_v16  ;;  %4149 = vmatpush1.bf16.msra.mxu1 %v5662_v19 }
 0x39a   :  { %4119 = vmatprep.subr.bf16.mxu0 %v5664_v20  ;;  %4151 = vmatprep.subr.bf16.mxu1 %v5676_v25 }
 0x39d   :  { %4121 = vmatpush1.bf16.msra.mxu0 %v5694_v34  ;;  %4153 = vmatpush1.bf16.msra.mxu1 %v5698_v36 }
 0x39e   :  { %4123 = vmatprep.subr.bf16.mxu0 %v5700_v37  ;;  %4155 = vmatprep.subr.bf16.mxu1 %v5712_v43 }
 0x3a1   :  { %4125 = vmatpush1.bf16.msra.mxu0 %v5730_v50  ;;  %4157 = vmatpush1.bf16.msra.mxu1 %v5737_v55 }
 0x3a2   :  { %4159 = vmatprep.subr.bf16.mxu0 %v5739_v56  ;;  %4223 = vmatprep.subr.bf16.mxu1 %v5748_v60 }
 0x3a4   :  { %1402 = vmatmul.mubr.f32.vlgmr.msra.gmra.mrb[12].mxu0 %v1168_v48  ;;  %1473 = vmatmul.mubr.f32.vlgmr.msra.gmra.mrb[12].mxu1 %v1168_v48  ;;  %v7589_v48 = vld [vmem:[#allocation23_spill] sm:$0xff] }
 0x3a5   :  { %4161 = vmatpush1.bf16.msra.mxu0 %v5766_v10  ;;  %4225 = vmatpush1.bf16.msra.mxu1 %v5770_v11 }
 0x3a6   :  { %4163 = vmatprep.subr.bf16.mxu0 %v5772_v12  ;;  %4227 = vmatprep.subr.bf16.mxu1 %v5784_v23 }
 0x3a9   :  { %4165 = vmatpush1.bf16.msra.mxu0 %v5804_v33  ;;  %4229 = vmatpush1.bf16.msra.mxu1 %v5808_v38 }
 0x3aa   :  { %4167 = vmatprep.subr.bf16.mxu0 %v5810_v41  ;;  %4231 = vmatprep.subr.bf16.mxu1 %v5819_v46 }
 0x3ad   :  { %4169 = vmatpush1.bf16.msra.mxu0 %v5830_v49  ;;  %4233 = vmatpush1.bf16.msra.mxu1 %v7573_v42 }
 0x3ae   :  { %4171 = vmatprep.subr.bf16.mxu0 %v7574_v3  ;;  %4235 = vmatprep.subr.bf16.mxu1 %v7575_v4 }
 0x3b1   :  { %4173 = vmatpush1.bf16.msra.mxu0 %v7576_v47  ;;  %4237 = vmatpush1.bf16.msra.mxu1 %v7577_v29 }
 0x3b2   :  { %4175 = vmatprep.subr.bf16.mxu0 %v7578_v21  ;;  %4239 = vmatprep.subr.bf16.mxu1 %v7579_v54  ;;  %v7590_v54 = vld [vmem:[#allocation24_spill] sm:$0xff] }
 0x3b3   :  { %v7628_v21 = vld [vmem:[#allocation60_spill] sm:$0xff] }
 0x3b5   :  { %4177 = vmatpush1.bf16.msra.mxu0 %v7580_v30  ;;  %4241 = vmatpush1.bf16.msra.mxu1 %v7581_v15  ;;  %v7591_v30 = vld [vmem:[#allocation25_spill] sm:$0xff]  ;;  %v7592_v15 = vld [vmem:[#allocation26_spill] sm:$0xff] }
 0x3b6   :  { %4179 = vmatprep.subr.bf16.mxu0 %v7582_v32  ;;  %4243 = vmatprep.subr.bf16.mxu1 %v7583_v59  ;;  %v7593_v32 = vld [vmem:[#allocation27_spill] sm:$0xff]  ;;  %v7594_v59 = vld [vmem:[#allocation28_spill] sm:$0xff] }
 0x3b9   :  { %4181 = vmatpush1.bf16.msra.mxu0 %v7584_v14  ;;  %4245 = vmatpush1.bf16.msra.mxu1 %v7585_v5  ;;  %v7595_v14 = vld [vmem:[#allocation29_spill] sm:$0xff]  ;;  %v7596_v5 = vld [vmem:[#allocation30_spill] sm:$0xff] }
 0x3ba   :  { %4183 = vmatprep.subr.bf16.mxu0 %v7586_v24  ;;  %4247 = vmatprep.subr.bf16.mxu1 %v7587_v2  ;;  %v7597_v24 = vld [vmem:[#allocation31_spill] sm:$0xff]  ;;  %v7598_v2 = vld [vmem:[#allocation32_spill] sm:$0xff] }
 0x3bd   :  { %4185 = vmatpush1.bf16.msra.mxu0 %v7588_v61  ;;  %4249 = vmatpush1.bf16.msra.mxu1 %v7589_v48  ;;  %v7599_v61 = vld [vmem:[#allocation33_spill] sm:$0xff]  ;;  %v7600_v48 = vld [vmem:[#allocation34_spill] sm:$0xff] }
 0x3be   :  { %4187 = vmatprep.subr.bf16.mxu0 %v7590_v54  ;;  %4251 = vmatprep.subr.bf16.mxu1 %v7591_v30  ;;  %v7601_v54 = vld [vmem:[#allocation35_spill] sm:$0xff]  ;;  %v7602_v30 = vld [vmem:[#allocation36_spill] sm:$0xff] }
 0x3c1   :  { %4189 = vmatpush1.bf16.msra.mxu0 %v7592_v15  ;;  %4253 = vmatpush1.bf16.msra.mxu1 %v7593_v32  ;;  %v7603_v15 = vld [vmem:[#allocation37_spill] sm:$0xff]  ;;  %v7604_v32 = vld [vmem:[#allocation38_spill] sm:$0xff] }
 0x3c2   :  { %4191 = vmatprep.subr.bf16.mxu0 %v7594_v59  ;;  %4255 = vmatprep.subr.bf16.mxu1 %v7595_v14  ;;  %v7605_v59 = vld [vmem:[#allocation39_spill] sm:$0xff]  ;;  %v7606_v14 = vld [vmem:[#allocation40_spill] sm:$0xff] }
 0x3c5   :  { %4193 = vmatpush1.bf16.msra.mxu0 %v7596_v5  ;;  %4257 = vmatpush1.bf16.msra.mxu1 %v7597_v24  ;;  %v7607_v5 = vld [vmem:[#allocation41_spill] sm:$0xff]  ;;  %v7608_v24 = vld [vmem:[#allocation42_spill] sm:$0xff] }
 0x3c6   :  { %4195 = vmatprep.subr.bf16.mxu0 %v7598_v2  ;;  %4259 = vmatprep.subr.bf16.mxu1 %v7599_v61  ;;  %v7609_v2 = vld [vmem:[#allocation43_spill] sm:$0xff]  ;;  %v7610_v61 = vld [vmem:[#allocation44_spill] sm:$0xff] }
 0x3c9   :  { %4197 = vmatpush1.bf16.msra.mxu0 %v7600_v48  ;;  %4261 = vmatpush1.bf16.msra.mxu1 %v7601_v54  ;;  %v7611_v48 = vld [vmem:[#allocation45_spill] sm:$0xff]  ;;  %v7612_v54 = vld [vmem:[#allocation46_spill] sm:$0xff] }
 0x3ca   :  { %4199 = vmatprep.subr.bf16.mxu0 %v7602_v30  ;;  %4263 = vmatprep.subr.bf16.mxu1 %v7603_v15  ;;  %v7613_v30 = vld [vmem:[#allocation47_spill] sm:$0xff]  ;;  %v7614_v15 = vld [vmem:[#allocation48_spill] sm:$0xff] }
 0x3cd   :  { %4201 = vmatpush1.bf16.msra.mxu0 %v7604_v32  ;;  %4265 = vmatpush1.bf16.msra.mxu1 %v7605_v59  ;;  %v7615_v32 = vld [vmem:[#allocation49_spill] sm:$0xff]  ;;  %v7616_v59 = vld [vmem:[#allocation50_spill] sm:$0xff] }
 0x3ce   :  { %4203 = vmatprep.subr.bf16.mxu0 %v7606_v14  ;;  %4267 = vmatprep.subr.bf16.mxu1 %v7607_v5  ;;  %v7617_v14 = vld [vmem:[#allocation51_spill] sm:$0xff]  ;;  %v7618_v5 = vld [vmem:[#allocation52_spill] sm:$0xff] }
 0x3d1   :  { %4205 = vmatpush1.bf16.msra.mxu0 %v7608_v24  ;;  %4269 = vmatpush1.bf16.msra.mxu1 %v7609_v2  ;;  %v7619_v24 = vld [vmem:[#allocation53_spill] sm:$0xff]  ;;  %v7620_v2 = vld [vmem:[#allocation54_spill] sm:$0xff] }
 0x3d2   :  { %4207 = vmatprep.subr.bf16.mxu0 %v7610_v61  ;;  %4271 = vmatprep.subr.bf16.mxu1 %v7611_v48  ;;  %v7621_v61 = vld [vmem:[#allocation55_spill] sm:$0xff]  ;;  %v7622_v48 = vld [vmem:[#allocation56_spill] sm:$0xff] }
 0x3d5   :  { %4209 = vmatpush1.bf16.msra.mxu0 %v7612_v54  ;;  %4273 = vmatpush1.bf16.msra.mxu1 %v7613_v30  ;;  %v7623_v54 = vld [vmem:[#allocation57_spill] sm:$0xff]  ;;  %v7624_v30 = vld [vmem:[#allocation58_spill] sm:$0xff] }
 0x3d6   :  { %4211 = vmatprep.subr.bf16.mxu0 %v7614_v15  ;;  %4275 = vmatprep.subr.bf16.mxu1 %v7615_v32  ;;  %v7625_v15 = vld [vmem:[#allocation59_spill] sm:$0xff]  ;;  %v7626_v32 = vld [vmem:[#allocation5_spill] sm:$0xff] }
 0x3d9   :  { %4213 = vmatpush1.bf16.msra.mxu0 %v7616_v59  ;;  %4277 = vmatpush1.bf16.msra.mxu1 %v7617_v14  ;;  %v7627_v59 = vld [vmem:[#allocation6_spill] sm:$0xff] }
 0x3da   :  { %4215 = vmatprep.subr.bf16.mxu0 %v7618_v5  ;;  %4279 = vmatprep.subr.bf16.mxu1 %v7619_v24 }
 0x3dd   :  { %4217 = vmatpush1.bf16.msra.mxu0 %v7620_v2  ;;  %4281 = vmatpush1.bf16.msra.mxu1 %v7621_v61 }
 0x3de   :  { %4219 = vmatprep.subr.bf16.mxu0 %v7622_v48  ;;  %4283 = vmatprep.subr.bf16.mxu1 %v7623_v54  ;;  %v7629_v54 = vld [vmem:[#allocation62_spill] sm:$0xff] }
 0x3e1   :  { %4221 = vmatpush1.bf16.msra.mxu0 %v7624_v30  ;;  %4285 = vmatpush1.bf16.msra.mxu1 %v7625_v15 }
 0x3e2   :  { %4287 = vmatprep.subr.bf16.mxu0 %v7626_v32  ;;  %4319 = vmatprep.subr.bf16.mxu1 %v7627_v59 }
 0x457   :  { %v1235_v14 = vpop.f32.mrb[10].mxu0  ;;  %v1306_v5 = vpop.f32.mrb[10].mxu1 }
 0x458   :  { %v1236_v24 = vadd.f32 %v1235_v14, %v7628_v21  ;;  %v1237_v29 = vpop.f32.mrb[11].mxu0  ;;  %v1308_v2 = vpop.f32.mrb[11].mxu1  ;;  %v1307_v15 = vadd.f32 %v1306_v5, %v7572_v7 }
 0x459   :  { %v1238_v61 = vadd.f32 %v1237_v29, %v6427_v45  ;;  %v1309_v30 = vadd.f32 %v1308_v2, %v7629_v54 }
 0x45a   :  { %v3374_v47 = vmul.f32 -1.442695, %v1236_v24 }
 0x45b   :  { %v3375_v48 = vmul.f32 -1.442695, %v1238_v61  ;;  %v3376_v4 = vmul.f32 -1.442695, %v1309_v30 }
 0x45c   :  { %5187 = vpow2.f32 %v3374_v47 }
 0x45d   :  { %5189 = vpow2.f32 %v3375_v48 }
 0x45e   :  { %5191 = vpow2.f32 %v3376_v4 }
 0x45f   :  { %5193 = vtanh.f32 %v1307_v15 }
 0x466   :  { %v5188_v32 = vpop.eup %5187 }
 0x467   :  { %v5190_v3 = vpop.eup %5189  ;;  %v1314_v59 = vadd.f32 1.0, %v5188_v32 }
 0x468   :  { %v1320_v42 = vadd.f32 1.0, %v5190_v3  ;;  %v5192_v14 = vpop.eup %5191 }
 0x469   :  { %5195 = vrcp.f32 %v1314_v59  ;;  %v5194_v21 = vpop.eup %5193  ;;  %v1327_v47 = vadd.f32 1.0, %v5192_v14 }
 0x46a   :  { %5197 = vrcp.f32 %v1320_v42 }
 0x46b   :  { %5199 = vrcp.f32 %v1327_v47 }
 0x473   :  { %v5196_v29 = vpop.eup %5195 }
 0x474   :  { %v5198_v24 = vpop.eup %5197  ;;  %v1331_v61 = vmul.f32 %v5196_v29, %v5194_v21  ;;  %v3377_v21 = vld [vmem:[%s7273_s0 + $0x18] sm:$0xff] }
 0x475   :  { %v1330_v48 = vmul.f32 %v5198_v24, %v6554_v28  ;;  %v5200_v24 = vpop.eup %5199 }
 0x477   :  { %v1403_v2 = vpop.f32.mrb[12].mxu0  ;;  %v1474_v30 = vpop.f32.mrb[12].mxu1  ;;  %v6669_v54 = vadd.f32 %v1331_v61, %v1330_v48 }
 0x478   :  { %v1405_v5 = vpop.f32.mrb[13].mxu0  ;;  %v1476_v32 = vpop.f32.mrb[13].mxu1 }
 0x479   :  { %v1483_v4 = vcombine.low %v1403_v2, %v1405_v5  ;;  %v1484_v15 = vcombine.low %v1474_v30, %v1476_v32  ;;  %5201 = vtanh.f32 %v6669_v54 }
 0x47b   :  { %v1491_v42 = vrot.slane %v1483_v4, %v7515_v62  ;;  %v1498_v3 = vrot.slane %v1484_v15, %v7515_v62 }
 0x47d   :  { %v1499_v28 = vcombine.low %v1491_v42, %v1498_v3 }
 0x47f   :  { %v1501_v59 = vadd.f32 %v3377_v21, %v1499_v28 }
 0x481   :  { %v3378_v14 = vmul.f32 -1.442695, %v1501_v59  ;;  %v1509_v29 = vrot.slane %v1501_v59, 2  ;;  %v1520_v2 = vrot.slane %v1501_v59, 6  ;;  %v1517_v32 = vrot.slane %v1501_v59, 4 }
 0x483   :  { %v5202_v61 = vpop.eup %5201  ;;  %5203 = vpow2.f32 %v3378_v14  ;;  %v3379_v47 = vmul.f32 -1.442695, %v1509_v29  ;;  %v3380_v30 = vmul.f32 -1.442695, %v1520_v2 }
 0x484   :  { %v1334_v48 = vmul.f32 %v5202_v61, %v5200_v24 }
 0x485   :  { %5205 = vpow2.f32 %v3379_v47 }
 0x486   :  { %1597 = vmatprep.mubr.f32.mxu0 %v1334_v48  ;;  %1668 = vmatprep.mubr.f32.mxu1 %v1334_v48  ;;  %5207 = vpow2.f32 %v3380_v30  ;;  %v7631_v30 = vld [vmem:[#allocation8_spill] sm:$0xff] }
 0x48d   :  { %v5204_v5 = vpop.eup %5203 }
 0x48e   :  { %v1505_v4 = vadd.f32 1.0, %v5204_v5  ;;  %v7632_v5 = vld [vmem:[#allocation9_spill] sm:$0xff] }
 0x48f   :  { %v5206_v15 = vpop.eup %5205 }
 0x490   :  { %5209 = vrcp.f32 %v1505_v4  ;;  %v1514_v42 = vadd.f32 1.0, %v5206_v15  ;;  %v5208_v3 = vpop.eup %5207  ;;  %v7634_v4 = vld [vmem:[#allocation11_spill] sm:$0xff]  ;;  %v7635_v15 = vld [vmem:[#allocation12_spill] sm:$0xff] }
 0x491   :  { %5211 = vtanh.f32 %v1517_v32  ;;  %v1525_v29 = vadd.f32 1.0, %v5208_v3  ;;  %v7633_v32 = vld [vmem:[#allocation10_spill] sm:$0xff] }
 0x492   :  { %5213 = vrcp.f32 %v1514_v42  ;;  %v7636_v42 = vld [vmem:[#allocation13_spill] sm:$0xff]  ;;  %v7637_v3 = vld [vmem:[#allocation14_spill] sm:$0xff] }
 0x493   :  { %5215 = vrcp.f32 %v1525_v29  ;;  %v7641_v29 = vld [vmem:[#allocation18_spill] sm:$0xff] }
 0x49a   :  { %v5210_v21 = vpop.eup %5209 }
 0x49b   :  { %v5212_v28 = vpop.eup %5211 }
 0x49c   :  { %v5214_v14 = vpop.eup %5213  ;;  %v1529_v61 = vmul.f32 %v5212_v28, %v5210_v21  ;;  %v7638_v21 = vld [vmem:[#allocation15_spill] sm:$0xff]  ;;  %v7639_v28 = vld [vmem:[#allocation16_spill] sm:$0xff] }
 0x49d   :  { %v1528_v24 = vmul.f32 %v5214_v14, %v6563_v8  ;;  %v5216_v59 = vpop.eup %5215  ;;  %v7630_v8 = vld [vmem:[#allocation7_spill] sm:$0xff]  ;;  %v7640_v14 = vld [vmem:[#allocation17_spill] sm:$0xff] }
 0x49f   :  { %v6678_v47 = vadd.f32 %v1529_v61, %v1528_v24  ;;  %v7642_v24 = vld [vmem:[#allocation19_spill] sm:$0xff]  ;;  %v7643_v61 = vld [vmem:[#allocation20_spill] sm:$0xff] }
 0x4a1   :  { %5217 = vtanh.f32 %v6678_v47 }
 0x4ab   :  { %v5218_v48 = vpop.eup %5217 }
 0x4ac   :  { %v1532_v2 = vmul.f32 %v5218_v48, %v5216_v59  ;;  %v7644_v59 = vld [vmem:[#allocation21_spill] sm:$0xff]  ;;  %v7645_v48 = vld [vmem:[#allocation22_spill] sm:$0xff] }
 0x4ae   :  { %1598 = vmatmul.mubr.f32.vlgmr.msra.gmra.mrb[14].mxu0 %v1532_v2  ;;  %1669 = vmatmul.mubr.f32.vlgmr.msra.gmra.mrb[14].mxu1 %v1532_v2 }
 0x4af   :  { %4289 = vmatpush1.bf16.msra.mxu0 %v5461_v9  ;;  %4321 = vmatpush1.bf16.msra.mxu1 %v5473_v13 }
 0x4b0   :  { %4291 = vmatprep.subr.bf16.mxu0 %v5486_v17  ;;  %4323 = vmatprep.subr.bf16.mxu1 %v5488_v18 }
 0x4b1   :  { %1765 = vmatprep.mubr.f32.mxu0 %v7461_v58  ;;  %1836 = vmatprep.mubr.f32.mxu1 %v7461_v58 }
 0x4b3   :  { %4293 = vmatpush1.bf16.msra.mxu0 %v5500_v22  ;;  %4325 = vmatpush1.bf16.msra.mxu1 %v5513_v26 }
 0x4b4   :  { %4295 = vmatprep.subr.bf16.mxu0 %v5515_v27  ;;  %4327 = vmatprep.subr.bf16.mxu1 %v5526_v31 }
 0x4b7   :  { %4297 = vmatpush1.bf16.msra.mxu0 %v5538_v35  ;;  %4329 = vmatpush1.bf16.msra.mxu1 %v5551_v39 }
 0x4b8   :  { %4299 = vmatprep.subr.bf16.mxu0 %v5553_v40  ;;  %4331 = vmatprep.subr.bf16.mxu1 %v5565_v44 }
 0x4bb   :  { %4301 = vmatpush1.bf16.msra.mxu0 %v5586_v51  ;;  %4333 = vmatpush1.bf16.msra.mxu1 %v5590_v52 }
 0x4bc   :  { %4303 = vmatprep.subr.bf16.mxu0 %v5592_v53  ;;  %4335 = vmatprep.subr.bf16.mxu1 %v5604_v57 }
 0x4bf   :  { %4305 = vmatpush1.bf16.msra.mxu0 %v5622_v63  ;;  %4337 = vmatpush1.bf16.msra.mxu1 %v5626_v0 }
 0x4c0   :  { %4307 = vmatprep.subr.bf16.mxu0 %v5628_v1  ;;  %4339 = vmatprep.subr.bf16.mxu1 %v5640_v6 }
 0x4c3   :  { %4309 = vmatpush1.bf16.msra.mxu0 %v5658_v16  ;;  %4341 = vmatpush1.bf16.msra.mxu1 %v5662_v19 }
 0x4c4   :  { %4311 = vmatprep.subr.bf16.mxu0 %v5664_v20  ;;  %4343 = vmatprep.subr.bf16.mxu1 %v5676_v25 }
 0x4c7   :  { %4313 = vmatpush1.bf16.msra.mxu0 %v5694_v34  ;;  %4345 = vmatpush1.bf16.msra.mxu1 %v5698_v36 }
 0x4c8   :  { %4315 = vmatprep.subr.bf16.mxu0 %v5700_v37  ;;  %4347 = vmatprep.subr.bf16.mxu1 %v5712_v43 }
 0x4cb   :  { %4317 = vmatpush1.bf16.msra.mxu0 %v5730_v50  ;;  %4349 = vmatpush1.bf16.msra.mxu1 %v5737_v55 }
 0x4cc   :  { %4351 = vmatprep.subr.bf16.mxu0 %v5739_v56  ;;  %4415 = vmatprep.subr.bf16.mxu1 %v5748_v60 }
 0x4ce   :  { %1766 = vmatmul.mubr.f32.vlgmr.msra.gmra.mrb[16].mxu0 %v1532_v2  ;;  %1837 = vmatmul.mubr.f32.vlgmr.msra.gmra.mrb[16].mxu1 %v1532_v2  ;;  %v7646_v2 = vld [vmem:[#allocation23_spill] sm:$0xff] }
 0x4cf   :  { %4353 = vmatpush1.bf16.msra.mxu0 %v5766_v10  ;;  %4417 = vmatpush1.bf16.msra.mxu1 %v5770_v11 }
 0x4d0   :  { %4355 = vmatprep.subr.bf16.mxu0 %v5772_v12  ;;  %4419 = vmatprep.subr.bf16.mxu1 %v5784_v23 }
 0x4d3   :  { %4357 = vmatpush1.bf16.msra.mxu0 %v5804_v33  ;;  %4421 = vmatpush1.bf16.msra.mxu1 %v5808_v38 }
 0x4d4   :  { %4359 = vmatprep.subr.bf16.mxu0 %v5810_v41  ;;  %4423 = vmatprep.subr.bf16.mxu1 %v5819_v46 }
 0x4d7   :  { %4361 = vmatpush1.bf16.msra.mxu0 %v5830_v49  ;;  %4425 = vmatpush1.bf16.msra.mxu1 %v7630_v8 }
 0x4d8   :  { %4363 = vmatprep.subr.bf16.mxu0 %v7631_v30  ;;  %4427 = vmatprep.subr.bf16.mxu1 %v7632_v5 }
 0x4db   :  { %4365 = vmatpush1.bf16.msra.mxu0 %v7633_v32  ;;  %4429 = vmatpush1.bf16.msra.mxu1 %v7634_v4 }
 0x4dc   :  { %4367 = vmatprep.subr.bf16.mxu0 %v7635_v15  ;;  %4431 = vmatprep.subr.bf16.mxu1 %v7636_v42  ;;  %v7647_v42 = vld [vmem:[#allocation24_spill] sm:$0xff] }
 0x4dd   :  { %v7685_v15 = vld [vmem:[#allocation60_spill] sm:$0xff] }
 0x4df   :  { %4369 = vmatpush1.bf16.msra.mxu0 %v7637_v3  ;;  %4433 = vmatpush1.bf16.msra.mxu1 %v7638_v21  ;;  %v7648_v3 = vld [vmem:[#allocation25_spill] sm:$0xff]  ;;  %v7649_v21 = vld [vmem:[#allocation26_spill] sm:$0xff] }
 0x4e0   :  { %4371 = vmatprep.subr.bf16.mxu0 %v7639_v28  ;;  %4435 = vmatprep.subr.bf16.mxu1 %v7640_v14  ;;  %v7650_v28 = vld [vmem:[#allocation27_spill] sm:$0xff]  ;;  %v7651_v14 = vld [vmem:[#allocation28_spill] sm:$0xff] }
 0x4e3   :  { %4373 = vmatpush1.bf16.msra.mxu0 %v7641_v29  ;;  %4437 = vmatpush1.bf16.msra.mxu1 %v7642_v24  ;;  %v7652_v29 = vld [vmem:[#allocation29_spill] sm:$0xff]  ;;  %v7653_v24 = vld [vmem:[#allocation30_spill] sm:$0xff] }
 0x4e4   :  { %4375 = vmatprep.subr.bf16.mxu0 %v7643_v61  ;;  %4439 = vmatprep.subr.bf16.mxu1 %v7644_v59  ;;  %v7654_v61 = vld [vmem:[#allocation31_spill] sm:$0xff]  ;;  %v7655_v59 = vld [vmem:[#allocation32_spill] sm:$0xff] }
 0x4e7   :  { %4377 = vmatpush1.bf16.msra.mxu0 %v7645_v48  ;;  %4441 = vmatpush1.bf16.msra.mxu1 %v7646_v2  ;;  %v7656_v48 = vld [vmem:[#allocation33_spill] sm:$0xff]  ;;  %v7657_v2 = vld [vmem:[#allocation34_spill] sm:$0xff] }
 0x4e8   :  { %4379 = vmatprep.subr.bf16.mxu0 %v7647_v42  ;;  %4443 = vmatprep.subr.bf16.mxu1 %v7648_v3  ;;  %v7658_v42 = vld [vmem:[#allocation35_spill] sm:$0xff]  ;;  %v7659_v3 = vld [vmem:[#allocation36_spill] sm:$0xff] }
 0x4eb   :  { %4381 = vmatpush1.bf16.msra.mxu0 %v7649_v21  ;;  %4445 = vmatpush1.bf16.msra.mxu1 %v7650_v28  ;;  %v7660_v21 = vld [vmem:[#allocation37_spill] sm:$0xff]  ;;  %v7661_v28 = vld [vmem:[#allocation38_spill] sm:$0xff] }
 0x4ec   :  { %4383 = vmatprep.subr.bf16.mxu0 %v7651_v14  ;;  %4447 = vmatprep.subr.bf16.mxu1 %v7652_v29  ;;  %v7662_v14 = vld [vmem:[#allocation39_spill] sm:$0xff]  ;;  %v7663_v29 = vld [vmem:[#allocation40_spill] sm:$0xff] }
 0x4ef   :  { %4385 = vmatpush1.bf16.msra.mxu0 %v7653_v24  ;;  %4449 = vmatpush1.bf16.msra.mxu1 %v7654_v61  ;;  %v7664_v24 = vld [vmem:[#allocation41_spill] sm:$0xff]  ;;  %v7665_v61 = vld [vmem:[#allocation42_spill] sm:$0xff] }
 0x4f0   :  { %4387 = vmatprep.subr.bf16.mxu0 %v7655_v59  ;;  %4451 = vmatprep.subr.bf16.mxu1 %v7656_v48  ;;  %v7666_v59 = vld [vmem:[#allocation43_spill] sm:$0xff]  ;;  %v7667_v48 = vld [vmem:[#allocation44_spill] sm:$0xff] }
 0x4f3   :  { %4389 = vmatpush1.bf16.msra.mxu0 %v7657_v2  ;;  %4453 = vmatpush1.bf16.msra.mxu1 %v7658_v42  ;;  %v7668_v2 = vld [vmem:[#allocation45_spill] sm:$0xff]  ;;  %v7669_v42 = vld [vmem:[#allocation46_spill] sm:$0xff] }
 0x4f4   :  { %4391 = vmatprep.subr.bf16.mxu0 %v7659_v3  ;;  %4455 = vmatprep.subr.bf16.mxu1 %v7660_v21  ;;  %v7670_v3 = vld [vmem:[#allocation47_spill] sm:$0xff]  ;;  %v7671_v21 = vld [vmem:[#allocation48_spill] sm:$0xff] }
 0x4f7   :  { %4393 = vmatpush1.bf16.msra.mxu0 %v7661_v28  ;;  %4457 = vmatpush1.bf16.msra.mxu1 %v7662_v14  ;;  %v7672_v28 = vld [vmem:[#allocation49_spill] sm:$0xff]  ;;  %v7673_v14 = vld [vmem:[#allocation50_spill] sm:$0xff] }
 0x4f8   :  { %4395 = vmatprep.subr.bf16.mxu0 %v7663_v29  ;;  %4459 = vmatprep.subr.bf16.mxu1 %v7664_v24  ;;  %v7674_v29 = vld [vmem:[#allocation51_spill] sm:$0xff]  ;;  %v7675_v24 = vld [vmem:[#allocation52_spill] sm:$0xff] }
 0x4fb   :  { %4397 = vmatpush1.bf16.msra.mxu0 %v7665_v61  ;;  %4461 = vmatpush1.bf16.msra.mxu1 %v7666_v59  ;;  %v7676_v61 = vld [vmem:[#allocation53_spill] sm:$0xff]  ;;  %v7677_v59 = vld [vmem:[#allocation54_spill] sm:$0xff] }
 0x4fc   :  { %4399 = vmatprep.subr.bf16.mxu0 %v7667_v48  ;;  %4463 = vmatprep.subr.bf16.mxu1 %v7668_v2  ;;  %v7678_v48 = vld [vmem:[#allocation55_spill] sm:$0xff]  ;;  %v7679_v2 = vld [vmem:[#allocation56_spill] sm:$0xff] }
 0x4ff   :  { %4401 = vmatpush1.bf16.msra.mxu0 %v7669_v42  ;;  %4465 = vmatpush1.bf16.msra.mxu1 %v7670_v3  ;;  %v7680_v42 = vld [vmem:[#allocation57_spill] sm:$0xff]  ;;  %v7681_v3 = vld [vmem:[#allocation58_spill] sm:$0xff] }
 0x500   :  { %4403 = vmatprep.subr.bf16.mxu0 %v7671_v21  ;;  %4467 = vmatprep.subr.bf16.mxu1 %v7672_v28  ;;  %v7682_v21 = vld [vmem:[#allocation59_spill] sm:$0xff]  ;;  %v7683_v28 = vld [vmem:[#allocation5_spill] sm:$0xff] }
 0x503   :  { %4405 = vmatpush1.bf16.msra.mxu0 %v7673_v14  ;;  %4469 = vmatpush1.bf16.msra.mxu1 %v7674_v29  ;;  %v7684_v14 = vld [vmem:[#allocation6_spill] sm:$0xff] }
 0x504   :  { %4407 = vmatprep.subr.bf16.mxu0 %v7675_v24  ;;  %4471 = vmatprep.subr.bf16.mxu1 %v7676_v61 }
 0x507   :  { %4409 = vmatpush1.bf16.msra.mxu0 %v7677_v59  ;;  %4473 = vmatpush1.bf16.msra.mxu1 %v7678_v48 }
 0x508   :  { %4411 = vmatprep.subr.bf16.mxu0 %v7679_v2  ;;  %4475 = vmatprep.subr.bf16.mxu1 %v7680_v42  ;;  %v7686_v42 = vld [vmem:[#allocation62_spill] sm:$0xff] }
 0x50b   :  { %4413 = vmatpush1.bf16.msra.mxu0 %v7681_v3  ;;  %4477 = vmatpush1.bf16.msra.mxu1 %v7682_v21 }
 0x50c   :  { %4479 = vmatprep.subr.bf16.mxu0 %v7683_v28  ;;  %4511 = vmatprep.subr.bf16.mxu1 %v7684_v14 }
 0x581   :  { %v1599_v29 = vpop.f32.mrb[14].mxu0  ;;  %v1670_v24 = vpop.f32.mrb[14].mxu1 }
 0x582   :  { %v1600_v61 = vadd.f32 %v1599_v29, %v7685_v15  ;;  %v1601_v4 = vpop.f32.mrb[15].mxu0  ;;  %v1672_v59 = vpop.f32.mrb[15].mxu1  ;;  %v1671_v21 = vadd.f32 %v1670_v24, %v7572_v7 }
 0x583   :  { %v1602_v48 = vadd.f32 %v1601_v4, %v6427_v45  ;;  %v1673_v3 = vadd.f32 %v1672_v59, %v7686_v42 }
 0x584   :  { %v3381_v32 = vmul.f32 -1.442695, %v1600_v61 }
 0x585   :  { %v3382_v2 = vmul.f32 -1.442695, %v1602_v48  ;;  %v3383_v5 = vmul.f32 -1.442695, %v1673_v3 }
 0x586   :  { %5219 = vpow2.f32 %v3381_v32 }
 0x587   :  { %5221 = vpow2.f32 %v3382_v2 }
 0x588   :  { %5223 = vpow2.f32 %v3383_v5 }
 0x589   :  { %5225 = vtanh.f32 %v1671_v21 }
 0x590   :  { %v5220_v28 = vpop.eup %5219 }
 0x591   :  { %v5222_v30 = vpop.eup %5221  ;;  %v1678_v14 = vadd.f32 1.0, %v5220_v28 }
 0x592   :  { %v1684_v8 = vadd.f32 1.0, %v5222_v30  ;;  %v5224_v29 = vpop.eup %5223 }
 0x593   :  { %5227 = vrcp.f32 %v1678_v14  ;;  %v5226_v15 = vpop.eup %5225  ;;  %v1691_v32 = vadd.f32 1.0, %v5224_v29 }
 0x594   :  { %5229 = vrcp.f32 %v1684_v8 }
 0x595   :  { %5231 = vrcp.f32 %v1691_v32 }
 0x59d   :  { %v5228_v4 = vpop.eup %5227 }
 0x59e   :  { %v5230_v61 = vpop.eup %5229  ;;  %v1695_v48 = vmul.f32 %v5228_v4, %v5226_v15  ;;  %v3384_v15 = vld [vmem:[%s7273_s0 + $0x20] sm:$0xff] }
 0x59f   :  { %v1694_v2 = vmul.f32 %v5230_v61, %v6669_v54  ;;  %v5232_v61 = vpop.eup %5231 }
 0x5a1   :  { %v1767_v59 = vpop.f32.mrb[16].mxu0  ;;  %v1838_v3 = vpop.f32.mrb[16].mxu1  ;;  %v6784_v42 = vadd.f32 %v1695_v48, %v1694_v2 }
 0x5a2   :  { %v1769_v24 = vpop.f32.mrb[17].mxu0  ;;  %v1840_v28 = vpop.f32.mrb[17].mxu1 }
 0x5a3   :  { %v1847_v5 = vcombine.low %v1767_v59, %v1769_v24  ;;  %v1848_v21 = vcombine.low %v1838_v3, %v1840_v28  ;;  %5233 = vtanh.f32 %v6784_v42 }
 0x5a5   :  { %v1855_v8 = vrot.slane %v1847_v5, %v7515_v62  ;;  %v1862_v30 = vrot.slane %v1848_v21, %v7515_v62 }
 0x5a7   :  { %v1863_v54 = vcombine.low %v1855_v8, %v1862_v30 }
 0x5a9   :  { %v1865_v14 = vadd.f32 %v3384_v15, %v1863_v54 }
 0x5ab   :  { %v3385_v29 = vmul.f32 -1.442695, %v1865_v14  ;;  %v1873_v4 = vrot.slane %v1865_v14, 2  ;;  %v1884_v59 = vrot.slane %v1865_v14, 6  ;;  %v1881_v28 = vrot.slane %v1865_v14, 4 }
 0x5ad   :  { %v5234_v48 = vpop.eup %5233  ;;  %5235 = vpow2.f32 %v3385_v29  ;;  %v3386_v32 = vmul.f32 -1.442695, %v1873_v4  ;;  %v3387_v3 = vmul.f32 -1.442695, %v1884_v59 }
 0x5ae   :  { %v1698_v2 = vmul.f32 %v5234_v48, %v5232_v61 }
 0x5af   :  { %5237 = vpow2.f32 %v3386_v32 }
 0x5b0   :  { %1961 = vmatprep.mubr.f32.mxu0 %v1698_v2  ;;  %2032 = vmatprep.mubr.f32.mxu1 %v1698_v2  ;;  %5239 = vpow2.f32 %v3387_v3  ;;  %v7688_v3 = vld [vmem:[#allocation8_spill] sm:$0xff] }
 0x5b7   :  { %v5236_v24 = vpop.eup %5235 }
 0x5b8   :  { %v1869_v5 = vadd.f32 1.0, %v5236_v24  ;;  %v7689_v24 = vld [vmem:[#allocation9_spill] sm:$0xff] }
 0x5b9   :  { %v5238_v21 = vpop.eup %5237 }
 0x5ba   :  { %5241 = vrcp.f32 %v1869_v5  ;;  %v1878_v8 = vadd.f32 1.0, %v5238_v21  ;;  %v5240_v30 = vpop.eup %5239  ;;  %v7691_v5 = vld [vmem:[#allocation11_spill] sm:$0xff]  ;;  %v7692_v21 = vld [vmem:[#allocation12_spill] sm:$0xff] }
 0x5bb   :  { %5243 = vtanh.f32 %v1881_v28  ;;  %v1889_v4 = vadd.f32 1.0, %v5240_v30  ;;  %v7690_v28 = vld [vmem:[#allocation10_spill] sm:$0xff] }
 0x5bc   :  { %5245 = vrcp.f32 %v1878_v8  ;;  %v7693_v8 = vld [vmem:[#allocation13_spill] sm:$0xff]  ;;  %v7694_v30 = vld [vmem:[#allocation14_spill] sm:$0xff] }
 0x5bd   :  { %5247 = vrcp.f32 %v1889_v4  ;;  %v7698_v4 = vld [vmem:[#allocation18_spill] sm:$0xff] }
 0x5c4   :  { %v5242_v15 = vpop.eup %5241 }
 0x5c5   :  { %v5244_v54 = vpop.eup %5243 }
 0x5c6   :  { %v5246_v29 = vpop.eup %5245  ;;  %v1893_v48 = vmul.f32 %v5244_v54, %v5242_v15  ;;  %v7695_v15 = vld [vmem:[#allocation15_spill] sm:$0xff]  ;;  %v7696_v54 = vld [vmem:[#allocation16_spill] sm:$0xff] }
 0x5c7   :  { %v1892_v61 = vmul.f32 %v5246_v29, %v6678_v47  ;;  %v5248_v14 = vpop.eup %5247  ;;  %v7687_v47 = vld [vmem:[#allocation7_spill] sm:$0xff]  ;;  %v7697_v29 = vld [vmem:[#allocation17_spill] sm:$0xff] }
 0x5c9   :  { %v6793_v32 = vadd.f32 %v1893_v48, %v1892_v61  ;;  %v7699_v61 = vld [vmem:[#allocation19_spill] sm:$0xff]  ;;  %v7700_v48 = vld [vmem:[#allocation20_spill] sm:$0xff] }
 0x5cb   :  { %5249 = vtanh.f32 %v6793_v32 }
 0x5d5   :  { %v5250_v2 = vpop.eup %5249 }
 0x5d6   :  { %v1896_v59 = vmul.f32 %v5250_v2, %v5248_v14  ;;  %v7701_v14 = vld [vmem:[#allocation21_spill] sm:$0xff]  ;;  %v7702_v2 = vld [vmem:[#allocation22_spill] sm:$0xff] }
 0x5d8   :  { %1962 = vmatmul.mubr.f32.vlgmr.msra.gmra.mrb[18].mxu0 %v1896_v59  ;;  %2033 = vmatmul.mubr.f32.vlgmr.msra.gmra.mrb[18].mxu1 %v1896_v59 }
 0x5d9   :  { %4481 = vmatpush1.bf16.msra.mxu0 %v5461_v9  ;;  %4513 = vmatpush1.bf16.msra.mxu1 %v5473_v13 }
 0x5da   :  { %4483 = vmatprep.subr.bf16.mxu0 %v5486_v17  ;;  %4515 = vmatprep.subr.bf16.mxu1 %v5488_v18 }
 0x5db   :  { %2129 = vmatprep.mubr.f32.mxu0 %v7461_v58  ;;  %2200 = vmatprep.mubr.f32.mxu1 %v7461_v58 }
 0x5dd   :  { %4485 = vmatpush1.bf16.msra.mxu0 %v5500_v22  ;;  %4517 = vmatpush1.bf16.msra.mxu1 %v5513_v26 }
 0x5de   :  { %4487 = vmatprep.subr.bf16.mxu0 %v5515_v27  ;;  %4519 = vmatprep.subr.bf16.mxu1 %v5526_v31 }
 0x5e1   :  { %4489 = vmatpush1.bf16.msra.mxu0 %v5538_v35  ;;  %4521 = vmatpush1.bf16.msra.mxu1 %v5551_v39 }
 0x5e2   :  { %4491 = vmatprep.subr.bf16.mxu0 %v5553_v40  ;;  %4523 = vmatprep.subr.bf16.mxu1 %v5565_v44 }
 0x5e5   :  { %4493 = vmatpush1.bf16.msra.mxu0 %v5586_v51  ;;  %4525 = vmatpush1.bf16.msra.mxu1 %v5590_v52 }
 0x5e6   :  { %4495 = vmatprep.subr.bf16.mxu0 %v5592_v53  ;;  %4527 = vmatprep.subr.bf16.mxu1 %v5604_v57 }
 0x5e9   :  { %4497 = vmatpush1.bf16.msra.mxu0 %v5622_v63  ;;  %4529 = vmatpush1.bf16.msra.mxu1 %v5626_v0 }
 0x5ea   :  { %4499 = vmatprep.subr.bf16.mxu0 %v5628_v1  ;;  %4531 = vmatprep.subr.bf16.mxu1 %v5640_v6 }
 0x5ed   :  { %4501 = vmatpush1.bf16.msra.mxu0 %v5658_v16  ;;  %4533 = vmatpush1.bf16.msra.mxu1 %v5662_v19 }
 0x5ee   :  { %4503 = vmatprep.subr.bf16.mxu0 %v5664_v20  ;;  %4535 = vmatprep.subr.bf16.mxu1 %v5676_v25 }
 0x5f1   :  { %4505 = vmatpush1.bf16.msra.mxu0 %v5694_v34  ;;  %4537 = vmatpush1.bf16.msra.mxu1 %v5698_v36 }
 0x5f2   :  { %4507 = vmatprep.subr.bf16.mxu0 %v5700_v37  ;;  %4539 = vmatprep.subr.bf16.mxu1 %v5712_v43 }
 0x5f5   :  { %4509 = vmatpush1.bf16.msra.mxu0 %v5730_v50  ;;  %4541 = vmatpush1.bf16.msra.mxu1 %v5737_v55 }
 0x5f6   :  { %4543 = vmatprep.subr.bf16.mxu0 %v5739_v56  ;;  %4607 = vmatprep.subr.bf16.mxu1 %v5748_v60 }
 0x5f8   :  { %2130 = vmatmul.mubr.f32.vlgmr.msra.gmra.mrb[20].mxu0 %v1896_v59  ;;  %2201 = vmatmul.mubr.f32.vlgmr.msra.gmra.mrb[20].mxu1 %v1896_v59  ;;  %v7703_v59 = vld [vmem:[#allocation23_spill] sm:$0xff] }
 0x5f9   :  { %4545 = vmatpush1.bf16.msra.mxu0 %v5766_v10  ;;  %4609 = vmatpush1.bf16.msra.mxu1 %v5770_v11 }
 0x5fa   :  { %4547 = vmatprep.subr.bf16.mxu0 %v5772_v12  ;;  %4611 = vmatprep.subr.bf16.mxu1 %v5784_v23 }
 0x5fd   :  { %4549 = vmatpush1.bf16.msra.mxu0 %v5804_v33  ;;  %4613 = vmatpush1.bf16.msra.mxu1 %v5808_v38 }
 0x5fe   :  { %4551 = vmatprep.subr.bf16.mxu0 %v5810_v41  ;;  %4615 = vmatprep.subr.bf16.mxu1 %v5819_v46 }
 0x601   :  { %4553 = vmatpush1.bf16.msra.mxu0 %v5830_v49  ;;  %4617 = vmatpush1.bf16.msra.mxu1 %v7687_v47 }
 0x602   :  { %4555 = vmatprep.subr.bf16.mxu0 %v7688_v3  ;;  %4619 = vmatprep.subr.bf16.mxu1 %v7689_v24 }
 0x605   :  { %4557 = vmatpush1.bf16.msra.mxu0 %v7690_v28  ;;  %4621 = vmatpush1.bf16.msra.mxu1 %v7691_v5 }
 0x606   :  { %4559 = vmatprep.subr.bf16.mxu0 %v7692_v21  ;;  %4623 = vmatprep.subr.bf16.mxu1 %v7693_v8  ;;  %v7704_v8 = vld [vmem:[#allocation24_spill] sm:$0xff] }
 0x607   :  { %v7742_v21 = vld [vmem:[#allocation60_spill] sm:$0xff] }
 0x609   :  { %4561 = vmatpush1.bf16.msra.mxu0 %v7694_v30  ;;  %4625 = vmatpush1.bf16.msra.mxu1 %v7695_v15  ;;  %v7705_v30 = vld [vmem:[#allocation25_spill] sm:$0xff]  ;;  %v7706_v15 = vld [vmem:[#allocation26_spill] sm:$0xff] }
 0x60a   :  { %4563 = vmatprep.subr.bf16.mxu0 %v7696_v54  ;;  %4627 = vmatprep.subr.bf16.mxu1 %v7697_v29  ;;  %v7707_v54 = vld [vmem:[#allocation27_spill] sm:$0xff]  ;;  %v7708_v29 = vld [vmem:[#allocation28_spill] sm:$0xff] }
 0x60d   :  { %4565 = vmatpush1.bf16.msra.mxu0 %v7698_v4  ;;  %4629 = vmatpush1.bf16.msra.mxu1 %v7699_v61  ;;  %v7709_v4 = vld [vmem:[#allocation29_spill] sm:$0xff]  ;;  %v7710_v61 = vld [vmem:[#allocation30_spill] sm:$0xff] }
 0x60e   :  { %4567 = vmatprep.subr.bf16.mxu0 %v7700_v48  ;;  %4631 = vmatprep.subr.bf16.mxu1 %v7701_v14  ;;  %v7711_v48 = vld [vmem:[#allocation31_spill] sm:$0xff]  ;;  %v7712_v14 = vld [vmem:[#allocation32_spill] sm:$0xff] }
 0x611   :  { %4569 = vmatpush1.bf16.msra.mxu0 %v7702_v2  ;;  %4633 = vmatpush1.bf16.msra.mxu1 %v7703_v59  ;;  %v7713_v2 = vld [vmem:[#allocation33_spill] sm:$0xff]  ;;  %v7714_v59 = vld [vmem:[#allocation34_spill] sm:$0xff] }
 0x612   :  { %4571 = vmatprep.subr.bf16.mxu0 %v7704_v8  ;;  %4635 = vmatprep.subr.bf16.mxu1 %v7705_v30  ;;  %v7715_v8 = vld [vmem:[#allocation35_spill] sm:$0xff]  ;;  %v7716_v30 = vld [vmem:[#allocation36_spill] sm:$0xff] }
 0x615   :  { %4573 = vmatpush1.bf16.msra.mxu0 %v7706_v15  ;;  %4637 = vmatpush1.bf16.msra.mxu1 %v7707_v54  ;;  %v7717_v15 = vld [vmem:[#allocation37_spill] sm:$0xff]  ;;  %v7718_v54 = vld [vmem:[#allocation38_spill] sm:$0xff] }
 0x616   :  { %4575 = vmatprep.subr.bf16.mxu0 %v7708_v29  ;;  %4639 = vmatprep.subr.bf16.mxu1 %v7709_v4  ;;  %v7719_v29 = vld [vmem:[#allocation39_spill] sm:$0xff]  ;;  %v7720_v4 = vld [vmem:[#allocation40_spill] sm:$0xff] }
 0x619   :  { %4577 = vmatpush1.bf16.msra.mxu0 %v7710_v61  ;;  %4641 = vmatpush1.bf16.msra.mxu1 %v7711_v48  ;;  %v7721_v61 = vld [vmem:[#allocation41_spill] sm:$0xff]  ;;  %v7722_v48 = vld [vmem:[#allocation42_spill] sm:$0xff] }
 0x61a   :  { %4579 = vmatprep.subr.bf16.mxu0 %v7712_v14  ;;  %4643 = vmatprep.subr.bf16.mxu1 %v7713_v2  ;;  %v7723_v14 = vld [vmem:[#allocation43_spill] sm:$0xff]  ;;  %v7724_v2 = vld [vmem:[#allocation44_spill] sm:$0xff] }
 0x61d   :  { %4581 = vmatpush1.bf16.msra.mxu0 %v7714_v59  ;;  %4645 = vmatpush1.bf16.msra.mxu1 %v7715_v8  ;;  %v7725_v59 = vld [vmem:[#allocation45_spill] sm:$0xff]  ;;  %v7726_v8 = vld [vmem:[#allocation46_spill] sm:$0xff] }
 0x61e   :  { %4583 = vmatprep.subr.bf16.mxu0 %v7716_v30  ;;  %4647 = vmatprep.subr.bf16.mxu1 %v7717_v15  ;;  %v7727_v30 = vld [vmem:[#allocation47_spill] sm:$0xff]  ;;  %v7728_v15 = vld [vmem:[#allocation48_spill] sm:$0xff] }
 0x621   :  { %4585 = vmatpush1.bf16.msra.mxu0 %v7718_v54  ;;  %4649 = vmatpush1.bf16.msra.mxu1 %v7719_v29  ;;  %v7729_v54 = vld [vmem:[#allocation49_spill] sm:$0xff]  ;;  %v7730_v29 = vld [vmem:[#allocation50_spill] sm:$0xff] }
 0x622   :  { %4587 = vmatprep.subr.bf16.mxu0 %v7720_v4  ;;  %4651 = vmatprep.subr.bf16.mxu1 %v7721_v61  ;;  %v7731_v4 = vld [vmem:[#allocation51_spill] sm:$0xff]  ;;  %v7732_v61 = vld [vmem:[#allocation52_spill] sm:$0xff] }
 0x625   :  { %4589 = vmatpush1.bf16.msra.mxu0 %v7722_v48  ;;  %4653 = vmatpush1.bf16.msra.mxu1 %v7723_v14  ;;  %v7733_v48 = vld [vmem:[#allocation53_spill] sm:$0xff]  ;;  %v7734_v14 = vld [vmem:[#allocation54_spill] sm:$0xff] }
 0x626   :  { %4591 = vmatprep.subr.bf16.mxu0 %v7724_v2  ;;  %4655 = vmatprep.subr.bf16.mxu1 %v7725_v59  ;;  %v7735_v2 = vld [vmem:[#allocation55_spill] sm:$0xff]  ;;  %v7736_v59 = vld [vmem:[#allocation56_spill] sm:$0xff] }
 0x629   :  { %4593 = vmatpush1.bf16.msra.mxu0 %v7726_v8  ;;  %4657 = vmatpush1.bf16.msra.mxu1 %v7727_v30  ;;  %v7737_v8 = vld [vmem:[#allocation57_spill] sm:$0xff]  ;;  %v7738_v30 = vld [vmem:[#allocation58_spill] sm:$0xff] }
 0x62a   :  { %4595 = vmatprep.subr.bf16.mxu0 %v7728_v15  ;;  %4659 = vmatprep.subr.bf16.mxu1 %v7729_v54  ;;  %v7739_v15 = vld [vmem:[#allocation59_spill] sm:$0xff]  ;;  %v7740_v54 = vld [vmem:[#allocation5_spill] sm:$0xff] }
 0x62d   :  { %4597 = vmatpush1.bf16.msra.mxu0 %v7730_v29  ;;  %4661 = vmatpush1.bf16.msra.mxu1 %v7731_v4  ;;  %v7741_v29 = vld [vmem:[#allocation6_spill] sm:$0xff] }
 0x62e   :  { %4599 = vmatprep.subr.bf16.mxu0 %v7732_v61  ;;  %4663 = vmatprep.subr.bf16.mxu1 %v7733_v48 }
 0x631   :  { %4601 = vmatpush1.bf16.msra.mxu0 %v7734_v14  ;;  %4665 = vmatpush1.bf16.msra.mxu1 %v7735_v2 }
 0x632   :  { %4603 = vmatprep.subr.bf16.mxu0 %v7736_v59  ;;  %4667 = vmatprep.subr.bf16.mxu1 %v7737_v8  ;;  %v7743_v8 = vld [vmem:[#allocation62_spill] sm:$0xff] }
 0x635   :  { %4605 = vmatpush1.bf16.msra.mxu0 %v7738_v30  ;;  %4669 = vmatpush1.bf16.msra.mxu1 %v7739_v15 }
 0x636   :  { %4671 = vmatprep.subr.bf16.mxu0 %v7740_v54  ;;  %4703 = vmatprep.subr.bf16.mxu1 %v7741_v29 }
 0x6ab   :  { %v1963_v4 = vpop.f32.mrb[18].mxu0  ;;  %v2034_v61 = vpop.f32.mrb[18].mxu1 }
 0x6ac   :  { %v1964_v48 = vadd.f32 %v1963_v4, %v7742_v21  ;;  %v1965_v5 = vpop.f32.mrb[19].mxu0  ;;  %v2036_v14 = vpop.f32.mrb[19].mxu1  ;;  %v2035_v15 = vadd.f32 %v2034_v61, %v7572_v7 }
 0x6ad   :  { %v1966_v2 = vadd.f32 %v1965_v5, %v6427_v45  ;;  %v2037_v30 = vadd.f32 %v2036_v14, %v7743_v8 }
 0x6ae   :  { %v3388_v28 = vmul.f32 -1.442695, %v1964_v48 }
 0x6af   :  { %v3389_v59 = vmul.f32 -1.442695, %v1966_v2  ;;  %v3390_v24 = vmul.f32 -1.442695, %v2037_v30 }
 0x6b0   :  { %5251 = vpow2.f32 %v3388_v28 }
 0x6b1   :  { %5253 = vpow2.f32 %v3389_v59 }
 0x6b2   :  { %5255 = vpow2.f32 %v3390_v24 }
 0x6b3   :  { %5257 = vtanh.f32 %v2035_v15 }
 0x6ba   :  { %v5252_v54 = vpop.eup %5251 }
 0x6bb   :  { %v5254_v3 = vpop.eup %5253  ;;  %v2042_v29 = vadd.f32 1.0, %v5252_v54 }
 0x6bc   :  { %v2048_v47 = vadd.f32 1.0, %v5254_v3  ;;  %v5256_v4 = vpop.eup %5255 }
 0x6bd   :  { %5259 = vrcp.f32 %v2042_v29  ;;  %v5258_v21 = vpop.eup %5257  ;;  %v2055_v28 = vadd.f32 1.0, %v5256_v4 }
 0x6be   :  { %5261 = vrcp.f32 %v2048_v47 }
 0x6bf   :  { %5263 = vrcp.f32 %v2055_v28 }
 0x6c7   :  { %v5260_v5 = vpop.eup %5259 }
 0x6c8   :  { %v5262_v48 = vpop.eup %5261  ;;  %v2059_v2 = vmul.f32 %v5260_v5, %v5258_v21  ;;  %v3391_v21 = vld [vmem:[%s7273_s0 + $0x28] sm:$0xff] }
 0x6c9   :  { %v2058_v59 = vmul.f32 %v5262_v48, %v6784_v42  ;;  %v5264_v48 = vpop.eup %5263 }
 0x6cb   :  { %v2131_v14 = vpop.f32.mrb[20].mxu0  ;;  %v2202_v30 = vpop.f32.mrb[20].mxu1  ;;  %v6899_v8 = vadd.f32 %v2059_v2, %v2058_v59 }
 0x6cc   :  { %v2133_v61 = vpop.f32.mrb[21].mxu0  ;;  %v2204_v54 = vpop.f32.mrb[21].mxu1 }
 0x6cd   :  { %v2211_v24 = vcombine.low %v2131_v14, %v2133_v61  ;;  %v2212_v15 = vcombine.low %v2202_v30, %v2204_v54  ;;  %5265 = vtanh.f32 %v6899_v8 }
 0x6cf   :  { %v2219_v47 = vrot.slane %v2211_v24, %v7515_v62  ;;  %v2226_v3 = vrot.slane %v2212_v15, %v7515_v62 }
 0x6d1   :  { %v2227_v42 = vcombine.low %v2219_v47, %v2226_v3 }
 0x6d3   :  { %v2229_v29 = vadd.f32 %v3391_v21, %v2227_v42 }
 0x6d5   :  { %v3392_v4 = vmul.f32 -1.442695, %v2229_v29  ;;  %v2237_v5 = vrot.slane %v2229_v29, 2  ;;  %v2248_v14 = vrot.slane %v2229_v29, 6  ;;  %v2245_v54 = vrot.slane %v2229_v29, 4 }
 0x6d7   :  { %v5266_v2 = vpop.eup %5265  ;;  %5267 = vpow2.f32 %v3392_v4  ;;  %v3393_v28 = vmul.f32 -1.442695, %v2237_v5  ;;  %v3394_v30 = vmul.f32 -1.442695, %v2248_v14 }
 0x6d8   :  { %v2062_v59 = vmul.f32 %v5266_v2, %v5264_v48 }
 0x6d9   :  { %5269 = vpow2.f32 %v3393_v28 }
 0x6da   :  { %2325 = vmatprep.mubr.f32.mxu0 %v2062_v59  ;;  %2396 = vmatprep.mubr.f32.mxu1 %v2062_v59  ;;  %5271 = vpow2.f32 %v3394_v30  ;;  %v7745_v30 = vld [vmem:[#allocation8_spill] sm:$0xff] }
 0x6e1   :  { %v5268_v61 = vpop.eup %5267 }
 0x6e2   :  { %v2233_v24 = vadd.f32 1.0, %v5268_v61  ;;  %v7746_v61 = vld [vmem:[#allocation9_spill] sm:$0xff] }
 0x6e3   :  { %v5270_v15 = vpop.eup %5269 }
 0x6e4   :  { %5273 = vrcp.f32 %v2233_v24  ;;  %v2242_v47 = vadd.f32 1.0, %v5270_v15  ;;  %v5272_v3 = vpop.eup %5271  ;;  %v7748_v24 = vld [vmem:[#allocation11_spill] sm:$0xff]  ;;  %v7749_v15 = vld [vmem:[#allocation12_spill] sm:$0xff] }
 0x6e5   :  { %5275 = vtanh.f32 %v2245_v54  ;;  %v2253_v5 = vadd.f32 1.0, %v5272_v3  ;;  %v7747_v54 = vld [vmem:[#allocation10_spill] sm:$0xff] }
 0x6e6   :  { %5277 = vrcp.f32 %v2242_v47  ;;  %v7750_v47 = vld [vmem:[#allocation13_spill] sm:$0xff]  ;;  %v7751_v3 = vld [vmem:[#allocation14_spill] sm:$0xff] }
 0x6e7   :  { %5279 = vrcp.f32 %v2253_v5  ;;  %v7755_v5 = vld [vmem:[#allocation18_spill] sm:$0xff] }
 0x6ee   :  { %v5274_v21 = vpop.eup %5273 }
 0x6ef   :  { %v5276_v42 = vpop.eup %5275 }
 0x6f0   :  { %v5278_v4 = vpop.eup %5277  ;;  %v2257_v2 = vmul.f32 %v5276_v42, %v5274_v21  ;;  %v7752_v21 = vld [vmem:[#allocation15_spill] sm:$0xff]  ;;  %v7753_v42 = vld [vmem:[#allocation16_spill] sm:$0xff] }
 0x6f1   :  { %v2256_v48 = vmul.f32 %v5278_v4, %v6793_v32  ;;  %v5280_v29 = vpop.eup %5279  ;;  %v7744_v32 = vld [vmem:[#allocation7_spill] sm:$0xff]  ;;  %v7754_v4 = vld [vmem:[#allocation17_spill] sm:$0xff] }
 0x6f3   :  { %v6908_v28 = vadd.f32 %v2257_v2, %v2256_v48  ;;  %v7756_v48 = vld [vmem:[#allocation19_spill] sm:$0xff]  ;;  %v7757_v2 = vld [vmem:[#allocation20_spill] sm:$0xff] }
 0x6f5   :  { %5281 = vtanh.f32 %v6908_v28 }
 0x6ff   :  { %v5282_v59 = vpop.eup %5281 }
 0x700   :  { %v2260_v14 = vmul.f32 %v5282_v59, %v5280_v29  ;;  %v7758_v29 = vld [vmem:[#allocation21_spill] sm:$0xff]  ;;  %v7759_v59 = vld [vmem:[#allocation22_spill] sm:$0xff] }
 0x702   :  { %2326 = vmatmul.mubr.f32.vlgmr.msra.gmra.mrb[22].mxu0 %v2260_v14  ;;  %2397 = vmatmul.mubr.f32.vlgmr.msra.gmra.mrb[22].mxu1 %v2260_v14 }
 0x703   :  { %4673 = vmatpush1.bf16.msra.mxu0 %v5461_v9  ;;  %4705 = vmatpush1.bf16.msra.mxu1 %v5473_v13 }
 0x704   :  { %4675 = vmatprep.subr.bf16.mxu0 %v5486_v17  ;;  %4707 = vmatprep.subr.bf16.mxu1 %v5488_v18 }
 0x705   :  { %2493 = vmatprep.mubr.f32.mxu0 %v7461_v58  ;;  %2564 = vmatprep.mubr.f32.mxu1 %v7461_v58 }
 0x707   :  { %4677 = vmatpush1.bf16.msra.mxu0 %v5500_v22  ;;  %4709 = vmatpush1.bf16.msra.mxu1 %v5513_v26 }
 0x708   :  { %4679 = vmatprep.subr.bf16.mxu0 %v5515_v27  ;;  %4711 = vmatprep.subr.bf16.mxu1 %v5526_v31 }
 0x70b   :  { %4681 = vmatpush1.bf16.msra.mxu0 %v5538_v35  ;;  %4713 = vmatpush1.bf16.msra.mxu1 %v5551_v39 }
 0x70c   :  { %4683 = vmatprep.subr.bf16.mxu0 %v5553_v40  ;;  %4715 = vmatprep.subr.bf16.mxu1 %v5565_v44 }
 0x70f   :  { %4685 = vmatpush1.bf16.msra.mxu0 %v5586_v51  ;;  %4717 = vmatpush1.bf16.msra.mxu1 %v5590_v52 }
 0x710   :  { %4687 = vmatprep.subr.bf16.mxu0 %v5592_v53  ;;  %4719 = vmatprep.subr.bf16.mxu1 %v5604_v57 }
 0x713   :  { %4689 = vmatpush1.bf16.msra.mxu0 %v5622_v63  ;;  %4721 = vmatpush1.bf16.msra.mxu1 %v5626_v0 }
 0x714   :  { %4691 = vmatprep.subr.bf16.mxu0 %v5628_v1  ;;  %4723 = vmatprep.subr.bf16.mxu1 %v5640_v6 }
 0x717   :  { %4693 = vmatpush1.bf16.msra.mxu0 %v5658_v16  ;;  %4725 = vmatpush1.bf16.msra.mxu1 %v5662_v19 }
 0x718   :  { %4695 = vmatprep.subr.bf16.mxu0 %v5664_v20  ;;  %4727 = vmatprep.subr.bf16.mxu1 %v5676_v25 }
 0x71b   :  { %4697 = vmatpush1.bf16.msra.mxu0 %v5694_v34  ;;  %4729 = vmatpush1.bf16.msra.mxu1 %v5698_v36 }
 0x71c   :  { %4699 = vmatprep.subr.bf16.mxu0 %v5700_v37  ;;  %4731 = vmatprep.subr.bf16.mxu1 %v5712_v43 }
 0x71f   :  { %4701 = vmatpush1.bf16.msra.mxu0 %v5730_v50  ;;  %4733 = vmatpush1.bf16.msra.mxu1 %v5737_v55 }
 0x720   :  { %4735 = vmatprep.subr.bf16.mxu0 %v5739_v56  ;;  %4799 = vmatprep.subr.bf16.mxu1 %v5748_v60 }
 0x722   :  { %2494 = vmatmul.mubr.f32.vlgmr.msra.gmra.mrb[24].mxu0 %v2260_v14  ;;  %2565 = vmatmul.mubr.f32.vlgmr.msra.gmra.mrb[24].mxu1 %v2260_v14  ;;  %v7760_v14 = vld [vmem:[#allocation23_spill] sm:$0xff] }
 0x723   :  { %4737 = vmatpush1.bf16.msra.mxu0 %v5766_v10  ;;  %4801 = vmatpush1.bf16.msra.mxu1 %v5770_v11 }
 0x724   :  { %4739 = vmatprep.subr.bf16.mxu0 %v5772_v12  ;;  %4803 = vmatprep.subr.bf16.mxu1 %v5784_v23 }
 0x727   :  { %4741 = vmatpush1.bf16.msra.mxu0 %v5804_v33  ;;  %4805 = vmatpush1.bf16.msra.mxu1 %v5808_v38 }
 0x728   :  { %4743 = vmatprep.subr.bf16.mxu0 %v5810_v41  ;;  %4807 = vmatprep.subr.bf16.mxu1 %v5819_v46 }
 0x72b   :  { %4745 = vmatpush1.bf16.msra.mxu0 %v5830_v49  ;;  %4809 = vmatpush1.bf16.msra.mxu1 %v7744_v32 }
 0x72c   :  { %4747 = vmatprep.subr.bf16.mxu0 %v7745_v30  ;;  %4811 = vmatprep.subr.bf16.mxu1 %v7746_v61 }
 0x72f   :  { %4749 = vmatpush1.bf16.msra.mxu0 %v7747_v54  ;;  %4813 = vmatpush1.bf16.msra.mxu1 %v7748_v24 }
 0x730   :  { %4751 = vmatprep.subr.bf16.mxu0 %v7749_v15  ;;  %4815 = vmatprep.subr.bf16.mxu1 %v7750_v47  ;;  %v7761_v47 = vld [vmem:[#allocation24_spill] sm:$0xff] }
 0x731   :  { %v7799_v15 = vld [vmem:[#allocation60_spill] sm:$0xff] }
 0x733   :  { %4753 = vmatpush1.bf16.msra.mxu0 %v7751_v3  ;;  %4817 = vmatpush1.bf16.msra.mxu1 %v7752_v21  ;;  %v7762_v3 = vld [vmem:[#allocation25_spill] sm:$0xff]  ;;  %v7763_v21 = vld [vmem:[#allocation26_spill] sm:$0xff] }
 0x734   :  { %4755 = vmatprep.subr.bf16.mxu0 %v7753_v42  ;;  %4819 = vmatprep.subr.bf16.mxu1 %v7754_v4  ;;  %v7764_v42 = vld [vmem:[#allocation27_spill] sm:$0xff]  ;;  %v7765_v4 = vld [vmem:[#allocation28_spill] sm:$0xff] }
 0x737   :  { %4757 = vmatpush1.bf16.msra.mxu0 %v7755_v5  ;;  %4821 = vmatpush1.bf16.msra.mxu1 %v7756_v48  ;;  %v7766_v5 = vld [vmem:[#allocation29_spill] sm:$0xff]  ;;  %v7767_v48 = vld [vmem:[#allocation30_spill] sm:$0xff] }
 0x738   :  { %4759 = vmatprep.subr.bf16.mxu0 %v7757_v2  ;;  %4823 = vmatprep.subr.bf16.mxu1 %v7758_v29  ;;  %v7768_v2 = vld [vmem:[#allocation31_spill] sm:$0xff]  ;;  %v7769_v29 = vld [vmem:[#allocation32_spill] sm:$0xff] }
 0x73b   :  { %4761 = vmatpush1.bf16.msra.mxu0 %v7759_v59  ;;  %4825 = vmatpush1.bf16.msra.mxu1 %v7760_v14  ;;  %v7770_v59 = vld [vmem:[#allocation33_spill] sm:$0xff]  ;;  %v7771_v14 = vld [vmem:[#allocation34_spill] sm:$0xff] }
 0x73c   :  { %4763 = vmatprep.subr.bf16.mxu0 %v7761_v47  ;;  %4827 = vmatprep.subr.bf16.mxu1 %v7762_v3  ;;  %v7772_v47 = vld [vmem:[#allocation35_spill] sm:$0xff]  ;;  %v7773_v3 = vld [vmem:[#allocation36_spill] sm:$0xff] }
 0x73f   :  { %4765 = vmatpush1.bf16.msra.mxu0 %v7763_v21  ;;  %4829 = vmatpush1.bf16.msra.mxu1 %v7764_v42  ;;  %v7774_v21 = vld [vmem:[#allocation37_spill] sm:$0xff]  ;;  %v7775_v42 = vld [vmem:[#allocation38_spill] sm:$0xff] }
 0x740   :  { %4767 = vmatprep.subr.bf16.mxu0 %v7765_v4  ;;  %4831 = vmatprep.subr.bf16.mxu1 %v7766_v5  ;;  %v7776_v4 = vld [vmem:[#allocation39_spill] sm:$0xff]  ;;  %v7777_v5 = vld [vmem:[#allocation40_spill] sm:$0xff] }
 0x743   :  { %4769 = vmatpush1.bf16.msra.mxu0 %v7767_v48  ;;  %4833 = vmatpush1.bf16.msra.mxu1 %v7768_v2  ;;  %v7778_v48 = vld [vmem:[#allocation41_spill] sm:$0xff]  ;;  %v7779_v2 = vld [vmem:[#allocation42_spill] sm:$0xff] }
 0x744   :  { %4771 = vmatprep.subr.bf16.mxu0 %v7769_v29  ;;  %4835 = vmatprep.subr.bf16.mxu1 %v7770_v59  ;;  %v7780_v29 = vld [vmem:[#allocation43_spill] sm:$0xff]  ;;  %v7781_v59 = vld [vmem:[#allocation44_spill] sm:$0xff] }
 0x747   :  { %4773 = vmatpush1.bf16.msra.mxu0 %v7771_v14  ;;  %4837 = vmatpush1.bf16.msra.mxu1 %v7772_v47  ;;  %v7782_v14 = vld [vmem:[#allocation45_spill] sm:$0xff]  ;;  %v7783_v47 = vld [vmem:[#allocation46_spill] sm:$0xff] }
 0x748   :  { %4775 = vmatprep.subr.bf16.mxu0 %v7773_v3  ;;  %4839 = vmatprep.subr.bf16.mxu1 %v7774_v21  ;;  %v7784_v3 = vld [vmem:[#allocation47_spill] sm:$0xff]  ;;  %v7785_v21 = vld [vmem:[#allocation48_spill] sm:$0xff] }
 0x74b   :  { %4777 = vmatpush1.bf16.msra.mxu0 %v7775_v42  ;;  %4841 = vmatpush1.bf16.msra.mxu1 %v7776_v4  ;;  %v7786_v42 = vld [vmem:[#allocation49_spill] sm:$0xff]  ;;  %v7787_v4 = vld [vmem:[#allocation50_spill] sm:$0xff] }
 0x74c   :  { %4779 = vmatprep.subr.bf16.mxu0 %v7777_v5  ;;  %4843 = vmatprep.subr.bf16.mxu1 %v7778_v48  ;;  %v7788_v5 = vld [vmem:[#allocation51_spill] sm:$0xff]  ;;  %v7789_v48 = vld [vmem:[#allocation52_spill] sm:$0xff] }
 0x74f   :  { %4781 = vmatpush1.bf16.msra.mxu0 %v7779_v2  ;;  %4845 = vmatpush1.bf16.msra.mxu1 %v7780_v29  ;;  %v7790_v2 = vld [vmem:[#allocation53_spill] sm:$0xff]  ;;  %v7791_v29 = vld [vmem:[#allocation54_spill] sm:$0xff] }
 0x750   :  { %4783 = vmatprep.subr.bf16.mxu0 %v7781_v59  ;;  %4847 = vmatprep.subr.bf16.mxu1 %v7782_v14  ;;  %v7792_v59 = vld [vmem:[#allocation55_spill] sm:$0xff]  ;;  %v7793_v14 = vld [vmem:[#allocation56_spill] sm:$0xff] }
 0x753   :  { %4785 = vmatpush1.bf16.msra.mxu0 %v7783_v47  ;;  %4849 = vmatpush1.bf16.msra.mxu1 %v7784_v3  ;;  %v7794_v47 = vld [vmem:[#allocation57_spill] sm:$0xff]  ;;  %v7795_v3 = vld [vmem:[#allocation58_spill] sm:$0xff] }
 0x754   :  { %4787 = vmatprep.subr.bf16.mxu0 %v7785_v21  ;;  %4851 = vmatprep.subr.bf16.mxu1 %v7786_v42  ;;  %v7796_v21 = vld [vmem:[#allocation59_spill] sm:$0xff]  ;;  %v7797_v42 = vld [vmem:[#allocation5_spill] sm:$0xff] }
 0x757   :  { %4789 = vmatpush1.bf16.msra.mxu0 %v7787_v4  ;;  %4853 = vmatpush1.bf16.msra.mxu1 %v7788_v5  ;;  %v7798_v4 = vld [vmem:[#allocation6_spill] sm:$0xff] }
 0x758   :  { %4791 = vmatprep.subr.bf16.mxu0 %v7789_v48  ;;  %4855 = vmatprep.subr.bf16.mxu1 %v7790_v2 }
 0x75b   :  { %4793 = vmatpush1.bf16.msra.mxu0 %v7791_v29  ;;  %4857 = vmatpush1.bf16.msra.mxu1 %v7792_v59 }
 0x75c   :  { %4795 = vmatprep.subr.bf16.mxu0 %v7793_v14  ;;  %4859 = vmatprep.subr.bf16.mxu1 %v7794_v47  ;;  %v7800_v47 = vld [vmem:[#allocation62_spill] sm:$0xff] }
 0x75f   :  { %4797 = vmatpush1.bf16.msra.mxu0 %v7795_v3  ;;  %4861 = vmatpush1.bf16.msra.mxu1 %v7796_v21 }
 0x760   :  { %4863 = vmatprep.subr.bf16.mxu0 %v7797_v42  ;;  %4895 = vmatprep.subr.bf16.mxu1 %v7798_v4 }
 0x7d5   :  { %v2327_v5 = vpop.f32.mrb[22].mxu0  ;;  %v2398_v48 = vpop.f32.mrb[22].mxu1 }
 0x7d6   :  { %v2328_v2 = vadd.f32 %v2327_v5, %v7799_v15  ;;  %v2329_v24 = vpop.f32.mrb[23].mxu0  ;;  %v2400_v29 = vpop.f32.mrb[23].mxu1  ;;  %v2399_v21 = vadd.f32 %v2398_v48, %v7572_v7 }
 0x7d7   :  { %v2330_v59 = vadd.f32 %v2329_v24, %v6427_v45  ;;  %v2401_v3 = vadd.f32 %v2400_v29, %v7800_v47 }
 0x7d8   :  { %v3395_v54 = vmul.f32 -1.442695, %v2328_v2 }
 0x7d9   :  { %v3396_v14 = vmul.f32 -1.442695, %v2330_v59  ;;  %v3397_v61 = vmul.f32 -1.442695, %v2401_v3 }
 0x7da   :  { %5283 = vpow2.f32 %v3395_v54 }
 0x7db   :  { %5285 = vpow2.f32 %v3396_v14 }
 0x7dc   :  { %5287 = vpow2.f32 %v3397_v61 }
 0x7dd   :  { %5289 = vtanh.f32 %v2399_v21 }
 0x7e4   :  { %v5284_v42 = vpop.eup %5283 }
 0x7e5   :  { %v5286_v30 = vpop.eup %5285  ;;  %v2406_v4 = vadd.f32 1.0, %v5284_v42 }
 0x7e6   :  { %v2412_v32 = vadd.f32 1.0, %v5286_v30  ;;  %v5288_v5 = vpop.eup %5287 }
 0x7e7   :  { %5291 = vrcp.f32 %v2406_v4  ;;  %v5290_v15 = vpop.eup %5289  ;;  %v2419_v54 = vadd.f32 1.0, %v5288_v5 }
 0x7e8   :  { %5293 = vrcp.f32 %v2412_v32 }
 0x7e9   :  { %5295 = vrcp.f32 %v2419_v54 }
 0x7f1   :  { %v5292_v24 = vpop.eup %5291 }
 0x7f2   :  { %v5294_v2 = vpop.eup %5293  ;;  %v2423_v59 = vmul.f32 %v5292_v24, %v5290_v15  ;;  %v3398_v15 = vld [vmem:[%s7273_s0 + $0x30] sm:$0xff] }
 0x7f3   :  { %v2422_v14 = vmul.f32 %v5294_v2, %v6899_v8  ;;  %v5296_v2 = vpop.eup %5295 }
 0x7f5   :  { %v2495_v29 = vpop.f32.mrb[24].mxu0  ;;  %v2566_v3 = vpop.f32.mrb[24].mxu1  ;;  %v7014_v47 = vadd.f32 %v2423_v59, %v2422_v14 }
 0x7f6   :  { %v2497_v48 = vpop.f32.mrb[25].mxu0  ;;  %v2568_v42 = vpop.f32.mrb[25].mxu1 }
 0x7f7   :  { %v2575_v61 = vcombine.low %v2495_v29, %v2497_v48  ;;  %v2576_v21 = vcombine.low %v2566_v3, %v2568_v42  ;;  %5297 = vtanh.f32 %v7014_v47 }
 0x7f9   :  { %v2583_v32 = vrot.slane %v2575_v61, %v7515_v62  ;;  %v2590_v30 = vrot.slane %v2576_v21, %v7515_v62 }
 0x7fb   :  { %v2591_v8 = vcombine.low %v2583_v32, %v2590_v30 }
 0x7fd   :  { %v2593_v4 = vadd.f32 %v3398_v15, %v2591_v8 }
 0x7ff   :  { %v3399_v5 = vmul.f32 -1.442695, %v2593_v4  ;;  %v2601_v24 = vrot.slane %v2593_v4, 2  ;;  %v2612_v29 = vrot.slane %v2593_v4, 6  ;;  %v2609_v42 = vrot.slane %v2593_v4, 4 }
 0x801   :  { %v5298_v59 = vpop.eup %5297  ;;  %5299 = vpow2.f32 %v3399_v5  ;;  %v3400_v54 = vmul.f32 -1.442695, %v2601_v24  ;;  %v3401_v3 = vmul.f32 -1.442695, %v2612_v29 }
 0x802   :  { %v2426_v14 = vmul.f32 %v5298_v59, %v5296_v2 }
 0x803   :  { %5301 = vpow2.f32 %v3400_v54 }
 0x804   :  { %2689 = vmatprep.mubr.f32.mxu0 %v2426_v14  ;;  %2760 = vmatprep.mubr.f32.mxu1 %v2426_v14  ;;  %5303 = vpow2.f32 %v3401_v3  ;;  %v7843_v3 = vld [vmem:[#allocation49_spill] sm:$0xff] }
 0x80b   :  { %v5300_v48 = vpop.eup %5299 }
 0x80c   :  { %v2597_v61 = vadd.f32 1.0, %v5300_v48  ;;  %v7844_v48 = vld [vmem:[#allocation50_spill] sm:$0xff] }
 0x80d   :  { %v5302_v21 = vpop.eup %5301 }
 0x80e   :  { %5305 = vrcp.f32 %v2597_v61  ;;  %v2606_v32 = vadd.f32 1.0, %v5302_v21  ;;  %v5304_v30 = vpop.eup %5303  ;;  %v7846_v61 = vld [vmem:[#allocation52_spill] sm:$0xff]  ;;  %v7847_v21 = vld [vmem:[#allocation53_spill] sm:$0xff] }
 0x80f   :  { %5307 = vtanh.f32 %v2609_v42  ;;  %v2617_v24 = vadd.f32 1.0, %v5304_v30  ;;  %v7845_v42 = vld [vmem:[#allocation51_spill] sm:$0xff] }
 0x810   :  { %5309 = vrcp.f32 %v2606_v32  ;;  %v7848_v32 = vld [vmem:[#allocation54_spill] sm:$0xff]  ;;  %v7849_v30 = vld [vmem:[#allocation55_spill] sm:$0xff] }
 0x811   :  { %5311 = vrcp.f32 %v2617_v24  ;;  %v7853_v24 = vld [vmem:[#allocation59_spill] sm:$0xff] }
 0x818   :  { %v5306_v15 = vpop.eup %5305 }
 0x819   :  { %v5308_v8 = vpop.eup %5307 }
 0x81a   :  { %v5310_v5 = vpop.eup %5309  ;;  %v2621_v59 = vmul.f32 %v5308_v8, %v5306_v15  ;;  %v7850_v15 = vld [vmem:[#allocation56_spill] sm:$0xff]  ;;  %v7851_v8 = vld [vmem:[#allocation57_spill] sm:$0xff] }
 0x81b   :  { %v2620_v2 = vmul.f32 %v5310_v5, %v6908_v28  ;;  %v5312_v4 = vpop.eup %5311  ;;  %v7842_v28 = vld [vmem:[#allocation48_spill] sm:$0xff]  ;;  %v7852_v5 = vld [vmem:[#allocation58_spill] sm:$0xff] }
 0x81d   :  { %v7023_v54 = vadd.f32 %v2621_v59, %v2620_v2 }
 0x81f   :  { %5313 = vtanh.f32 %v7023_v54 }
 0x829   :  { %v5314_v14 = vpop.eup %5313 }
 0x82a   :  { %v2624_v29 = vmul.f32 %v5314_v14, %v5312_v4  ;;  %v7854_v4 = vld [vmem:[#allocation60_spill] sm:$0xff] }
 0x82c   :  { %2690 = vmatmul.mubr.f32.vlgmr.msra.gmra.mrb[26].mxu0 %v2624_v29  ;;  %2761 = vmatmul.mubr.f32.vlgmr.msra.gmra.mrb[26].mxu1 %v2624_v29 }
 0x82d   :  { %4865 = vmatpush1.bf16.msra.mxu0 %v5461_v9  ;;  %4897 = vmatpush1.bf16.msra.mxu1 %v5473_v13  ;;  %v7801_v9 = vld [vmem:[#allocation7_spill] sm:$0xff]  ;;  %v7802_v13 = vld [vmem:[#allocation8_spill] sm:$0xff] }
 0x82e   :  { %4867 = vmatprep.subr.bf16.mxu0 %v5486_v17  ;;  %4899 = vmatprep.subr.bf16.mxu1 %v5488_v18  ;;  %v7803_v17 = vld [vmem:[#allocation9_spill] sm:$0xff]  ;;  %v7804_v18 = vld [vmem:[#allocation10_spill] sm:$0xff] }
 0x82f   :  { %2857 = vmatprep.mubr.f32.mxu0 %v7461_v58  ;;  %2928 = vmatprep.mubr.f32.mxu1 %v7461_v58 }
 0x831   :  { %4869 = vmatpush1.bf16.msra.mxu0 %v5500_v22  ;;  %4901 = vmatpush1.bf16.msra.mxu1 %v5513_v26  ;;  %v7805_v22 = vld [vmem:[#allocation11_spill] sm:$0xff]  ;;  %v7806_v26 = vld [vmem:[#allocation12_spill] sm:$0xff] }
 0x832   :  { %4871 = vmatprep.subr.bf16.mxu0 %v5515_v27  ;;  %4903 = vmatprep.subr.bf16.mxu1 %v5526_v31  ;;  %v7807_v27 = vld [vmem:[#allocation13_spill] sm:$0xff]  ;;  %v7808_v31 = vld [vmem:[#allocation14_spill] sm:$0xff] }
 0x835   :  { %4873 = vmatpush1.bf16.msra.mxu0 %v5538_v35  ;;  %4905 = vmatpush1.bf16.msra.mxu1 %v5551_v39  ;;  %v7809_v35 = vld [vmem:[#allocation15_spill] sm:$0xff]  ;;  %v7810_v39 = vld [vmem:[#allocation16_spill] sm:$0xff] }
 0x836   :  { %4875 = vmatprep.subr.bf16.mxu0 %v5553_v40  ;;  %4907 = vmatprep.subr.bf16.mxu1 %v5565_v44  ;;  %v7811_v40 = vld [vmem:[#allocation17_spill] sm:$0xff]  ;;  %v7812_v44 = vld [vmem:[#allocation18_spill] sm:$0xff] }
 0x839   :  { %4877 = vmatpush1.bf16.msra.mxu0 %v5586_v51  ;;  %4909 = vmatpush1.bf16.msra.mxu1 %v5590_v52  ;;  %v7813_v51 = vld [vmem:[#allocation19_spill] sm:$0xff]  ;;  %v7814_v52 = vld [vmem:[#allocation20_spill] sm:$0xff] }
 0x83a   :  { %4879 = vmatprep.subr.bf16.mxu0 %v5592_v53  ;;  %4911 = vmatprep.subr.bf16.mxu1 %v5604_v57  ;;  %v7815_v53 = vld [vmem:[#allocation21_spill] sm:$0xff]  ;;  %v7816_v57 = vld [vmem:[#allocation22_spill] sm:$0xff] }
 0x83d   :  { %4881 = vmatpush1.bf16.msra.mxu0 %v5622_v63  ;;  %4913 = vmatpush1.bf16.msra.mxu1 %v5626_v0  ;;  %v7817_v63 = vld [vmem:[#allocation23_spill] sm:$0xff]  ;;  %v7818_v0 = vld [vmem:[#allocation24_spill] sm:$0xff] }
 0x83e   :  { %4883 = vmatprep.subr.bf16.mxu0 %v5628_v1  ;;  %4915 = vmatprep.subr.bf16.mxu1 %v5640_v6  ;;  %v7819_v1 = vld [vmem:[#allocation25_spill] sm:$0xff]  ;;  %v7820_v6 = vld [vmem:[#allocation26_spill] sm:$0xff] }
 0x841   :  { %4885 = vmatpush1.bf16.msra.mxu0 %v5658_v16  ;;  %4917 = vmatpush1.bf16.msra.mxu1 %v5662_v19  ;;  %v7821_v16 = vld [vmem:[#allocation27_spill] sm:$0xff]  ;;  %v7822_v19 = vld [vmem:[#allocation28_spill] sm:$0xff] }
 0x842   :  { %4887 = vmatprep.subr.bf16.mxu0 %v5664_v20  ;;  %4919 = vmatprep.subr.bf16.mxu1 %v5676_v25  ;;  %v7823_v20 = vld [vmem:[#allocation29_spill] sm:$0xff]  ;;  %v7824_v25 = vld [vmem:[#allocation30_spill] sm:$0xff] }
 0x845   :  { %4889 = vmatpush1.bf16.msra.mxu0 %v5694_v34  ;;  %4921 = vmatpush1.bf16.msra.mxu1 %v5698_v36  ;;  %v7825_v34 = vld [vmem:[#allocation31_spill] sm:$0xff]  ;;  %v7826_v36 = vld [vmem:[#allocation32_spill] sm:$0xff] }
 0x846   :  { %4891 = vmatprep.subr.bf16.mxu0 %v5700_v37  ;;  %4923 = vmatprep.subr.bf16.mxu1 %v5712_v43  ;;  %v7827_v37 = vld [vmem:[#allocation33_spill] sm:$0xff]  ;;  %v7828_v43 = vld [vmem:[#allocation34_spill] sm:$0xff] }
 0x849   :  { %4893 = vmatpush1.bf16.msra.mxu0 %v5730_v50  ;;  %4925 = vmatpush1.bf16.msra.mxu1 %v5737_v55  ;;  %v7829_v50 = vld [vmem:[#allocation35_spill] sm:$0xff]  ;;  %v7830_v55 = vld [vmem:[#allocation36_spill] sm:$0xff] }
 0x84a   :  { %4927 = vmatprep.subr.bf16.mxu0 %v5739_v56  ;;  %4991 = vmatprep.subr.bf16.mxu1 %v5748_v60  ;;  %v7831_v56 = vld [vmem:[#allocation37_spill] sm:$0xff]  ;;  %v7832_v60 = vld [vmem:[#allocation38_spill] sm:$0xff] }
 0x84c   :  { %2858 = vmatmul.mubr.f32.vlgmr.msra.gmra.mrb[28].mxu0 %v2624_v29  ;;  %2929 = vmatmul.mubr.f32.vlgmr.msra.gmra.mrb[28].mxu1 %v2624_v29 }
 0x84d   :  { %4929 = vmatpush1.bf16.msra.mxu0 %v5766_v10  ;;  %4993 = vmatpush1.bf16.msra.mxu1 %v5770_v11  ;;  %v7833_v10 = vld [vmem:[#allocation39_spill] sm:$0xff]  ;;  %v7834_v11 = vld [vmem:[#allocation40_spill] sm:$0xff] }
 0x84e   :  { %4931 = vmatprep.subr.bf16.mxu0 %v5772_v12  ;;  %4995 = vmatprep.subr.bf16.mxu1 %v5784_v23  ;;  %v7835_v12 = vld [vmem:[#allocation41_spill] sm:$0xff]  ;;  %v7836_v23 = vld [vmem:[#allocation42_spill] sm:$0xff] }
 0x851   :  { %4933 = vmatpush1.bf16.msra.mxu0 %v5804_v33  ;;  %4997 = vmatpush1.bf16.msra.mxu1 %v5808_v38  ;;  %v7837_v33 = vld [vmem:[#allocation43_spill] sm:$0xff]  ;;  %v7838_v38 = vld [vmem:[#allocation44_spill] sm:$0xff] }
 0x852   :  { %4935 = vmatprep.subr.bf16.mxu0 %v5810_v41  ;;  %4999 = vmatprep.subr.bf16.mxu1 %v5819_v46  ;;  %v7839_v41 = vld [vmem:[#allocation45_spill] sm:$0xff]  ;;  %v7840_v46 = vld [vmem:[#allocation46_spill] sm:$0xff] }
 0x855   :  { %4937 = vmatpush1.bf16.msra.mxu0 %v5830_v49  ;;  %5001 = vmatpush1.bf16.msra.mxu1 %v7801_v9  ;;  %v7841_v49 = vld [vmem:[#allocation47_spill] sm:$0xff] }
 0x856   :  { %4939 = vmatprep.subr.bf16.mxu0 %v7802_v13  ;;  %5003 = vmatprep.subr.bf16.mxu1 %v7803_v17 }
 0x859   :  { %4941 = vmatpush1.bf16.msra.mxu0 %v7804_v18  ;;  %5005 = vmatpush1.bf16.msra.mxu1 %v7805_v22  ;;  %v7855_v22 = vld [vmem:[#allocation62_spill] sm:$0xff] }
 0x85a   :  { %4943 = vmatprep.subr.bf16.mxu0 %v7806_v26  ;;  %5007 = vmatprep.subr.bf16.mxu1 %v7807_v27 }
 0x85d   :  { %4945 = vmatpush1.bf16.msra.mxu0 %v7808_v31  ;;  %5009 = vmatpush1.bf16.msra.mxu1 %v7809_v35 }
 0x85e   :  { %4947 = vmatprep.subr.bf16.mxu0 %v7810_v39  ;;  %5011 = vmatprep.subr.bf16.mxu1 %v7811_v40 }
 0x861   :  { %4949 = vmatpush1.bf16.msra.mxu0 %v7812_v44  ;;  %5013 = vmatpush1.bf16.msra.mxu1 %v7813_v51 }
 0x862   :  { %4951 = vmatprep.subr.bf16.mxu0 %v7814_v52  ;;  %5015 = vmatprep.subr.bf16.mxu1 %v7815_v53 }
 0x865   :  { %4953 = vmatpush1.bf16.msra.mxu0 %v7816_v57  ;;  %5017 = vmatpush1.bf16.msra.mxu1 %v7817_v63 }
 0x866   :  { %4955 = vmatprep.subr.bf16.mxu0 %v7818_v0  ;;  %5019 = vmatprep.subr.bf16.mxu1 %v7819_v1 }
 0x869   :  { %4957 = vmatpush1.bf16.msra.mxu0 %v7820_v6  ;;  %5021 = vmatpush1.bf16.msra.mxu1 %v7821_v16 }
 0x86a   :  { %4959 = vmatprep.subr.bf16.mxu0 %v7822_v19  ;;  %5023 = vmatprep.subr.bf16.mxu1 %v7823_v20 }
 0x86d   :  { %4961 = vmatpush1.bf16.msra.mxu0 %v7824_v25  ;;  %5025 = vmatpush1.bf16.msra.mxu1 %v7825_v34 }
 0x86e   :  { %4963 = vmatprep.subr.bf16.mxu0 %v7826_v36  ;;  %5027 = vmatprep.subr.bf16.mxu1 %v7827_v37 }
 0x871   :  { %4965 = vmatpush1.bf16.msra.mxu0 %v7828_v43  ;;  %5029 = vmatpush1.bf16.msra.mxu1 %v7829_v50  ;;  %v3405_v50 = vld [vmem:[%s7273_s0 + $0x38] sm:$0xff] }
 0x872   :  { %4967 = vmatprep.subr.bf16.mxu0 %v7830_v55  ;;  %5031 = vmatprep.subr.bf16.mxu1 %v7831_v56 }
 0x875   :  { %4969 = vmatpush1.bf16.msra.mxu0 %v7832_v60  ;;  %5033 = vmatpush1.bf16.msra.mxu1 %v7833_v10 }
 0x876   :  { %4971 = vmatprep.subr.bf16.mxu0 %v7834_v11  ;;  %5035 = vmatprep.subr.bf16.mxu1 %v7835_v12 }
 0x879   :  { %4973 = vmatpush1.bf16.msra.mxu0 %v7836_v23  ;;  %5037 = vmatpush1.bf16.msra.mxu1 %v7837_v33 }
 0x87a   :  { %4975 = vmatprep.subr.bf16.mxu0 %v7838_v38  ;;  %5039 = vmatprep.subr.bf16.mxu1 %v7839_v41 }
 0x87d   :  { %4977 = vmatpush1.bf16.msra.mxu0 %v7840_v46  ;;  %5041 = vmatpush1.bf16.msra.mxu1 %v7841_v49 }
 0x87e   :  { %4979 = vmatprep.subr.bf16.mxu0 %v7842_v28  ;;  %5043 = vmatprep.subr.bf16.mxu1 %v7843_v3 }
 0x881   :  { %4981 = vmatpush1.bf16.msra.mxu0 %v7844_v48  ;;  %5045 = vmatpush1.bf16.msra.mxu1 %v7845_v42 }
 0x882   :  { %4983 = vmatprep.subr.bf16.mxu0 %v7846_v61  ;;  %5047 = vmatprep.subr.bf16.mxu1 %v7847_v21 }
 0x885   :  { %4985 = vmatpush1.bf16.msra.mxu0 %v7848_v32  ;;  %5049 = vmatpush1.bf16.msra.mxu1 %v7849_v30 }
 0x886   :  { %4987 = vmatprep.subr.bf16.mxu0 %v7850_v15  ;;  %5051 = vmatprep.subr.bf16.mxu1 %v7851_v8 }
 0x889   :  { %4989 = vmatpush1.bf16.msra.mxu0 %v7852_v5  ;;  %5053 = vmatpush1.bf16.msra.mxu1 %v7853_v24 }
 0x8ff   :  { %v2691_v2 = vpop.f32.mrb[26].mxu0  ;;  %v2762_v59 = vpop.f32.mrb[26].mxu1 }
 0x900   :  { %v2692_v14 = vadd.f32 %v2691_v2, %v7854_v4  ;;  %v2693_v29 = vpop.f32.mrb[27].mxu0  ;;  %v2764_v9 = vpop.f32.mrb[27].mxu1  ;;  %v2763_v31 = vadd.f32 %v2762_v59, %v7572_v7  ;;  %v3155_v2 = vld [vmem:[%s7277_s4] sm:$0xff]  ;;  %v3156_v59 = vld [vmem:[%s7277_s4 + $0x8] sm:$0xff] }
 0x901   :  { %v2694_v13 = vadd.f32 %v2693_v29, %v6427_v45  ;;  %v2765_v26 = vadd.f32 %v2764_v9, %v7855_v22  ;;  %v5389_v29 = vmov 0.0|0.0   ;;  %v3158_v9 = vld [vmem:[%s7277_s4 + $0x18] sm:$0xff] }
 0x902   :  { %v3402_v17 = vmul.f32 -1.442695, %v2692_v14  ;;  %v5055_v14 = vpack.c.bf16 %v3156_v59, %v3155_v2  ;;  %5054 = vmatprep.subr.bf16.mxu0 %v5389_v29  ;;  %5078 = vmatprep.subr.bf16.mxu1 %v5389_v29 }
 0x903   :  { %v3403_v18 = vmul.f32 -1.442695, %v2694_v13  ;;  %v3404_v27 = vmul.f32 -1.442695, %v2765_v26 }
 0x904   :  { %5315 = vpow2.f32 %v3402_v17  ;;  %v3159_v17 = vld [vmem:[%s7277_s4 + $0x20] sm:$0xff] }
 0x905   :  { %5317 = vpow2.f32 %v3403_v18  ;;  %v3160_v18 = vld [vmem:[%s7277_s4 + $0x28] sm:$0xff] }
 0x906   :  { %5319 = vpow2.f32 %v3404_v27  ;;  %v5061_v26 = vpack.c.bf16 %v3160_v18, %v3159_v17  ;;  %v3161_v27 = vld [vmem:[%s7277_s4 + $0x30] sm:$0xff] }
 0x907   :  { %5321 = vtanh.f32 %v2763_v31  ;;  %v3162_v31 = vld [vmem:[%s7277_s4 + $0x38] sm:$0xff] }
 0x90e   :  { %v5316_v35 = vpop.eup %5315 }
 0x90f   :  { %v5318_v39 = vpop.eup %5317  ;;  %v2770_v40 = vadd.f32 1.0, %v5316_v35  ;;  %v5064_v35 = vpack.c.bf16 %v3162_v31, %v3161_v27  ;;  %v3264_v27 = vld [vmem:[%s7279_s6 + $0x78] sm:$0xff] }
 0x910   :  { %v2776_v44 = vadd.f32 1.0, %v5318_v39  ;;  %v5320_v51 = vpop.eup %5319  ;;  %v3163_v39 = vld [vmem:[%s7277_s4 + $0x40] sm:$0xff] }
 0x911   :  { %5323 = vrcp.f32 %v2770_v40  ;;  %v5322_v52 = vpop.eup %5321  ;;  %v2783_v0 = vadd.f32 1.0, %v5320_v51  ;;  %v3164_v40 = vld [vmem:[%s7277_s4 + $0x48] sm:$0xff]  ;;  %v3165_v51 = vld [vmem:[%s7277_s4 + $0x50] sm:$0xff] }
 0x912   :  { %5325 = vrcp.f32 %v2776_v44  ;;  %v5067_v44 = vpack.c.bf16 %v3164_v40, %v3163_v39 }
 0x913   :  { %5327 = vrcp.f32 %v2783_v0 }
 0x91b   :  { %v5324_v53 = vpop.eup %5323 }
 0x91c   :  { %v5326_v57 = vpop.eup %5325  ;;  %v2787_v63 = vmul.f32 %v5324_v53, %v5322_v52  ;;  %v3166_v52 = vld [vmem:[%s7277_s4 + $0x58] sm:$0xff]  ;;  %v3167_v53 = vld [vmem:[%s7277_s4 + $0x60] sm:$0xff] }
 0x91d   :  { %v2786_v1 = vmul.f32 %v5326_v57, %v7014_v47  ;;  %v5328_v10 = vpop.eup %5327  ;;  %v5070_v57 = vpack.c.bf16 %v3166_v52, %v3165_v51  ;;  %v3413_v51 = vld [vmem:[%s7280_s7] ss:$0 sm:$0xff] }
 0x91f   :  { %v2859_v6 = vpop.f32.mrb[28].mxu0  ;;  %v2930_v16 = vpop.f32.mrb[28].mxu1  ;;  %v7127_v19 = vadd.f32 %v2787_v63, %v2786_v1  ;;  %v3168_v63 = vld [vmem:[%s7277_s4 + $0x68] sm:$0xff]  ;;  %v3169_v1 = vld [vmem:[%s7277_s4 + $0x70] sm:$0xff] }
 0x920   :  { %v2861_v20 = vpop.f32.mrb[29].mxu0  ;;  %v2932_v25 = vpop.f32.mrb[29].mxu1  ;;  %v5073_v0 = vpack.c.bf16 %v3168_v63, %v3167_v53 }
 0x921   :  { %v2939_v34 = vcombine.low %v2859_v6, %v2861_v20  ;;  %v2940_v36 = vcombine.low %v2930_v16, %v2932_v25  ;;  %5329 = vtanh.f32 %v7127_v19  ;;  %v3170_v6 = vld [vmem:[%s7277_s4 + $0x78] sm:$0xff]  ;;  %v3250_v20 = vld [vmem:[%s7279_s6 + $0x8] sm:$0xff]  ;;  %v3251_v25 = vld [vmem:[%s7279_s6 + $0x10] sm:$0xff] }
 0x922   :  { %v5076_v16 = vpack.c.bf16 %v3170_v6, %v3169_v1 }
 0x923   :  { %v2947_v37 = vrot.slane %v2939_v34, %v7515_v62  ;;  %v2954_v43 = vrot.slane %v2940_v36, %v7515_v62  ;;  %v3252_v36 = vld [vmem:[%s7279_s6 + $0x18] sm:$0xff] }
 0x925   :  { %v2955_v47 = vcombine.low %v2947_v37, %v2954_v43  ;;  %v5082_v37 = vpack.c.bf16 %v3252_v36, %v3251_v25  ;;  %v3253_v43 = vld [vmem:[%s7279_s6 + $0x20] sm:$0xff] }
 0x927   :  { %v2957_v55 = vadd.f32 %v3405_v50, %v2955_v47  ;;  %v3254_v50 = vld [vmem:[%s7279_s6 + $0x28] sm:$0xff] }
 0x928   :  { %v5085_v47 = vpack.c.bf16 %v3254_v50, %v3253_v43 }
 0x929   :  { %v3406_v56 = vmul.f32 -1.442695, %v2957_v55  ;;  %v2965_v60 = vrot.slane %v2957_v55, 2  ;;  %v2976_v33 = vrot.slane %v2957_v55, 6  ;;  %v2973_v62 = vrot.slane %v2957_v55, 4  ;;  %v3255_v55 = vld [vmem:[%s7279_s6 + $0x30] sm:$0xff] }
 0x92b   :  { %v5330_v11 = vpop.eup %5329  ;;  %5331 = vpow2.f32 %v3406_v56  ;;  %v3407_v12 = vmul.f32 -1.442695, %v2965_v60  ;;  %v3408_v38 = vmul.f32 -1.442695, %v2976_v33  ;;  %v3256_v56 = vld [vmem:[%s7279_s6 + $0x38] sm:$0xff] }
 0x92c   :  { %v2790_v23 = vmul.f32 %v5330_v11, %v5328_v10  ;;  %v5088_v60 = vpack.c.bf16 %v3256_v56, %v3255_v55  ;;  %v3257_v10 = vld [vmem:[%s7279_s6 + $0x40] sm:$0xff]  ;;  %v3258_v11 = vld [vmem:[%s7279_s6 + $0x48] sm:$0xff]  ;;  %v3260_v33 = vld [vmem:[%s7279_s6 + $0x58] sm:$0xff] }
 0x92d   :  { %5333 = vpow2.f32 %v3407_v12  ;;  %v5091_v12 = vpack.c.bf16 %v3258_v11, %v3257_v10 }
 0x92e   :  { %3053 = vmatprep.mubr.f32.mxu0 %v2790_v23  ;;  %3124 = vmatprep.mubr.f32.mxu1 %v2790_v23  ;;  %5335 = vpow2.f32 %v3408_v38  ;;  %v3259_v23 = vld [vmem:[%s7279_s6 + $0x50] sm:$0xff] }
 0x92f   :  { %v5094_v38 = vpack.c.bf16 %v3260_v33, %v3259_v23 }
 0x935   :  { %v5332_v41 = vpop.eup %5331 }
 0x936   :  { %v2961_v46 = vadd.f32 1.0, %v5332_v41  ;;  %v3261_v41 = vld [vmem:[%s7279_s6 + $0x60] sm:$0xff] }
 0x937   :  { %v5334_v49 = vpop.eup %5333 }
 0x938   :  { %5337 = vrcp.f32 %v2961_v46  ;;  %v2970_v28 = vadd.f32 1.0, %v5334_v49  ;;  %v5336_v3 = vpop.eup %5335 }
 0x939   :  { %5339 = vtanh.f32 %v2973_v62  ;;  %v2981_v21 = vadd.f32 1.0, %v5336_v3  ;;  %v3262_v62 = vld [vmem:[%s7279_s6 + $0x68] sm:$0xff] }
 0x93a   :  { %5341 = vrcp.f32 %v2970_v28  ;;  %v5097_v46 = vpack.c.bf16 %v3262_v62, %v3261_v41 }
 0x93b   :  { %5343 = vrcp.f32 %v2981_v21 }
 0x942   :  { %v5338_v48 = vpop.eup %5337 }
 0x943   :  { %v5340_v42 = vpop.eup %5339 }
 0x944   :  { %v5342_v61 = vpop.eup %5341  ;;  %v2985_v30 = vmul.f32 %v5340_v42, %v5338_v48 }
 0x945   :  { %v2984_v32 = vmul.f32 %v5342_v61, %v7023_v54  ;;  %v5344_v8 = vpop.eup %5343  ;;  %v3157_v54 = vld [vmem:[%s7277_s4 + $0x10] sm:$0xff] }
 0x946   :  { %v5058_v13 = vpack.c.bf16 %v3158_v9, %v3157_v54 }
 0x947   :  { %v2986_v15 = vadd.f32 %v2985_v30, %v2984_v32 }
 0x949   :  { %5345 = vtanh.f32 %v2986_v15 }
 0x953   :  { %v5346_v5 = vpop.eup %5345 }
 0x954   :  { %v2988_v24 = vmul.f32 %v5346_v5, %v5344_v8 }
 0x956   :  { %3054 = vmatmul.mubr.f32.vlgmr.msra.gmra.mrb[30].mxu0 %v2988_v24  ;;  %3125 = vmatmul.mubr.f32.vlgmr.msra.gmra.mrb[30].mxu1 %v2988_v24 }
 0x957   :  { %5056 = vmatpush3.bf16.msra.mxu0 %v5055_v14  ;;  %3480 = vmatprep.mubr.msk.f32.mxu0 %vm5390_vm0, %v7461_v58 }
 0x958   :  { %5057 = vmatprep.subr.bf16.mxu0 %v5389_v29  ;;  %3515 = vmatprep.mubr.msk.f32.mxu1 %vm5390_vm0, %v7461_v58  ;;  %v3249_v58 = vld [vmem:[%s7279_s6] sm:$0xff] }
 0x959   :  { %v5079_v34 = vpack.c.bf16 %v3250_v20, %v3249_v58 }
 0x95b   :  { %5059 = vmatpush3.bf16.msra.mxu0 %v5058_v13  ;;  %5080 = vmatpush3.bf16.msra.mxu1 %v5079_v34 }
 0x95c   :  { %5060 = vmatprep.subr.bf16.mxu0 %v5389_v29  ;;  %5081 = vmatprep.subr.bf16.mxu1 %v5389_v29 }
 0x95f   :  { %5062 = vmatpush3.bf16.msra.mxu0 %v5061_v26  ;;  %5083 = vmatpush3.bf16.msra.mxu1 %v5082_v37  ;;  %v3263_v26 = vld [vmem:[%s7279_s6 + $0x70] sm:$0xff]  ;;  %s5363_s6 = scalar_lea.vmem %s3350_s1, 32 }
 0x960   :  { %5063 = vmatprep.subr.bf16.mxu0 %v5389_v29  ;;  %5084 = vmatprep.subr.bf16.mxu1 %v5389_v29  ;;  %v5100_v31 = vpack.c.bf16 %v3264_v27, %v3263_v26  ;;  %p5364_p0 = scmp.ne.s32.totalorder %s3350_s1, %s5363_s6  ;;  %p5369_p2 = scmp.lt.s32.totalorder %s5363_s6, %s5363_s6 }
 0x962   :  { %p5370_p3 = por %p5369_p2, %p5368_p1 }
 0x963   :  { %5065 = vmatpush3.bf16.msra.mxu0 %v5064_v35  ;;  %5086 = vmatpush3.bf16.msra.mxu1 %v5085_v47 }
 0x964   :  { %5066 = vmatprep.subr.bf16.mxu0 %v5389_v29  ;;  %5087 = vmatprep.subr.bf16.mxu1 %v5389_v29  ;;  %p5371_p4 = pnand %p5370_p3, %p5364_p0 }
 0x967   :  { %5068 = vmatpush3.bf16.msra.mxu0 %v5067_v44  ;;  %5089 = vmatpush3.bf16.msra.mxu1 %v5088_v60 }
 0x968   :  { %5069 = vmatprep.subr.bf16.mxu0 %v5389_v29  ;;  %5090 = vmatprep.subr.bf16.mxu1 %v5389_v29 }
 0x96b   :  { %5071 = vmatpush3.bf16.msra.mxu0 %v5070_v57  ;;  %5092 = vmatpush3.bf16.msra.mxu1 %v5091_v12 }
 0x96c   :  { %5072 = vmatprep.subr.bf16.mxu0 %v5389_v29  ;;  %5093 = vmatprep.subr.bf16.mxu1 %v5389_v29 }
 0x96f   :  { %5074 = vmatpush3.bf16.msra.mxu0 %v5073_v0  ;;  %5095 = vmatpush3.bf16.msra.mxu1 %v5094_v38 }
 0x970   :  { %5075 = vmatprep.subr.bf16.mxu0 %v5389_v29  ;;  %5096 = vmatprep.subr.bf16.mxu1 %v5389_v29 }
 0x973   :  { %5077 = vmatpush3.bf16.msra.mxu0 %v5076_v16  ;;  %5098 = vmatpush3.bf16.msra.mxu1 %v5097_v46 }
 0x974   :  { %5099 = vmatprep.subr.bf16.mxu1 %v5389_v29 }
 0x977   :  { %5101 = vmatpush3.bf16.msra.mxu1 %v5100_v31 }
 0xa29   :  { %v3055_v49 = vpop.f32.mrb[30].mxu0  ;;  %v3126_v28 = vpop.f32.mrb[30].mxu1 }
 0xa2a   :  { %v3056_v3 = vadd.f32 %v3055_v49, %v7854_v4  ;;  %v3057_v48 = vpop.f32.mrb[31].mxu0  ;;  %v3128_v42 = vpop.f32.mrb[31].mxu1  ;;  %v3127_v8 = vadd.f32 %v3126_v28, %v7572_v7 }
 0xa2b   :  { %v3058_v61 = vadd.f32 %v3057_v48, %v6427_v45  ;;  %v3129_v30 = vadd.f32 %v3128_v42, %v7855_v22 }
 0xa2c   :  { %v3409_v21 = vmul.f32 -1.442695, %v3056_v3 }
 0xa2d   :  { %v3410_v32 = vmul.f32 -1.442695, %v3058_v61  ;;  %v3411_v15 = vmul.f32 -1.442695, %v3129_v30 }
 0xa2e   :  { %5347 = vpow2.f32 %v3409_v21 }
 0xa2f   :  { %5349 = vpow2.f32 %v3410_v32 }
 0xa30   :  { %5351 = vpow2.f32 %v3411_v15 }
 0xa31   :  { %5353 = vtanh.f32 %v3127_v8 }
 0xa38   :  { %v5348_v5 = vpop.eup %5347 }
 0xa39   :  { %v5350_v24 = vpop.eup %5349  ;;  %v3134_v2 = vadd.f32 1.0, %v5348_v5 }
 0xa3a   :  { %v3140_v59 = vadd.f32 1.0, %v5350_v24  ;;  %v5352_v4 = vpop.eup %5351 }
 0xa3b   :  { %5355 = vrcp.f32 %v3134_v2  ;;  %v5354_v14 = vpop.eup %5353  ;;  %v3147_v9 = vadd.f32 1.0, %v5352_v4 }
 0xa3c   :  { %5357 = vrcp.f32 %v3140_v59 }
 0xa3d   :  { %5359 = vrcp.f32 %v3147_v9 }
 0xa45   :  { %v5356_v45 = vpop.eup %5355 }
 0xa46   :  { %v5358_v29 = vpop.eup %5357  ;;  %v3151_v54 = vmul.f32 %v5356_v45, %v5354_v14 }
 0xa47   :  { %v3150_v13 = vmul.f32 %v5358_v29, %v7127_v19  ;;  %v5360_v7 = vpop.eup %5359  ;;  %v3412_v19 = vld [vmem:[%s7278_s5] ss:$0 sm:$0xff] }
 0xa49   :  { %v3152_v22 = vadd.f32 %v3151_v54, %v3150_v13 }
 0xa4b   :  { %5361 = vtanh.f32 %v3152_v22 }
 0xa55   :  { %v5362_v17 = vpop.eup %5361 }
 0xa56   :  { %v3154_v18 = vmul.f32 %v5362_v17, %v5360_v7 }
 0xa58   :  { %3481 = vmatmul.mubr.f32.vlgmr.msra.gmra.mrb[32].mxu0 %v3154_v18 }
 0xb2b   :  { %v3244_v35 = vpop.f32.mrb[32].mxu0 }
 0xb2c   :  { %v3245_v39 = vadd.f32 %v3412_v19, %v3244_v35  ;;  %v3482_v40 = vpop.f32.mrb[33].mxu0 }
 0xb2e   :  { %v3248_v44 = vmax.f32 %v3245_v39, 0.0 }
 0xb30   :  { %3516 = vmatmul.mubr.f32.vlgmr.msra.gmra.mrb[32].mxu1 %v3248_v44 }
 0xc03   :  { %v3338_v52 = vpop.f32.mrb[32].mxu1 }
 0xc04   :  { %v3339_v53 = vadd.f32 %v3413_v51, %v3338_v52  ;;  %v3517_v57 = vpop.f32.mrb[33].mxu1 }
 0xc06   :  { %3342 = vst [vmem:[#allocation2] sm:$0x3] %v3339_v53 }
 0xc07   :  { %5374 = shalt.err (!%p5371_p4)
}
 0xc08   :  { %s5375_s10 = scalar_lea.hbm %s7281_s8, 32 }
 0xc09   :  { %p5376_p5 = scmp.ne.s32.totalorder %s7281_s8, %s5375_s10  ;;  %p5379_p6 = scmp.lt.u32.totalorder %s5375_s10, %s7281_s8 }
 0xc0b   :  { %p5381_p7 = pnand %p5379_p6, %p5376_p5 }
 0xc0d   :  { %5384 = shalt.err (!%p5381_p7)
}
 0xc0e   :  { %3352 = dma.vmem_to_hbm [thread:$0]  %s3350_s1, 32, %s7281_s8, [#allocation3]  }
 0xc0f   :  { %5385 = dma.done.wait [#allocation3], 32  }
 0xc10   :  { %5386 = vsyncadd [#allocation3], 4294967264 }
 0xc11   :  { %3356 = vsyncpa [#allocation3], 1 }

</bundles_post_ra>
